<compile_context>
chip_gen: v7x
topology: tpu7x:2x2x1
jax: 0.10.0
libtpu: 0.0.40
codegen_flags: <defaults>
</compile_context>

<pallas_src>
import jax
import jax.numpy as jnp
from jax import lax
from jax.experimental import pallas as pl
from jax.experimental.pallas import tpu as pltpu

NEG_SLOPE = 0.2   # LeakyReLU(negative_slope=0.2)
EPS = 1e-5        # InstanceNorm2d default eps


# ----------------------------- Pallas kernel --------------------------------

def _make_kernel(H, W, Cin, tc, transpose_out):
    P = H * W

    def kernel(xm_ref, mc_ref, w_ref, g_ref, b_ref, o_ref, nm_ref):
        # xm_ref: [1, Hp, Wp, Cin]  zero-padded (x * mask), NHWC, Cin on lanes
        # mc_ref: [1, Hp, Wp, 1]    zero-padded channel-summed mask plane
        # w_ref : [9, Cin, tc]      conv weight, tap-major (dy, dx), this Cout tile
        # g_ref, b_ref: [1, tc]     InstanceNorm affine gamma / beta (this tile)
        # o_ref : [1, tc, P] if transpose_out else [1, P, tc]
        # nm_ref: [1, 1, 1, P]      new mask (identical across Cout channels)
        acc = jnp.zeros((P, tc), jnp.float32)     # feature accumulator (f32)
        msum = jnp.zeros((P, 1), jnp.float32)     # mask window-sum accumulator

        # dx-outer tap loop: only 3 sublane-offset slices of the plane; the dy
        # slices hit the leading dim (free) and the [H,W,C]->[P,C] reshapes are
        # layout-preserving when W % 8 == 0.
        for dx in range(3):
            xs = xm_ref[0, :, dx:dx + W, :]        # [Hp, W, Cin]
            ms = mc_ref[0, :, dx:dx + W, :]        # [Hp, W, 1]
            for dy in range(3):
                xt = xs[dy:dy + H].reshape(P, Cin)
                acc = acc + jnp.dot(xt, w_ref[3 * dy + dx],
                                    preferred_element_type=jnp.float32)
                msum = msum + ms[dy:dy + H].reshape(P, 1)

        # Partial-conv renormalization: reciprocal-multiply on the [P,1] vector
        # (Cout-times fewer divides than dividing the [P, tc] accumulator).
        holes = msum == 0.0
        scale = jnp.where(holes, 0.0, 1.0 / jnp.where(holes, 1.0, msum))
        y = acc * scale                                     # [P, tc]

        # InstanceNorm2d, single-pass stats (biased var, eps inside rsqrt).
        inv_p = 1.0 / P
        mean = jnp.sum(y, axis=0, keepdims=True) * inv_p        # [1, tc]
        e_y2 = jnp.sum(y * y, axis=0, keepdims=True) * inv_p    # [1, tc]
        var = e_y2 - mean * mean
        z = (y - mean) * lax.rsqrt(var + EPS)
        z = z * g_ref[...] + b_ref[...]
        z = jnp.where(z >= 0.0, z, NEG_SLOPE * z)               # LeakyReLU(0.2)

        if transpose_out:
            # Small Cout: [tc, P] keeps P (multiple of 128) on the lane axis.
            o_ref[0] = jnp.transpose(z).astype(o_ref.dtype)
        else:
            # Cout >= 128: already lane-dense as [P, tc]; skip the XLU transpose.
            o_ref[0] = z.astype(o_ref.dtype)

        # New mask: one [1, P] row per image (wrapper broadcasts to Cout).
        nm_ref[0, 0] = jnp.transpose(jnp.where(holes, 0.0, 1.0)).astype(nm_ref.dtype)

    return kernel


# ------------------------------- wrapper -------------------------------------

def pcbactiv_forward(x_nchw, mask_nchw, conv_w, gamma, beta, *,
                     matmul_dtype=jnp.float32):
    """x, mask: [N, Cin, H, W] -> (features [N, Cout, H, W], new_mask [N, Cout, H, W]).

    Assumes the mask is binary (0/1) like the PyTorch reference usage, so the
    hole test (msum == 0) is exact.
    """
    N, Cin, H, W = x_nchw.shape
    Cout = conv_w.shape[0]
    P = H * W
    Hp, Wp = H + 2, W + 2

    # Cout tiling (exact: InstanceNorm statistics are per-channel).
    tc = Cout if Cout <= 128 else 128
    n_co = pl.cdiv(Cout, tc)
    transpose_out = Cout < 128

    # Glue: NCHW -> NHWC, multiply by the mask once here (halves conv-input HBM
    # traffic vs shipping x and a Cin-wide mask), zero-pad by 1. The mask enters
    # the kernel as a single channel-summed plane (mask_conv weight is all ones).
    x_nhwc = jnp.transpose(x_nchw, (0, 2, 3, 1))
    m_nhwc = jnp.transpose(mask_nchw, (0, 2, 3, 1))
    pad = ((0, 0), (1, 1), (1, 1), (0, 0))
    xm_p = jnp.pad((x_nhwc * m_nhwc).astype(matmul_dtype), pad)    # [N, Hp, Wp, Cin]
    mc_p = jnp.pad(jnp.sum(m_nhwc, axis=-1, keepdims=True), pad)   # [N, Hp, Wp, 1]
    # [Cout, Cin, 3, 3] -> [3, 3, Cin, Cout] -> [9, Cin, Cout] (tap-major order).
    w_t = jnp.transpose(conv_w, (2, 3, 1, 0)).reshape(9, Cin, Cout).astype(matmul_dtype)

    if transpose_out:
        feat_shape = jax.ShapeDtypeStruct((N, Cout, P), jnp.float32)
        feat_spec = pl.BlockSpec((1, tc, P), lambda n, c: (n, c, 0))
    else:
        feat_shape = jax.ShapeDtypeStruct((N, P, Cout), jnp.float32)
        feat_spec = pl.BlockSpec((1, P, tc), lambda n, c: (n, 0, c))
    nm_shape = jax.ShapeDtypeStruct((N, n_co, 1, P), jnp.float32)
    nm_spec = pl.BlockSpec((1, 1, 1, P), lambda n, c: (n, c, 0, 0))

    # Explicit scoped-VMEM budget: double-buffered blocks + live values, with headroom.
    bpe = jnp.dtype(matmul_dtype).itemsize
    blocks = (Hp * Wp * Cin * bpe          # xm plane
              + Hp * Wp * 4                # mask plane
              + 9 * Cin * tc * bpe         # weights
              + 2 * tc * 4                 # gamma / beta
              + tc * P * 4 + P * 4)        # outputs
    live = P * tc * 4 + 2 * Hp * W * Cin * bpe + 8 * P * 4
    need = 2 * blocks + live
    vmem_limit = int(min(max(2 * need, 32 * 1024 * 1024), 100 * 1024 * 1024))

    kernel = _make_kernel(H, W, Cin, tc, transpose_out)
    feat, nm = pl.pallas_call(
        kernel,
        out_shape=(feat_shape, nm_shape),
        grid_spec=pltpu.PrefetchScalarGridSpec(
            num_scalar_prefetch=0,
            grid=(N, n_co),
            in_specs=[
                pl.BlockSpec((1, Hp, Wp, Cin), lambda n, c: (n, 0, 0, 0)),  # xm plane
                pl.BlockSpec((1, Hp, Wp, 1), lambda n, c: (n, 0, 0, 0)),    # mask plane
                pl.BlockSpec((9, Cin, tc), lambda n, c: (0, 0, c)),         # weights
                pl.BlockSpec((1, tc), lambda n, c: (0, c)),                 # gamma
                pl.BlockSpec((1, tc), lambda n, c: (0, c)),                 # beta
            ],
            out_specs=[feat_spec, nm_spec],
        ),
        compiler_params=pltpu.CompilerParams(
            dimension_semantics=("parallel", "parallel"),   # batch x Cout tiles
            vmem_limit_bytes=vmem_limit),
    )(xm_p, mc_p, w_t, gamma.reshape(1, Cout), beta.reshape(1, Cout))

    if transpose_out:
        out = feat.reshape(N, Cout, H, W)                   # free reshape (row-major P)
    else:
        out = jnp.transpose(feat.reshape(N, H, W, Cout), (0, 3, 1, 2))
    new_mask = jnp.broadcast_to(nm[:, 0].reshape(N, 1, H, W), (N, Cout, H, W))
    return out, new_mask


# ------------------------------ reference ------------------------------------

def pcbactiv_reference(x, mask, conv_w, gamma, beta):
    dn = ("NCHW", "OIHW", "NCHW")
    feat = lax.conv_general_dilated(x * mask, conv_w, (1, 1), ((1, 1), (1, 1)),
                                    dimension_numbers=dn)
    msum = lax.conv_general_dilated(mask, jnp.ones_like(conv_w), (1, 1),
                                    ((1, 1), (1, 1)), dimension_numbers=dn)
    holes = msum == 0.0
    feat = jnp.where(holes, 0.0, feat / jnp.where(holes, 1.0, msum))
    new_mask = jnp.where(holes, 0.0, 1.0)
    mean = jnp.mean(feat, axis=(2, 3), keepdims=True)
    var = jnp.mean((feat - mean) ** 2, axis=(2, 3), keepdims=True)
    z = (feat - mean) / jnp.sqrt(var + EPS)
    z = z * gamma[None, :, None, None] + beta[None, :, None, None]
    z = jnp.where(z >= 0.0, z, NEG_SLOPE * z)
    return z, new_mask


# --------------------------------- main ---------------------------------------

if __name__ == "__main__":
    in_ch, out_ch = 4, 8
    N, H, W = 2, 16, 16

    key = jax.random.PRNGKey(0)
    kx, kw, kg, kb = jax.random.split(key, 4)

    # Conv2d(in_ch, out_ch, 3, bias=False)-style init + InstanceNorm affine params.
    fan_in = in_ch * 3 * 3
    bound = 1.0 / (fan_in ** 0.5)
    conv_w = jax.random.uniform(kw, (out_ch, in_ch, 3, 3), jnp.float32, -bound, bound)
    gamma = 1.0 + 0.1 * jax.random.normal(kg, (out_ch,), jnp.float32)
    beta = 0.1 * jax.random.normal(kb, (out_ch,), jnp.float32)

    x = jax.random.normal(kx, (N, in_ch, H, W), jnp.float32)

    # Binary mask with a rectangular hole: its interior gives zero 3x3 windows,
    # exercising the partial-conv hole / new-mask path.
    mask = jnp.ones((N, 1, H, W), jnp.float32)
    mask = mask.at[:, :, 5:11, 4:12].set(0.0)
    mask = jnp.broadcast_to(mask, (N, in_ch, H, W))

    out, new_mask = pcbactiv_forward(x, mask, conv_w, gamma, beta)
    out = jax.block_until_ready(out)
    new_mask = jax.block_until_ready(new_mask)

    ref_out, ref_mask = pcbactiv_reference(x, mask, conv_w, gamma, beta)
    assert out.shape == (N, out_ch, H, W), out.shape
    assert new_mask.shape == (N, out_ch, H, W), new_mask.shape
    assert jnp.allclose(out, ref_out, rtol=1e-4, atol=1e-4), \
        float(jnp.max(jnp.abs(out - ref_out)))
    assert jnp.allclose(new_mask, ref_mask), \
        float(jnp.max(jnp.abs(new_mask - ref_mask)))

    print("KERNEL_OK")
</pallas_src>

<mosaic_0001>
module attributes {stable_mosaic.version = 11 : i64} {
  func.func @kernel(%arg0: i32, %arg1: i32, %arg2: memref<1x18x18x4xf32, #tpu.memory_space<vmem>>, %arg3: memref<1x18x18x1xf32, #tpu.memory_space<vmem>>, %arg4: memref<9x4x8xf32, #tpu.memory_space<vmem>>, %arg5: memref<1x8xf32, #tpu.memory_space<vmem>>, %arg6: memref<1x8xf32, #tpu.memory_space<vmem>>, %arg7: memref<1x8x256xf32, #tpu.memory_space<vmem>>, %arg8: memref<1x1x1x256xf32, #tpu.memory_space<vmem>>) attributes {dimension_semantics = [#tpu.dimension_semantics<parallel>, #tpu.dimension_semantics<parallel>], iteration_bounds = array<i64: 2, 1>, scalar_prefetch = 0 : i64, scratch_operands = 0 : i64, tpu.core_type = #tpu.core_type<tc>, window_params = [{transform_indices = @transform_0, window_bounds = array<i64: 1, 18, 18, 4>}, {transform_indices = @transform_1, window_bounds = array<i64: 1, 18, 18, 1>}, {transform_indices = @transform_2, window_bounds = array<i64: 9, 4, 8>}, {transform_indices = @transform_3, window_bounds = array<i64: 1, 8>}, {transform_indices = @transform_4, window_bounds = array<i64: 1, 8>}, {transform_indices = @transform_5, window_bounds = array<i64: 1, 8, 256>}, {transform_indices = @transform_6, window_bounds = array<i64: 1, 1, 1, 256>}]} {
    %cst = arith.constant 0.000000e+00 : f32
    %0 = vector.broadcast %cst : f32 to vector<256x8xf32>
    %cst_0 = arith.constant 0.000000e+00 : f32
    %1 = vector.broadcast %cst_0 : f32 to vector<256x1xf32>
    %c0 = arith.constant 0 : index
    %c0_1 = arith.constant 0 : index
    %c0_2 = arith.constant 0 : index
    %c0_3 = arith.constant 0 : index
    %2 = vector.load %arg2[%c0, %c0_1, %c0_2, %c0_3] : memref<1x18x18x4xf32, #tpu.memory_space<vmem>>, vector<1x18x16x4xf32>
    %3 = vector.shape_cast %2 : vector<1x18x16x4xf32> to vector<18x16x4xf32>
    %c0_4 = arith.constant 0 : index
    %c0_5 = arith.constant 0 : index
    %c0_6 = arith.constant 0 : index
    %c0_7 = arith.constant 0 : index
    %4 = vector.load %arg3[%c0_4, %c0_5, %c0_6, %c0_7] : memref<1x18x18x1xf32, #tpu.memory_space<vmem>>, vector<1x18x16x1xf32>
    %5 = vector.shape_cast %4 : vector<1x18x16x1xf32> to vector<18x16x1xf32>
    %6 = vector.extract_strided_slice %3 {offsets = [0, 0, 0], sizes = [16, 16, 4], strides = [1, 1, 1]} : vector<18x16x4xf32> to vector<16x16x4xf32>
    %7 = vector.shape_cast %6 : vector<16x16x4xf32> to vector<256x4xf32>
    %c0_8 = arith.constant 0 : index
    %c0_9 = arith.constant 0 : index
    %c0_10 = arith.constant 0 : index
    %8 = vector.load %arg4[%c0_8, %c0_9, %c0_10] : memref<9x4x8xf32, #tpu.memory_space<vmem>>, vector<1x4x8xf32>
    %9 = vector.shape_cast %8 : vector<1x4x8xf32> to vector<4x8xf32>
    %cst_11 = arith.constant dense<0.000000e+00> : vector<256x8xf32>
    %10 = tpu.matmul %7, %9, %cst_11 {dimension_numbers = #tpu.dot_dimension_numbers<[1], [0], [0], [1], [0, 0, 1, 1], [], []>} : vector<256x4xf32>, vector<4x8xf32>, vector<256x8xf32> -> vector<256x8xf32>
    %11 = arith.addf %0, %10 : vector<256x8xf32>
    %12 = vector.extract_strided_slice %5 {offsets = [0, 0, 0], sizes = [16, 16, 1], strides = [1, 1, 1]} : vector<18x16x1xf32> to vector<16x16x1xf32>
    %13 = vector.shape_cast %12 : vector<16x16x1xf32> to vector<256x1xf32>
    %14 = arith.addf %1, %13 : vector<256x1xf32>
    %15 = vector.extract_strided_slice %3 {offsets = [1, 0, 0], sizes = [16, 16, 4], strides = [1, 1, 1]} : vector<18x16x4xf32> to vector<16x16x4xf32>
    %16 = vector.shape_cast %15 : vector<16x16x4xf32> to vector<256x4xf32>
    %c3 = arith.constant 3 : index
    %c0_12 = arith.constant 0 : index
    %c0_13 = arith.constant 0 : index
    %17 = vector.load %arg4[%c3, %c0_12, %c0_13] : memref<9x4x8xf32, #tpu.memory_space<vmem>>, vector<1x4x8xf32>
    %18 = vector.shape_cast %17 : vector<1x4x8xf32> to vector<4x8xf32>
    %cst_14 = arith.constant dense<0.000000e+00> : vector<256x8xf32>
    %19 = tpu.matmul %16, %18, %cst_14 {dimension_numbers = #tpu.dot_dimension_numbers<[1], [0], [0], [1], [0, 0, 1, 1], [], []>} : vector<256x4xf32>, vector<4x8xf32>, vector<256x8xf32> -> vector<256x8xf32>
    %20 = arith.addf %11, %19 : vector<256x8xf32>
    %21 = vector.extract_strided_slice %5 {offsets = [1, 0, 0], sizes = [16, 16, 1], strides = [1, 1, 1]} : vector<18x16x1xf32> to vector<16x16x1xf32>
    %22 = vector.shape_cast %21 : vector<16x16x1xf32> to vector<256x1xf32>
    %23 = arith.addf %14, %22 : vector<256x1xf32>
    %24 = vector.extract_strided_slice %3 {offsets = [2, 0, 0], sizes = [16, 16, 4], strides = [1, 1, 1]} : vector<18x16x4xf32> to vector<16x16x4xf32>
    %25 = vector.shape_cast %24 : vector<16x16x4xf32> to vector<256x4xf32>
    %c6 = arith.constant 6 : index
    %c0_15 = arith.constant 0 : index
    %c0_16 = arith.constant 0 : index
    %26 = vector.load %arg4[%c6, %c0_15, %c0_16] : memref<9x4x8xf32, #tpu.memory_space<vmem>>, vector<1x4x8xf32>
    %27 = vector.shape_cast %26 : vector<1x4x8xf32> to vector<4x8xf32>
    %cst_17 = arith.constant dense<0.000000e+00> : vector<256x8xf32>
    %28 = tpu.matmul %25, %27, %cst_17 {dimension_numbers = #tpu.dot_dimension_numbers<[1], [0], [0], [1], [0, 0, 1, 1], [], []>} : vector<256x4xf32>, vector<4x8xf32>, vector<256x8xf32> -> vector<256x8xf32>
    %29 = arith.addf %20, %28 : vector<256x8xf32>
    %30 = vector.extract_strided_slice %5 {offsets = [2, 0, 0], sizes = [16, 16, 1], strides = [1, 1, 1]} : vector<18x16x1xf32> to vector<16x16x1xf32>
    %31 = vector.shape_cast %30 : vector<16x16x1xf32> to vector<256x1xf32>
    %32 = arith.addf %23, %31 : vector<256x1xf32>
    %c0_18 = arith.constant 0 : index
    %c0_19 = arith.constant 0 : index
    %c1 = arith.constant 1 : index
    %c0_20 = arith.constant 0 : index
    %33 = vector.load %arg2[%c0_18, %c0_19, %c1, %c0_20] : memref<1x18x18x4xf32, #tpu.memory_space<vmem>>, vector<1x18x16x4xf32>
    %34 = vector.shape_cast %33 : vector<1x18x16x4xf32> to vector<18x16x4xf32>
    %c0_21 = arith.constant 0 : index
    %c0_22 = arith.constant 0 : index
    %c1_23 = arith.constant 1 : index
    %c0_24 = arith.constant 0 : index
    %35 = vector.load %arg3[%c0_21, %c0_22, %c1_23, %c0_24] : memref<1x18x18x1xf32, #tpu.memory_space<vmem>>, vector<1x18x16x1xf32>
    %36 = vector.shape_cast %35 : vector<1x18x16x1xf32> to vector<18x16x1xf32>
    %37 = vector.extract_strided_slice %34 {offsets = [0, 0, 0], sizes = [16, 16, 4], strides = [1, 1, 1]} : vector<18x16x4xf32> to vector<16x16x4xf32>
    %38 = vector.shape_cast %37 : vector<16x16x4xf32> to vector<256x4xf32>
    %c1_25 = arith.constant 1 : index
    %c0_26 = arith.constant 0 : index
    %c0_27 = arith.constant 0 : index
    %39 = vector.load %arg4[%c1_25, %c0_26, %c0_27] : memref<9x4x8xf32, #tpu.memory_space<vmem>>, vector<1x4x8xf32>
    %40 = vector.shape_cast %39 : vector<1x4x8xf32> to vector<4x8xf32>
    %cst_28 = arith.constant dense<0.000000e+00> : vector<256x8xf32>
    %41 = tpu.matmul %38, %40, %cst_28 {dimension_numbers = #tpu.dot_dimension_numbers<[1], [0], [0], [1], [0, 0, 1, 1], [], []>} : vector<256x4xf32>, vector<4x8xf32>, vector<256x8xf32> -> vector<256x8xf32>
    %42 = arith.addf %29, %41 : vector<256x8xf32>
    %43 = vector.extract_strided_slice %36 {offsets = [0, 0, 0], sizes = [16, 16, 1], strides = [1, 1, 1]} : vector<18x16x1xf32> to vector<16x16x1xf32>
    %44 = vector.shape_cast %43 : vector<16x16x1xf32> to vector<256x1xf32>
    %45 = arith.addf %32, %44 : vector<256x1xf32>
    %46 = vector.extract_strided_slice %34 {offsets = [1, 0, 0], sizes = [16, 16, 4], strides = [1, 1, 1]} : vector<18x16x4xf32> to vector<16x16x4xf32>
    %47 = vector.shape_cast %46 : vector<16x16x4xf32> to vector<256x4xf32>
    %c4 = arith.constant 4 : index
    %c0_29 = arith.constant 0 : index
    %c0_30 = arith.constant 0 : index
    %48 = vector.load %arg4[%c4, %c0_29, %c0_30] : memref<9x4x8xf32, #tpu.memory_space<vmem>>, vector<1x4x8xf32>
    %49 = vector.shape_cast %48 : vector<1x4x8xf32> to vector<4x8xf32>
    %cst_31 = arith.constant dense<0.000000e+00> : vector<256x8xf32>
    %50 = tpu.matmul %47, %49, %cst_31 {dimension_numbers = #tpu.dot_dimension_numbers<[1], [0], [0], [1], [0, 0, 1, 1], [], []>} : vector<256x4xf32>, vector<4x8xf32>, vector<256x8xf32> -> vector<256x8xf32>
    %51 = arith.addf %42, %50 : vector<256x8xf32>
    %52 = vector.extract_strided_slice %36 {offsets = [1, 0, 0], sizes = [16, 16, 1], strides = [1, 1, 1]} : vector<18x16x1xf32> to vector<16x16x1xf32>
    %53 = vector.shape_cast %52 : vector<16x16x1xf32> to vector<256x1xf32>
    %54 = arith.addf %45, %53 : vector<256x1xf32>
    %55 = vector.extract_strided_slice %34 {offsets = [2, 0, 0], sizes = [16, 16, 4], strides = [1, 1, 1]} : vector<18x16x4xf32> to vector<16x16x4xf32>
    %56 = vector.shape_cast %55 : vector<16x16x4xf32> to vector<256x4xf32>
    %c7 = arith.constant 7 : index
    %c0_32 = arith.constant 0 : index
    %c0_33 = arith.constant 0 : index
    %57 = vector.load %arg4[%c7, %c0_32, %c0_33] : memref<9x4x8xf32, #tpu.memory_space<vmem>>, vector<1x4x8xf32>
    %58 = vector.shape_cast %57 : vector<1x4x8xf32> to vector<4x8xf32>
    %cst_34 = arith.constant dense<0.000000e+00> : vector<256x8xf32>
    %59 = tpu.matmul %56, %58, %cst_34 {dimension_numbers = #tpu.dot_dimension_numbers<[1], [0], [0], [1], [0, 0, 1, 1], [], []>} : vector<256x4xf32>, vector<4x8xf32>, vector<256x8xf32> -> vector<256x8xf32>
    %60 = arith.addf %51, %59 : vector<256x8xf32>
    %61 = vector.extract_strided_slice %36 {offsets = [2, 0, 0], sizes = [16, 16, 1], strides = [1, 1, 1]} : vector<18x16x1xf32> to vector<16x16x1xf32>
    %62 = vector.shape_cast %61 : vector<16x16x1xf32> to vector<256x1xf32>
    %63 = arith.addf %54, %62 : vector<256x1xf32>
    %c0_35 = arith.constant 0 : index
    %c0_36 = arith.constant 0 : index
    %c2 = arith.constant 2 : index
    %c0_37 = arith.constant 0 : index
    %64 = vector.load %arg2[%c0_35, %c0_36, %c2, %c0_37] : memref<1x18x18x4xf32, #tpu.memory_space<vmem>>, vector<1x18x16x4xf32>
    %65 = vector.shape_cast %64 : vector<1x18x16x4xf32> to vector<18x16x4xf32>
    %c0_38 = arith.constant 0 : index
    %c0_39 = arith.constant 0 : index
    %c2_40 = arith.constant 2 : index
    %c0_41 = arith.constant 0 : index
    %66 = vector.load %arg3[%c0_38, %c0_39, %c2_40, %c0_41] : memref<1x18x18x1xf32, #tpu.memory_space<vmem>>, vector<1x18x16x1xf32>
    %67 = vector.shape_cast %66 : vector<1x18x16x1xf32> to vector<18x16x1xf32>
    %68 = vector.extract_strided_slice %65 {offsets = [0, 0, 0], sizes = [16, 16, 4], strides = [1, 1, 1]} : vector<18x16x4xf32> to vector<16x16x4xf32>
    %69 = vector.shape_cast %68 : vector<16x16x4xf32> to vector<256x4xf32>
    %c2_42 = arith.constant 2 : index
    %c0_43 = arith.constant 0 : index
    %c0_44 = arith.constant 0 : index
    %70 = vector.load %arg4[%c2_42, %c0_43, %c0_44] : memref<9x4x8xf32, #tpu.memory_space<vmem>>, vector<1x4x8xf32>
    %71 = vector.shape_cast %70 : vector<1x4x8xf32> to vector<4x8xf32>
    %cst_45 = arith.constant dense<0.000000e+00> : vector<256x8xf32>
    %72 = tpu.matmul %69, %71, %cst_45 {dimension_numbers = #tpu.dot_dimension_numbers<[1], [0], [0], [1], [0, 0, 1, 1], [], []>} : vector<256x4xf32>, vector<4x8xf32>, vector<256x8xf32> -> vector<256x8xf32>
    %73 = arith.addf %60, %72 : vector<256x8xf32>
    %74 = vector.extract_strided_slice %67 {offsets = [0, 0, 0], sizes = [16, 16, 1], strides = [1, 1, 1]} : vector<18x16x1xf32> to vector<16x16x1xf32>
    %75 = vector.shape_cast %74 : vector<16x16x1xf32> to vector<256x1xf32>
    %76 = arith.addf %63, %75 : vector<256x1xf32>
    %77 = vector.extract_strided_slice %65 {offsets = [1, 0, 0], sizes = [16, 16, 4], strides = [1, 1, 1]} : vector<18x16x4xf32> to vector<16x16x4xf32>
    %78 = vector.shape_cast %77 : vector<16x16x4xf32> to vector<256x4xf32>
    %c5 = arith.constant 5 : index
    %c0_46 = arith.constant 0 : index
    %c0_47 = arith.constant 0 : index
    %79 = vector.load %arg4[%c5, %c0_46, %c0_47] : memref<9x4x8xf32, #tpu.memory_space<vmem>>, vector<1x4x8xf32>
    %80 = vector.shape_cast %79 : vector<1x4x8xf32> to vector<4x8xf32>
    %cst_48 = arith.constant dense<0.000000e+00> : vector<256x8xf32>
    %81 = tpu.matmul %78, %80, %cst_48 {dimension_numbers = #tpu.dot_dimension_numbers<[1], [0], [0], [1], [0, 0, 1, 1], [], []>} : vector<256x4xf32>, vector<4x8xf32>, vector<256x8xf32> -> vector<256x8xf32>
    %82 = arith.addf %73, %81 : vector<256x8xf32>
    %83 = vector.extract_strided_slice %67 {offsets = [1, 0, 0], sizes = [16, 16, 1], strides = [1, 1, 1]} : vector<18x16x1xf32> to vector<16x16x1xf32>
    %84 = vector.shape_cast %83 : vector<16x16x1xf32> to vector<256x1xf32>
    %85 = arith.addf %76, %84 : vector<256x1xf32>
    %86 = vector.extract_strided_slice %65 {offsets = [2, 0, 0], sizes = [16, 16, 4], strides = [1, 1, 1]} : vector<18x16x4xf32> to vector<16x16x4xf32>
    %87 = vector.shape_cast %86 : vector<16x16x4xf32> to vector<256x4xf32>
    %c8 = arith.constant 8 : index
    %c0_49 = arith.constant 0 : index
    %c0_50 = arith.constant 0 : index
    %88 = vector.load %arg4[%c8, %c0_49, %c0_50] : memref<9x4x8xf32, #tpu.memory_space<vmem>>, vector<1x4x8xf32>
    %89 = vector.shape_cast %88 : vector<1x4x8xf32> to vector<4x8xf32>
    %cst_51 = arith.constant dense<0.000000e+00> : vector<256x8xf32>
    %90 = tpu.matmul %87, %89, %cst_51 {dimension_numbers = #tpu.dot_dimension_numbers<[1], [0], [0], [1], [0, 0, 1, 1], [], []>} : vector<256x4xf32>, vector<4x8xf32>, vector<256x8xf32> -> vector<256x8xf32>
    %91 = arith.addf %82, %90 : vector<256x8xf32>
    %92 = vector.extract_strided_slice %67 {offsets = [2, 0, 0], sizes = [16, 16, 1], strides = [1, 1, 1]} : vector<18x16x1xf32> to vector<16x16x1xf32>
    %93 = vector.shape_cast %92 : vector<16x16x1xf32> to vector<256x1xf32>
    %94 = arith.addf %85, %93 : vector<256x1xf32>
    %cst_52 = arith.constant 0.000000e+00 : f32
    %95 = vector.broadcast %cst_52 : f32 to vector<256x1xf32>
    %96 = arith.cmpf oeq, %94, %95 : vector<256x1xf32>
    %cst_53 = arith.constant 1.000000e+00 : f32
    %97 = vector.broadcast %cst_53 : f32 to vector<256x1xf32>
    %98 = arith.select %96, %97, %94 : vector<256x1xi1>, vector<256x1xf32>
    %cst_54 = arith.constant 1.000000e+00 : f32
    %99 = vector.broadcast %cst_54 : f32 to vector<256x1xf32>
    %100 = arith.divf %99, %98 : vector<256x1xf32>
    %cst_55 = arith.constant 0.000000e+00 : f32
    %101 = vector.broadcast %cst_55 : f32 to vector<256x1xf32>
    %102 = arith.select %96, %101, %100 : vector<256x1xi1>, vector<256x1xf32>
    %103 = vector.broadcast %102 : vector<256x1xf32> to vector<256x8xf32>
    %104 = arith.mulf %91, %103 : vector<256x8xf32>
    %cst_56 = arith.constant dense<0.000000e+00> : vector<8xf32>
    %105 = vector.multi_reduction <add>, %104, %cst_56 [0] : vector<256x8xf32> to vector<8xf32>
    %106 = vector.shape_cast %105 : vector<8xf32> to vector<1x8xf32>
    %cst_57 = arith.constant 3.906250e-03 : f32
    %107 = vector.broadcast %cst_57 : f32 to vector<1x8xf32>
    %108 = arith.mulf %106, %107 : vector<1x8xf32>
    %109 = arith.mulf %104, %104 : vector<256x8xf32>
    %cst_58 = arith.constant dense<0.000000e+00> : vector<8xf32>
    %110 = vector.multi_reduction <add>, %109, %cst_58 [0] : vector<256x8xf32> to vector<8xf32>
    %111 = vector.shape_cast %110 : vector<8xf32> to vector<1x8xf32>
    %cst_59 = arith.constant 3.906250e-03 : f32
    %112 = vector.broadcast %cst_59 : f32 to vector<1x8xf32>
    %113 = arith.mulf %111, %112 : vector<1x8xf32>
    %114 = arith.mulf %108, %108 : vector<1x8xf32>
    %115 = arith.subf %113, %114 : vector<1x8xf32>
    %116 = vector.broadcast %108 : vector<1x8xf32> to vector<256x8xf32>
    %117 = arith.subf %104, %116 : vector<256x8xf32>
    %cst_60 = arith.constant 9.99999974E-6 : f32
    %118 = vector.broadcast %cst_60 : f32 to vector<1x8xf32>
    %119 = arith.addf %115, %118 : vector<1x8xf32>
    %120 = math.rsqrt %119 : vector<1x8xf32>
    %121 = vector.broadcast %120 : vector<1x8xf32> to vector<256x8xf32>
    %122 = arith.mulf %117, %121 : vector<256x8xf32>
    %c0_61 = arith.constant 0 : index
    %c0_62 = arith.constant 0 : index
    %123 = vector.load %arg5[%c0_61, %c0_62] : memref<1x8xf32, #tpu.memory_space<vmem>>, vector<1x8xf32>
    %124 = vector.broadcast %123 : vector<1x8xf32> to vector<256x8xf32>
    %125 = arith.mulf %122, %124 : vector<256x8xf32>
    %c0_63 = arith.constant 0 : index
    %c0_64 = arith.constant 0 : index
    %126 = vector.load %arg6[%c0_63, %c0_64] : memref<1x8xf32, #tpu.memory_space<vmem>>, vector<1x8xf32>
    %127 = vector.broadcast %126 : vector<1x8xf32> to vector<256x8xf32>
    %128 = arith.addf %125, %127 : vector<256x8xf32>
    %cst_65 = arith.constant 0.000000e+00 : f32
    %129 = vector.broadcast %cst_65 : f32 to vector<256x8xf32>
    %130 = arith.cmpf oge, %128, %129 : vector<256x8xf32>
    %cst_66 = arith.constant 2.000000e-01 : f32
    %131 = vector.broadcast %cst_66 : f32 to vector<256x8xf32>
    %132 = arith.mulf %131, %128 : vector<256x8xf32>
    %133 = arith.select %130, %128, %132 : vector<256x8xi1>, vector<256x8xf32>
    %134 = tpu.transpose %133, [1, 0] : vector<256x8xf32> -> vector<8x256xf32>
    %c0_67 = arith.constant 0 : index
    %c0_68 = arith.constant 0 : index
    %c0_69 = arith.constant 0 : index
    %135 = vector.load %arg7[%c0_67, %c0_68, %c0_69] : memref<1x8x256xf32, #tpu.memory_space<vmem>>, vector<1x8x256xf32>
    %136 = vector.shape_cast %135 : vector<1x8x256xf32> to vector<8x256xf32>
    %137 = vector.shape_cast %134 : vector<8x256xf32> to vector<1x8x256xf32>
    tpu.vector_store %arg7[%c0_67, %c0_68, %c0_69], %137 {strides = array<i32>} : memref<1x8x256xf32, #tpu.memory_space<vmem>>, vector<1x8x256xf32>,
    %cst_70 = arith.constant 0.000000e+00 : f32
    %cst_71 = arith.constant 1.000000e+00 : f32
    %138 = vector.broadcast %cst_70 : f32 to vector<256x1xf32>
    %139 = vector.broadcast %cst_71 : f32 to vector<256x1xf32>
    %140 = arith.select %96, %138, %139 : vector<256x1xi1>, vector<256x1xf32>
    %141 = tpu.transpose %140, [1, 0] : vector<256x1xf32> -> vector<1x256xf32>
    %c0_72 = arith.constant 0 : index
    %c0_73 = arith.constant 0 : index
    %c0_74 = arith.constant 0 : index
    %c0_75 = arith.constant 0 : index
    %142 = vector.load %arg8[%c0_72, %c0_73, %c0_74, %c0_75] : memref<1x1x1x256xf32, #tpu.memory_space<vmem>>, vector<1x1x1x256xf32>
    %143 = vector.shape_cast %142 : vector<1x1x1x256xf32> to vector<1x256xf32>
    %144 = vector.shape_cast %141 : vector<1x256xf32> to vector<1x1x1x256xf32>
    tpu.vector_store %arg8[%c0_72, %c0_73, %c0_74, %c0_75], %144 {strides = array<i32>} : memref<1x1x1x256xf32, #tpu.memory_space<vmem>>, vector<1x1x1x256xf32>,
    return
  }
  func.func @transform_0(%arg0: i32, %arg1: i32) -> (i32, i32, i32, i32) {
    %c0_i32 = arith.constant 0 : i32
    %c0_i32_0 = arith.constant 0 : i32
    %c0_i32_1 = arith.constant 0 : i32
    %c0_i32_2 = arith.constant 0 : i32
    return %arg0, %c0_i32, %c0_i32_0, %c0_i32_1 : i32, i32, i32, i32
  }
  func.func @transform_1(%arg0: i32, %arg1: i32) -> (i32, i32, i32, i32) {
    %c0_i32 = arith.constant 0 : i32
    %c0_i32_0 = arith.constant 0 : i32
    %c0_i32_1 = arith.constant 0 : i32
    %c0_i32_2 = arith.constant 0 : i32
    return %arg0, %c0_i32, %c0_i32_0, %c0_i32_1 : i32, i32, i32, i32
  }
  func.func @transform_2(%arg0: i32, %arg1: i32) -> (i32, i32, i32) {
    %c0_i32 = arith.constant 0 : i32
    %c0_i32_0 = arith.constant 0 : i32
    %c0_i32_1 = arith.constant 0 : i32
    return %c0_i32, %c0_i32_0, %arg1 : i32, i32, i32
  }
  func.func @transform_3(%arg0: i32, %arg1: i32) -> (i32, i32) {
    %c0_i32 = arith.constant 0 : i32
    %c0_i32_0 = arith.constant 0 : i32
    return %c0_i32, %arg1 : i32, i32
  }
  func.func @transform_4(%arg0: i32, %arg1: i32) -> (i32, i32) {
    %c0_i32 = arith.constant 0 : i32
    %c0_i32_0 = arith.constant 0 : i32
    return %c0_i32, %arg1 : i32, i32
  }
  func.func @transform_5(%arg0: i32, %arg1: i32) -> (i32, i32, i32) {
    %c0_i32 = arith.constant 0 : i32
    %c0_i32_0 = arith.constant 0 : i32
    return %arg0, %arg1, %c0_i32 : i32, i32, i32
  }
  func.func @transform_6(%arg0: i32, %arg1: i32) -> (i32, i32, i32, i32) {
    %c0_i32 = arith.constant 0 : i32
    %c0_i32_0 = arith.constant 0 : i32
    %c0_i32_1 = arith.constant 0 : i32
    return %arg0, %arg1, %c0_i32, %c0_i32_0 : i32, i32, i32, i32
  }
}

</mosaic_0001>

<bundles_post_ra>
// kernel: tpu_custom_call.1
= control target key start
LH: loop header
LB: loop body
LE: loop exit
PB: predicated region body
PF: predicated region fallthrough
CT: control target
= control target key end

     0   :  { %12 = vsyncpa [#allocation3], 0  ;;  %s8718_s0 = inlined_call_operand.vmem [shape: f32[2,18,18,4], index: 0, kind: input, shape index: {}]   ;;  %s8719_s1 = inlined_call_operand.vmem [shape: f32[2,18,18,1], index: 1, kind: input, shape index: {}]   ;;  %s8720_s2 = inlined_call_operand.vmem [shape: f32[9,4,8], index: 2, kind: input, shape index: {}]   ;;  %s8721_s3 = inlined_call_operand.vmem [shape: f32[1,8], index: 3, kind: input, shape index: {}]   ;;  %s8722_s4 = inlined_call_operand.vmem [shape: f32[1,8], index: 4, kind: input, shape index: {}]   ;;  %s8723_s5 = inlined_call_operand.hbm [shape: f32[2,8,256], index: 5, kind: output, shape index: {0}]   ;;  %s8724_s6 = inlined_call_operand.hbm [shape: f32[2,1,1,256], index: 6, kind: output, shape index: {1}]  }
   0x1   :  { %14 = vsyncpa [#allocation3 + $0x1], 0 }
   0x2   :  { %15 = vsyncpa [#allocation5], 0 }
   0x3   :  { %17 = vsyncpa [#allocation5 + $0x1], 0  ;;  %s6335_s21 = smov 0   ;;  %s6337_s22 = smov 0  }
   0x4   :  { %s6339_s23 = smov 0   ;;  %s6341_s24 = smov 0  }
   0x5   :  { %s6343_s25 = smov 0   ;;  %s6345_s26 = smov 0  }
   0x6 LB: > { %s4611_s27 = sadd.s32 4294967295, %s6293_s26   ;;  %s4612_s28 = sadd.s32 4294967294, %s6293_s26   ;;  %s6293_s26 = sphi %s6345_s26, %s23_s26   ;;  %s6289_s25 = sphi %s6343_s25, %s8852_s25   ;;  %s6285_s24 = sphi %s6341_s24, %s8851_s24   ;;  %s6281_s23 = sphi %s6339_s23, %s8850_s23   ;;  %s6277_s22 = sphi %s6337_s22, %s8849_s22   ;;  %s6273_s21 = sphi %s6335_s21, %s8848_s21  }
   0x7   : > { %s35_s29 = sadd.s32 1, %s6289_s25  ;;  %s174_s30 = sadd.s32 1, %s6281_s23 }
   0x8   : > { %p37_p0 = scmp.ge.s32.totalorder %s35_s29, 2  ;;  %p184_p1 = scmp.ne.s32.totalorder %s6281_s23, %s6277_s22 }
   0x9   : > { %p185_p2 = scmp.eq.s32.totalorder %s4611_s27, 1  ;;  %p190_p3 = scmp.ne.s32.totalorder %s6277_s22, %s6273_s21 }
   0xa   : > { %s8854_s29 = smov (%p37_p0, %s35_s29), 0  ;;  %p191_p5 = scmp.eq.s32.totalorder %s4612_s28, 1 }
   0xb   : > { %p6375_p4 = por %p185_p2, %p184_p1  ;;  %s169_s8 = ssub.s32 %s6289_s25, %s8854_s29 }
   0xc   : > { %p4618_p6 = scmp.ge.s32.totalorder %s6293_s26, 1  ;;  %p172_p7 = scmp.eq.s32.totalorder %s169_s8, 0 }
   0xd   : > { %p6382_p8 = por %p191_p5, %p190_p3  ;;  %p272_p9 = scmp.lt.s32.totalorder %s6293_s26, 3 }
   0xe   : > { %s6388_s10 = scalar_select %p172_p7, %s6281_s23, %s174_s30  }
   0xf   : > { %p273_p10 = pnand %p4618_p6, %p272_p9 }
  0x11   : > { %276 = sbr.rel (%p273_p10) target bundleno = 802 (0x322), region = 40 }
  0x18   : > { %v4623_v0 = vld [vmem:[%s8720_s2 + $0xc] sm:$0xf]  ;;  %vm546_vm0 = vcmask 1043456   ;;  %v6396_v1 = vld [vmem:[%s8720_s2 + $0x10] sm:$0xf]  ;;  %p322_p11 = scmp.lt.s32.totalorder %s6285_s24, 1 }
  0x19   : > { %5237 = vmatprep.subr.msk.mxu1 %vm546_vm0, %v4623_v0  ;;  %5437 = vmatprep.subr.msk.mxu0 %vm546_vm0, %v6396_v1  ;;  %v414_v2 = vld [vmem:[%s8720_s2] sm:$0xf]  ;;  %v4792_v3 = vld [vmem:[%s8720_s2 + $0x1c] sm:$0xf]  ;;  %vm449_vm1 = vcmask 31744   ;;  %s8626_s15 = sand.u32 1, %s6277_s22  }
  0x1a   : > { %5238 = vmatpush3.msk.msra.mxu1 %vm546_vm0, %v4623_v0  ;;  %5438 = vmatpush3.msk.msra.mxu0 %vm546_vm0, %v6396_v1  ;;  %s6412_s19 = scalar_select %p322_p11, %s6285_s24, 1  ;;  %v6447_v10 = vld [vmem:[%s8720_s2 + $0x8] sm:$0xf]  ;;  %v6452_v11 = vld [vmem:[%s8720_s2 + $0x18] sm:$0xf] }
  0x1b   : > { %5287 = vmatprep.subr.msk.mxu1 %vm546_vm0, %v414_v2  ;;  %5487 = vmatprep.subr.msk.mxu0 %vm546_vm0, %v4792_v3  ;;  %v6571_v41 = vld [vmem:[%s8720_s2 + $0x14] sm:$0xf]  ;;  %v6667_v62 = vld [vmem:[%s8720_s2 + $0x4] sm:$0xf]  ;;  %s4619_s16 = sshll.u32 %s8626_s15, 4  ;;  %s4938_s27 = sshll.u32 %s6285_s24, 8 }
  0x1c   : > { %s5945_s20 = smul.u32 432, %s6412_s19  ;;  %s314_s17 = scalar_lea.vmem [#allocation2], %s4619_s16 }
  0x1d   : > { %s4439_s18 = sshll.u32 %s314_s17, 4  ;;  %s4418_s8 = scalar_lea.sflag [#allocation3], %s8626_s15  ;;  %s8636_s18 = int_to_ptr.vmem [resolvable:$true] %s4439_s18 }
  0x1e   : > { %s6422_s30 = scalar_lea.vmem %s8718_s0, %s5945_s20  ;;  %s6725_s28 = scalar_lea.vmem %s8719_s1, %s5945_s20 }
  0x1f   : > { %v6425_v4 = vld [vmem:[%s6422_s30 + $0x18] sm:$0xff]  ;;  %v6429_v6 = vld [vmem:[%s6422_s30 + $0x20] sm:$0xff]  ;;  %v6436_v8 = vld [vmem:[%s6422_s30 + $0x30] sm:$0xff]  ;;  %s8641_s20 = scalar_lea.hbm %s8723_s5, %s4938_s27  ;;  %s6183_s11 = scalar_lea.vmem %s8636_s18, 256 }
  0x20   : > { %v1343_v5 = vld [vmem:[%s6422_s30 + $0x19] sm:$0xff]  ;;  %5239 = vmatprep.mubr.msk.f32.mxu1 %vm449_vm1, %v6425_v4  ;;  %v1344_v7 = vld [vmem:[%s6422_s30 + $0x21] sm:$0xff]  ;;  %v6439_v9 = vld [vmem:[%s6422_s30 + $0x31] sm:$0xff]  ;;  %p6184_p12 = scmp.ne.s32.totalorder %s8636_s18, %s6183_s11 }
  0x21   : > { %5439 = vmatprep.mubr.msk.f32.mxu0 %vm449_vm1, %v1343_v5  ;;  %5240 = vmatmul.mubr.msk.f32.vlgmr.msra.gmra.mrb[0].mxu1 %vm449_vm1, %v6429_v6  ;;  %v6457_v12 = vld [vmem:[%s6422_s30 + $0x38] sm:$0xff]  ;;  %v6465_v14 = vld [vmem:[%s6422_s30 + $0x48] sm:$0xff]  ;;  %v6479_v16 = vld [vmem:[%s6422_s30 + $0x50] sm:$0xff] }
  0x22   : > { %5440 = vmatmul.mubr.msk.f32.vlgmr.msra.gmra.mrb[0].mxu0 %vm449_vm1, %v1344_v7  ;;  %5288 = vmatpush3.msk.msra.mxu1 %vm546_vm0, %v414_v2  ;;  %v1346_v13 = vld [vmem:[%s6422_s30 + $0x39] sm:$0xff]  ;;  %v1347_v15 = vld [vmem:[%s6422_s30 + $0x49] sm:$0xff]  ;;  %v1348_v17 = vld [vmem:[%s6422_s30 + $0x51] sm:$0xff]  ;;  %p6185_p13 = pnand %p6184_p12, %p6375_p4 }
  0x23   : > { %5488 = vmatpush3.msk.msra.mxu0 %vm546_vm0, %v4792_v3  ;;  %5242 = vmatprep.mubr.msk.f32.mxu1 %vm449_vm1, %v6436_v8  ;;  %v6483_v18 = vld [vmem:[%s6422_s30 + $0x60] sm:$0xff]  ;;  %v6493_v20 = vld [vmem:[%s6422_s30 + $0x68] sm:$0xff]  ;;  %v6497_v22 = vld [vmem:[%s6422_s30 + $0x78] sm:$0xff] }
  0x24   : > { %5442 = vmatprep.mubr.msk.f32.mxu0 %vm449_vm1, %v6439_v9  ;;  %5537 = vmatprep.subr.msk.mxu0 %vm546_vm0, %v6447_v10  ;;  %v1349_v19 = vld [vmem:[%s6422_s30 + $0x61] sm:$0xff]  ;;  %v1350_v21 = vld [vmem:[%s6422_s30 + $0x69] sm:$0xff]  ;;  %v1351_v23 = vld [vmem:[%s6422_s30 + $0x79] sm:$0xff]  ;;  %p6186_p0 = pneg %p6185_p13 }
  0x25   : > { %5337 = vmatprep.subr.msk.mxu1 %vm546_vm0, %v6452_v11  ;;  %5243 = vmatmul.mubr.msk.f32.gmra.mrb[2].mxu1 %vm449_vm1, %v6457_v12  ;;  %v6507_v24 = vld [vmem:[%s6422_s30 + $0x80] sm:$0xff]  ;;  %v6511_v26 = vld [vmem:[%s6422_s30 + $0x90] sm:$0xff]  ;;  %v6521_v28 = vld [vmem:[%s6422_s30 + $0x98] sm:$0xff] }
  0x26   : > { %5443 = vmatmul.mubr.msk.f32.gmra.mrb[2].mxu0 %vm449_vm1, %v1346_v13  ;;  %5245 = vmatprep.mubr.msk.f32.mxu1 %vm449_vm1, %v6465_v14  ;;  %v1352_v25 = vld [vmem:[%s6422_s30 + $0x81] sm:$0xff]  ;;  %v1353_v27 = vld [vmem:[%s6422_s30 + $0x91] sm:$0xff]  ;;  %v1354_v29 = vld [vmem:[%s6422_s30 + $0x99] sm:$0xff] }
  0x27   : > { %5445 = vmatprep.mubr.msk.f32.mxu0 %vm449_vm1, %v1347_v15  ;;  %v6525_v30 = vld [vmem:[%s6422_s30 + $0xa8] sm:$0xff]  ;;  %v6535_v32 = vld [vmem:[%s6422_s30 + $0xb0] sm:$0xff]  ;;  %v6539_v34 = vld [vmem:[%s6422_s30 + $0xc0] sm:$0xff] }
  0x28   : > { %v1355_v31 = vld [vmem:[%s6422_s30 + $0xa9] sm:$0xff]  ;;  %v1356_v33 = vld [vmem:[%s6422_s30 + $0xb1] sm:$0xff]  ;;  %v1357_v35 = vld [vmem:[%s6422_s30 + $0xc1] sm:$0xff] }
  0x29   : > { %5246 = vmatmul.mubr.msk.f32.gmra.mrb[4].mxu1 %vm449_vm1, %v6479_v16  ;;  %v6549_v36 = vld [vmem:[%s6422_s30 + $0xc8] sm:$0xff]  ;;  %v6553_v38 = vld [vmem:[%s6422_s30 + $0xd8] sm:$0xff]  ;;  %v6563_v39 = vld [vmem:[%s6422_s30 + $0xe0] sm:$0xff] }
  0x2a   : > { %5446 = vmatmul.mubr.msk.f32.gmra.mrb[4].mxu0 %vm449_vm1, %v1348_v17  ;;  %5248 = vmatprep.mubr.msk.f32.mxu1 %vm449_vm1, %v6483_v18  ;;  %v1358_v37 = vld [vmem:[%s6422_s30 + $0xc9] sm:$0xff]  ;;  %v6581_v42 = vld [vmem:[%s6422_s30 + $0xf8] sm:$0xff]  ;;  %v6599_v45 = vld [vmem:[%s6422_s30 + $0x120] sm:$0xff] }
  0x2b   : > { %5448 = vmatprep.mubr.msk.f32.mxu0 %vm449_vm1, %v1349_v19  ;;  %v6566_v40 = vld [vmem:[%s6422_s30 + $0xf0] sm:$0xff]  ;;  %v6585_v43 = vld [vmem:[%s6422_s30 + $0x108] sm:$0xff]  ;;  %v6611_v47 = vld [vmem:[%s6422_s30 + $0x138] sm:$0xff] }
  0x2c   : > { %v6596_v44 = vld [vmem:[%s6422_s30 + $0x110] sm:$0xff]  ;;  %v6608_v46 = vld [vmem:[%s6422_s30 + $0x128] sm:$0xff]  ;;  %v6620_v48 = vld [vmem:[%s6422_s30 + $0x140] sm:$0xff] }
  0x2d   : > { %5249 = vmatmul.mubr.msk.f32.gmra.mrb[6].mxu1 %vm449_vm1, %v6493_v20  ;;  %v6623_v49 = vld [vmem:[%s6422_s30 + $0x150] sm:$0xff]  ;;  %v6632_v50 = vld [vmem:[%s6422_s30 + $0x158] sm:$0xff]  ;;  %v6635_v51 = vld [vmem:[%s6422_s30 + $0x168] sm:$0xff] }
  0x2e   : > { %5449 = vmatmul.mubr.msk.f32.gmra.mrb[6].mxu0 %vm449_vm1, %v1350_v21  ;;  %5251 = vmatprep.mubr.msk.f32.mxu1 %vm449_vm1, %v6497_v22  ;;  %v6644_v52 = vld [vmem:[%s6422_s30 + $0x170] sm:$0xff]  ;;  %v374_v53 = vld [vmem:[%s6422_s30 + $0x180] sm:$0xff]  ;;  %v375_v55 = vld [vmem:[%s6422_s30 + $0x188] sm:$0xff] }
  0x2f   : > { %5451 = vmatprep.mubr.msk.f32.mxu0 %vm449_vm1, %v1351_v23  ;;  %v1359_v54 = vld [vmem:[%s6422_s30 + $0xd9] sm:$0xff]  ;;  %v1360_v56 = vld [vmem:[%s6422_s30 + $0xe1] sm:$0xff]  ;;  %v1361_v58 = vld [vmem:[%s6422_s30 + $0xf1] sm:$0xff] }
  0x30   : > { %v342_v57 = vld [vmem:[%s6422_s30] sm:$0xff]  ;;  %v343_v59 = vld [vmem:[%s6422_s30 + $0x8] sm:$0xff]  ;;  %v1364_v63 = vld [vmem:[%s6422_s30 + $0x111] sm:$0xff] }
  0x31   : > { %5252 = vmatmul.mubr.msk.f32.gmra.mrb[8].mxu1 %vm449_vm1, %v6507_v24  ;;  %v1362_v60 = vld [vmem:[%s6422_s30 + $0xf9] sm:$0xff]  ;;  %v1363_v61 = vld [vmem:[%s6422_s30 + $0x109] sm:$0xff]  ;;  %v1365_v0 = vld [vmem:[%s6422_s30 + $0x121] sm:$0xff] }
  0x32   : > { %5452 = vmatmul.mubr.msk.f32.gmra.mrb[8].mxu0 %vm449_vm1, %v1352_v25  ;;  %5254 = vmatprep.mubr.msk.f32.mxu1 %vm449_vm1, %v6511_v26  ;;  %v1366_v2 = vld [vmem:[%s6422_s30 + $0x129] sm:$0xff]  ;;  %v1367_v3 = vld [vmem:[%s6422_s30 + $0x139] sm:$0xff]  ;;  %v1369_v5 = vld [vmem:[%s6422_s30 + $0x151] sm:$0xff] }
  0x33   : > { %5454 = vmatprep.mubr.msk.f32.mxu0 %vm449_vm1, %v1353_v27  ;;  %v1371_v7 = vld [vmem:[%s6422_s30 + $0x169] sm:$0xff] }
  0x35   : > { %5255 = vmatmul.mubr.msk.f32.gmra.mrb[10].mxu1 %vm449_vm1, %v6521_v28 }
  0x36   : > { %5455 = vmatmul.mubr.msk.f32.gmra.mrb[10].mxu0 %vm449_vm1, %v1354_v29  ;;  %5257 = vmatprep.mubr.msk.f32.mxu1 %vm449_vm1, %v6525_v30 }
  0x37   : > { %5457 = vmatprep.mubr.msk.f32.mxu0 %vm449_vm1, %v1355_v31 }
  0x39   : > { %5258 = vmatmul.mubr.msk.f32.gmra.mrb[12].mxu1 %vm449_vm1, %v6535_v32 }
  0x3a   : > { %5458 = vmatmul.mubr.msk.f32.gmra.mrb[12].mxu0 %vm449_vm1, %v1356_v33  ;;  %5260 = vmatprep.mubr.msk.f32.mxu1 %vm449_vm1, %v6539_v34 }
  0x3b   : > { %5460 = vmatprep.mubr.msk.f32.mxu0 %vm449_vm1, %v1357_v35 }
  0x3d   : > { %5261 = vmatmul.mubr.msk.f32.gmra.mrb[14].mxu1 %vm449_vm1, %v6549_v36 }
  0x3e   : > { %5461 = vmatmul.mubr.msk.f32.gmra.mrb[14].mxu0 %vm449_vm1, %v1358_v37  ;;  %5263 = vmatprep.mubr.msk.f32.mxu1 %vm449_vm1, %v6553_v38 }
  0x3f   : > { %5489 = vmatprep.mubr.msk.f32.mxu0 %vm449_vm1, %v6439_v9  ;;  %v1372_v9 = vld [vmem:[%s6422_s30 + $0x171] sm:$0xff] }
  0x41   : > { %5264 = vmatmul.mubr.msk.f32.gmra.mrb[16].mxu1 %vm449_vm1, %v6563_v39 }
  0x42   : > { %5490 = vmatmul.mubr.msk.f32.vlgmr.msra.gmra.mrb[0].mxu0 %vm449_vm1, %v1346_v13  ;;  %5266 = vmatprep.mubr.msk.f32.mxu1 %vm449_vm1, %v6566_v40  ;;  %v1375_v13 = vld [vmem:[%s6422_s30 + $0x199] sm:$0xff] }
  0x43   : > { %5538 = vmatpush3.msk.msra.mxu0 %vm546_vm0, %v6447_v10  ;;  %5492 = vmatprep.mubr.msk.f32.mxu0 %vm449_vm1, %v1347_v15  ;;  %v1373_v10 = vld [vmem:[%s6422_s30 + $0x181] sm:$0xff] }
  0x44   : > { %5587 = vmatprep.subr.msk.mxu0 %vm546_vm0, %v6571_v41  ;;  %v1376_v15 = vld [vmem:[%s6422_s30 + $0x1a1] sm:$0xff] }
  0x45   : > { %5267 = vmatmul.mubr.msk.f32.gmra.mrb[18].mxu1 %vm449_vm1, %v6581_v42 }
  0x46   : > { %5493 = vmatmul.mubr.msk.f32.gmra.mrb[2].mxu0 %vm449_vm1, %v1348_v17  ;;  %5269 = vmatprep.mubr.msk.f32.mxu1 %vm449_vm1, %v6585_v43  ;;  %v2403_v17 = vld [vmem:[%s6422_s30 + $0x2] sm:$0xff] }
  0x47   : > { %5495 = vmatprep.mubr.msk.f32.mxu0 %vm449_vm1, %v1349_v19  ;;  %v378_v19 = vld [vmem:[%s6725_s28] sm:$0xff] }
  0x49   : > { %5270 = vmatmul.mubr.msk.f32.gmra.mrb[20].mxu1 %vm449_vm1, %v6596_v44 }
  0x4a   : > { %5496 = vmatmul.mubr.msk.f32.gmra.mrb[4].mxu0 %vm449_vm1, %v1350_v21  ;;  %5272 = vmatprep.mubr.msk.f32.mxu1 %vm449_vm1, %v6599_v45  ;;  %v380_v21 = vld [vmem:[%s6725_s28 + $0x18] sm:$0xff] }
  0x4b   : > { %5498 = vmatprep.mubr.msk.f32.mxu0 %vm449_vm1, %v1351_v23  ;;  %v1009_v23 = vadd.f32 %v380_v21, %v378_v19 }
  0x4d   : > { %5273 = vmatmul.mubr.msk.f32.gmra.mrb[22].mxu1 %vm449_vm1, %v6608_v46 }
  0x4e   : > { %5499 = vmatmul.mubr.msk.f32.gmra.mrb[6].mxu0 %vm449_vm1, %v1352_v25  ;;  %5275 = vmatprep.mubr.msk.f32.mxu1 %vm449_vm1, %v6611_v47  ;;  %v382_v25 = vld [vmem:[%s6725_s28 + $0x30] sm:$0xff] }
  0x4f   : > { %5501 = vmatprep.mubr.msk.f32.mxu0 %vm449_vm1, %v1353_v27  ;;  %v2404_v27 = vld [vmem:[%s6422_s30 + $0xa] sm:$0xff] }
  0x51   : > { %5276 = vmatmul.mubr.msk.f32.gmra.mrb[24].mxu1 %vm449_vm1, %v6620_v48 }
  0x52   : > { %5502 = vmatmul.mubr.msk.f32.gmra.mrb[8].mxu0 %vm449_vm1, %v1354_v29  ;;  %5278 = vmatprep.mubr.msk.f32.mxu1 %vm449_vm1, %v6623_v49  ;;  %v1309_v29 = vadd.f32 %v1009_v23, %v382_v25  ;;  %v6796_v23 = vld [vmem:[%s6725_s28 + $0x50] sm:$0xff] }
  0x53   : > { %5504 = vmatprep.mubr.msk.f32.mxu0 %vm449_vm1, %v1355_v31  ;;  %v1377_v31 = vld [vmem:[%s6725_s28 + $0x1] sm:$0xff] }
  0x55   : > { %5279 = vmatmul.mubr.msk.f32.gmra.mrb[26].mxu1 %vm449_vm1, %v6632_v50 }
  0x56   : > { %5505 = vmatmul.mubr.msk.f32.gmra.mrb[10].mxu0 %vm449_vm1, %v1356_v33  ;;  %5281 = vmatprep.mubr.msk.f32.mxu1 %vm449_vm1, %v6635_v51  ;;  %v379_v33 = vld [vmem:[%s6725_s28 + $0x8] sm:$0xff] }
  0x57   : > { %5507 = vmatprep.mubr.msk.f32.mxu0 %vm449_vm1, %v1357_v35  ;;  %v381_v35 = vld [vmem:[%s6725_s28 + $0x20] sm:$0xff] }
  0x59   : > { %5282 = vmatmul.mubr.msk.f32.gmra.mrb[28].mxu1 %vm449_vm1, %v6644_v52 }
  0x5a   : > { %5508 = vmatmul.mubr.msk.f32.gmra.mrb[12].mxu0 %vm449_vm1, %v1358_v37  ;;  %5284 = vmatprep.mubr.msk.f32.mxu1 %vm449_vm1, %v374_v53  ;;  %v6749_v37 = vld [vmem:[%s6422_s30 + $0x1a] sm:$0xff] }
  0x5b   : > { %5510 = vmatprep.mubr.msk.f32.mxu0 %vm449_vm1, %v1359_v54  ;;  %v6754_v53 = vld [vmem:[%s8720_s2 + $0x20] sm:$0xf]  ;;  %v1771_v54 = vadd.f32 %v1377_v31, %v1309_v29 }
  0x5c   : > { %v1382_v29 = vld [vmem:[%s6725_s28 + $0x39] sm:$0xff] }
  0x5d   : > { %5285 = vmatmul.mubr.msk.f32.gmra.mrb[30].mxu1 %vm449_vm1, %v375_v55  ;;  %v1011_v55 = vadd.f32 %v382_v25, %v380_v21 }
  0x5e   : > { %5511 = vmatmul.mubr.msk.f32.gmra.mrb[14].mxu0 %vm449_vm1, %v1360_v56  ;;  %5289 = vmatprep.mubr.msk.f32.mxu1 %vm449_vm1, %v342_v57  ;;  %v1010_v56 = vadd.f32 %v381_v35, %v379_v33  ;;  %v384_v57 = vld [vmem:[%s6725_s28 + $0x48] sm:$0xff] }
  0x5f   : > { %5513 = vmatprep.mubr.msk.f32.mxu0 %vm449_vm1, %v1361_v58  ;;  %v1379_v58 = vld [vmem:[%s6725_s28 + $0x19] sm:$0xff] }
  0x61   : > { %5290 = vmatmul.mubr.msk.f32.vlgmr.msra.gmra.mrb[0].mxu1 %vm449_vm1, %v343_v59  ;;  %v383_v59 = vld [vmem:[%s6725_s28 + $0x38] sm:$0xff] }
  0x62   : > { %5514 = vmatmul.mubr.msk.f32.gmra.mrb[16].mxu0 %vm449_vm1, %v1362_v60  ;;  %5338 = vmatpush3.msk.msra.mxu1 %vm546_vm0, %v6452_v11  ;;  %v1374_v11 = vld [vmem:[%s6422_s30 + $0x189] sm:$0xff] }
  0x63   : > { %5292 = vmatprep.mubr.msk.f32.mxu1 %vm449_vm1, %v6425_v4  ;;  %5516 = vmatprep.mubr.msk.f32.mxu0 %vm449_vm1, %v1363_v61  ;;  %v1368_v4 = vld [vmem:[%s6422_s30 + $0x141] sm:$0xff]  ;;  %v2071_v61 = vadd.f32 %v1771_v54, %v1379_v58 }
  0x64   : > { %5387 = vmatprep.subr.msk.mxu1 %vm546_vm0, %v6667_v62  ;;  %v6767_v60 = vld [vmem:[%s6422_s30 + $0x22] sm:$0xff] }
  0x65   : > { %5293 = vmatmul.mubr.msk.f32.gmra.mrb[2].mxu1 %vm449_vm1, %v6429_v6  ;;  %v1370_v6 = vld [vmem:[%s6422_s30 + $0x159] sm:$0xff] }
  0x66   : > { %5517 = vmatmul.mubr.msk.f32.gmra.mrb[18].mxu0 %vm449_vm1, %v1364_v63  ;;  %5295 = vmatprep.mubr.msk.f32.mxu1 %vm449_vm1, %v6436_v8  ;;  %v1311_v63 = vadd.f32 %v1011_v55, %v384_v57 }
  0x67   : > { %5519 = vmatprep.mubr.msk.f32.mxu0 %vm449_vm1, %v1365_v0  ;;  %v1310_v0 = vadd.f32 %v1010_v56, %v383_v59  ;;  %v388_v56 = vld [vmem:[%s6725_s28 + $0x78] sm:$0xff] }
  0x69   : > { %5296 = vmatmul.mubr.msk.f32.gmra.mrb[4].mxu1 %vm449_vm1, %v6457_v12 }
  0x6a   : > { %5520 = vmatmul.mubr.msk.f32.gmra.mrb[20].mxu0 %vm449_vm1, %v1366_v2  ;;  %5298 = vmatprep.mubr.msk.f32.mxu1 %vm449_vm1, %v6465_v14  ;;  %v6772_v2 = vld [vmem:[%s6422_s30 + $0x32] sm:$0xff] }
  0x6b   : > { %5522 = vmatprep.mubr.msk.f32.mxu0 %vm449_vm1, %v1367_v3  ;;  %v1378_v3 = vld [vmem:[%s6725_s28 + $0x9] sm:$0xff] }
  0x6d   : > { %5299 = vmatmul.mubr.msk.f32.gmra.mrb[6].mxu1 %vm449_vm1, %v6479_v16 }
  0x6e   : > { %5523 = vmatmul.mubr.msk.f32.gmra.mrb[22].mxu0 %vm449_vm1, %v1368_v4  ;;  %5301 = vmatprep.mubr.msk.f32.mxu1 %vm449_vm1, %v6483_v18  ;;  %v1013_v4 = vadd.f32 %v384_v57, %v382_v25  ;;  %v1383_v25 = vld [vmem:[%s6725_s28 + $0x49] sm:$0xff] }
  0x6f   : > { %5525 = vmatprep.mubr.msk.f32.mxu0 %vm449_vm1, %v1369_v5 }
  0x71   : > { %5302 = vmatmul.mubr.msk.f32.gmra.mrb[8].mxu1 %vm449_vm1, %v6493_v20 }
  0x72   : > { %5526 = vmatmul.mubr.msk.f32.gmra.mrb[24].mxu0 %vm449_vm1, %v1370_v6  ;;  %5304 = vmatprep.mubr.msk.f32.mxu1 %vm449_vm1, %v6497_v22  ;;  %v1773_v6 = vadd.f32 %v1379_v58, %v1311_v63  ;;  %v2443_v58 = vld [vmem:[%s6725_s28 + $0x32] sm:$0xff]  ;;  %v2440_v63 = vld [vmem:[%s6725_s28 + $0xa] sm:$0xff] }
  0x73   : > { %5528 = vmatprep.mubr.msk.f32.mxu0 %vm449_vm1, %v1371_v7  ;;  %v1772_v7 = vadd.f32 %v1378_v3, %v1310_v0 }
  0x75   : > { %5305 = vmatmul.mubr.msk.f32.gmra.mrb[10].mxu1 %vm449_vm1, %v6507_v24 }
  0x76   : > { %5529 = vmatmul.mubr.msk.f32.gmra.mrb[26].mxu0 %vm449_vm1, %v1372_v9  ;;  %5307 = vmatprep.mubr.msk.f32.mxu1 %vm449_vm1, %v6511_v26  ;;  %v386_v9 = vld [vmem:[%s6725_s28 + $0x60] sm:$0xff] }
  0x77   : > { %5531 = vmatprep.mubr.msk.f32.mxu0 %vm449_vm1, %v1373_v10  ;;  %v2439_v10 = vld [vmem:[%s6725_s28 + $0x2] sm:$0xff]  ;;  %v1015_v54 = vadd.f32 %v386_v9, %v384_v57 }
  0x78   : > { %v6818_v57 = vld [vmem:[%s6422_s30 + $0x62] sm:$0xff] }
  0x79   : > { %5308 = vmatmul.mubr.msk.f32.gmra.mrb[12].mxu1 %vm449_vm1, %v6521_v28 }
  0x7a   : > { %5532 = vmatmul.mubr.msk.f32.gmra.mrb[28].mxu0 %vm449_vm1, %v1374_v11  ;;  %5310 = vmatprep.mubr.msk.f32.mxu1 %vm449_vm1, %v6525_v30  ;;  %v1380_v11 = vld [vmem:[%s6725_s28 + $0x21] sm:$0xff] }
  0x7b   : > { %5534 = vmatprep.mubr.msk.f32.mxu0 %vm449_vm1, %v1375_v13  ;;  %v1012_v13 = vadd.f32 %v383_v59, %v381_v35  ;;  %v2072_v31 = vadd.f32 %v1772_v7, %v1380_v11  ;;  %v1385_v7 = vld [vmem:[%s6725_s28 + $0x61] sm:$0xff] }
  0x7d   : > { %5311 = vmatmul.mubr.msk.f32.gmra.mrb[14].mxu1 %vm449_vm1, %v6535_v32 }
  0x7e   : > { %5535 = vmatmul.mubr.msk.f32.gmra.mrb[30].mxu0 %vm449_vm1, %v1376_v15  ;;  %5313 = vmatprep.mubr.msk.f32.mxu1 %vm449_vm1, %v6539_v34  ;;  %v6790_v15 = vld [vmem:[%s6422_s30 + $0x3a] sm:$0xff] }
  0x7f   : > { %5539 = vmatprep.mubr.msk.f32.mxu0 %vm449_vm1, %v2403_v17  ;;  %v6793_v17 = vld [vmem:[%s6422_s30 + $0x4a] sm:$0xff] }
  0x81   : > { %5314 = vmatmul.mubr.msk.f32.gmra.mrb[16].mxu1 %vm449_vm1, %v6549_v36 }
  0x82   : > { %5540 = vmatmul.mubr.msk.f32.vlgmr.msra.gmra.mrb[0].mxu0 %vm449_vm1, %v2404_v27  ;;  %5316 = vmatprep.mubr.msk.f32.mxu1 %vm449_vm1, %v6553_v38  ;;  %v2441_v27 = vld [vmem:[%s6725_s28 + $0x1a] sm:$0xff] }
  0x83   : > { %5588 = vmatpush3.msk.msra.mxu0 %vm546_vm0, %v6571_v41  ;;  %5542 = vmatprep.mubr.msk.f32.mxu0 %vm449_vm1, %v6749_v37  ;;  %v1381_v41 = vld [vmem:[%s6725_s28 + $0x31] sm:$0xff] }
  0x84   : > { %5637 = vmatprep.subr.msk.mxu0 %vm546_vm0, %v6754_v53  ;;  %v2371_v5 = vadd.f32 %v2071_v61, %v1381_v41  ;;  %v2073_v21 = vadd.f32 %v1773_v6, %v1381_v41  ;;  %v2372_v61 = vadd.f32 %v2072_v31, %v1382_v29  ;;  %v6823_v6 = vld [vmem:[%s6725_s28 + $0x68] sm:$0xff] }
  0x85   : > { %5317 = vmatmul.mubr.msk.f32.gmra.mrb[18].mxu1 %vm449_vm1, %v6563_v39  ;;  %v1313_v39 = vadd.f32 %v1013_v4, %v386_v9 }
  0x86   : > { %5543 = vmatmul.mubr.msk.f32.gmra.mrb[2].mxu0 %vm449_vm1, %v6767_v60  ;;  %5319 = vmatprep.mubr.msk.f32.mxu1 %vm449_vm1, %v6566_v40  ;;  %v2833_v19 = vadd.f32 %v2439_v10, %v2371_v5  ;;  %v1312_v40 = vadd.f32 %v1012_v13, %v6796_v23  ;;  %v2373_v55 = vadd.f32 %v2073_v21, %v1383_v25  ;;  %v2442_v10 = vld [vmem:[%s6725_s28 + $0x22] sm:$0xff] }
  0x87   : > { %5545 = vmatprep.mubr.msk.f32.mxu0 %vm449_vm1, %v6772_v2  ;;  %v1775_v33 = vadd.f32 %v1381_v41, %v1313_v39  ;;  %v1014_v41 = vadd.f32 %v6796_v23, %v383_v59  ;;  %v1315_v5 = vadd.f32 %v1015_v54, %v388_v56 }
  0x88   : > { %v3133_v35 = vadd.f32 %v2833_v19, %v2441_v27  ;;  %v1774_v0 = vadd.f32 %v1380_v11, %v1312_v40  ;;  %v2835_v59 = vadd.f32 %v2441_v27, %v2373_v55  ;;  %v6828_v11 = vld [vmem:[%s6725_s28 + $0x51] sm:$0xff]  ;;  %v1017_v19 = vadd.f32 %v388_v56, %v386_v9 }
  0x89   : > { %5320 = vmatmul.mubr.msk.f32.gmra.mrb[20].mxu1 %vm449_vm1, %v6581_v42  ;;  %v6815_v42 = vld [vmem:[%s6422_s30 + $0x52] sm:$0xff]  ;;  %v2075_v3 = vadd.f32 %v1775_v33, %v1383_v25  ;;  %v1314_v39 = vadd.f32 %v1014_v41, %v6823_v6  ;;  %v1777_v31 = vadd.f32 %v1383_v25, %v1315_v5  ;;  %v2445_v33 = vld [vmem:[%s6725_s28 + $0x4a] sm:$0xff] }
  0x8a   : > { %5546 = vmatmul.mubr.msk.f32.gmra.mrb[4].mxu0 %vm449_vm1, %v6790_v15  ;;  %5322 = vmatprep.mubr.msk.f32.mxu1 %vm449_vm1, %v6585_v43  ;;  %v6820_v4 = vadd.f32 %v3133_v35, %v2443_v58  ;;  %v2834_v43 = vadd.f32 %v2440_v63, %v2372_v61  ;;  %v2074_v13 = vadd.f32 %v1774_v0, %v1382_v29  ;;  %v6837_v27 = vld [vmem:[%s6725_s28 + $0x90] sm:$0xff]  ;;  %v2444_v35 = vld [vmem:[%s6725_s28 + $0x3a] sm:$0xff] }
  0x8b   : > { %5548 = vmatprep.mubr.msk.f32.mxu0 %vm449_vm1, %v6793_v17  ;;  %v2375_v21 = vadd.f32 %v2075_v3, %v1385_v7  ;;  %v3135_v9 = vadd.f32 %v2835_v59, %v2443_v58  ;;  %v1317_v55 = vadd.f32 %v1017_v19, %v6837_v27  ;;  %v2077_v63 = vadd.f32 %v1777_v31, %v1385_v7  ;;  %v6854_v0 = vld [vmem:[%s6422_s30 + $0x7a] sm:$0xff]  ;;  %v6870_v31 = vld [vmem:[%s6725_s28 + $0xa8] sm:$0xff] }
  0x8c   : > { %8766 = vst [vmem:[#allocation8_spill] sm:$0xff] %v6820_v4  ;;  %vm3465_vm2 = vcmp.eq.f32.partialorder %v6820_v4, 0.0  ;;  %v3134_v54 = vadd.f32 %v2834_v43, %v2442_v10  ;;  %v2374_v25 = vadd.f32 %v2074_v13, %v6828_v11  ;;  %v1387_v41 = vld [vmem:[%s6725_s28 + $0x79] sm:$0xff]  ;;  %v1776_v59 = vadd.f32 %v1382_v29, %v1314_v39 }
  0x8d   : > { %5323 = vmatmul.mubr.msk.f32.gmra.mrb[22].mxu1 %vm449_vm1, %v6596_v44  ;;  %v3497_v40 = vsel %vm3465_vm2, 1.0, %v6820_v4  ;;  %v6850_v44 = vld [vmem:[%s6422_s30 + $0x6a] sm:$0xff]  ;;  %v2837_v61 = vadd.f32 %v2443_v58, %v2375_v21  ;;  %v6857_v3 = vadd.f32 %v3135_v9, %v2445_v33  ;;  %v1779_v43 = vadd.f32 %v1385_v7, %v1317_v55  ;;  %v6875_v29 = vld [vmem:[%s6725_s28 + $0x52] sm:$0xff]  ;;  %v2447_v7 = vld [vmem:[%s6725_s28 + $0x62] sm:$0xff] }
  0x8e   : > { %5549 = vmatmul.mubr.msk.f32.gmra.mrb[6].mxu0 %vm449_vm1, %v6815_v42  ;;  %5325 = vmatprep.mubr.msk.f32.mxu1 %vm449_vm1, %v6599_v45  ;;  %6048 = vrcp.f32 %v3497_v40  ;;  %v6859_v45 = vadd.f32 %v3134_v54, %v2444_v35  ;;  %v2836_v5 = vadd.f32 %v2442_v10, %v2374_v25  ;;  %v1019_v13 = vadd.f32 %v6837_v27, %v388_v56  ;;  %v6863_v21 = vld [vmem:[%s6725_s28 + $0x69] sm:$0xff]  ;;  %v6894_v25 = vld [vmem:[%s6422_s30 + $0x92] sm:$0xff] }
  0x8f   : > { %5551 = vmatprep.mubr.msk.f32.mxu0 %vm449_vm1, %v6818_v57  ;;  %v2377_v19 = vadd.f32 %v2077_v63, %v1387_v41  ;;  %v3137_v58 = vadd.f32 %v2837_v61, %v2445_v33  ;;  %vm3467_vm3 = vcmp.eq.f32.partialorder %v6857_v3, 0.0  ;;  %v2076_v10 = vadd.f32 %v1776_v59, %v6828_v11  ;;  %8767 = vst [vmem:[#allocation9_spill] sm:$0xff] %v6894_v25  ;;  %v6971_v4 = vld [vmem:[%s6422_s30 + $0xc2] sm:$0xff] }
  0x90   : > { %vm3466_vm4 = vcmp.eq.f32.partialorder %v6859_v45, 0.0  ;;  %v3136_v56 = vadd.f32 %v2836_v5, %v2444_v35  ;;  %v1319_v39 = vadd.f32 %v1019_v13, %v6870_v31  ;;  %v3499_v9 = vsel %vm3467_vm3, 1.0, %v6857_v3  ;;  %v389_v5 = vld [vmem:[%s6725_s28 + $0x80] sm:$0xff]  ;;  %v6906_v13 = vld [vmem:[%s6725_s28 + $0x91] sm:$0xff]  ;;  %8768 = vst [vmem:[#allocation10_spill] sm:$0xff] %v6971_v4 }
  0x91   : > { %5326 = vmatmul.mubr.msk.f32.gmra.mrb[24].mxu1 %vm449_vm1, %v6608_v46  ;;  %v6884_v46 = vld [vmem:[%s6422_s30 + $0x82] sm:$0xff]  ;;  %v2839_v40 = vadd.f32 %v2445_v33, %v2377_v19  ;;  %v3498_v54 = vsel %vm3466_vm4, 1.0, %v6859_v45  ;;  %6050 = vrcp.f32 %v3499_v9  ;;  %v6899_v55 = vadd.f32 %v3137_v58, %v2447_v7  ;;  %v2449_v58 = vld [vmem:[%s6725_s28 + $0x7a] sm:$0xff]  ;;  %v7171_v3 = vld [vmem:[%s6422_s30 + $0x12a] sm:$0xff] }
  0x92   : > { %5552 = vmatmul.mubr.msk.f32.gmra.mrb[8].mxu0 %vm449_vm1, %v6850_v44  ;;  %5328 = vmatprep.mubr.msk.f32.mxu1 %vm449_vm1, %v6611_v47  ;;  %v6897_v47 = vadd.f32 %v3136_v56, %v6875_v29  ;;  %v2376_v61 = vadd.f32 %v2076_v10, %v6863_v21  ;;  %v1781_v33 = vadd.f32 %v1387_v41, %v1319_v39  ;;  %6052 = vrcp.f32 %v3498_v54  ;;  %v6929_v10 = vld [vmem:[%s6725_s28 + $0x6a] sm:$0xff]  ;;  %v391_v54 = vld [vmem:[%s6725_s28 + $0x98] sm:$0xff] }
  0x93   : > { %5554 = vmatprep.mubr.msk.f32.mxu0 %vm449_vm1, %v6854_v0  ;;  %v3139_v63 = vadd.f32 %v2839_v40, %v2447_v7  ;;  %v1016_v59 = vadd.f32 %v6823_v6, %v6796_v23  ;;  %vm3469_vm6 = vcmp.eq.f32.partialorder %v6899_v55, 0.0  ;;  %v2079_v56 = vadd.f32 %v1779_v43, %v1387_v41  ;;  %v6920_v23 = vld [vmem:[%s6422_s30 + $0x9a] sm:$0xff]  ;;  %v6934_v43 = vld [vmem:[%s6422_s30 + $0xaa] sm:$0xff] }
  0x94   : > { %vm3468_vm5 = vcmp.eq.f32.partialorder %v6897_v47, 0.0  ;;  %v2838_v19 = vadd.f32 %v2444_v35, %v2376_v61  ;;  %v3501_v35 = vsel %vm3469_vm6, 1.0, %v6899_v55  ;;  %v6940_v61 = vld [vmem:[%s6725_s28 + $0xa9] sm:$0xff] }
  0x95   : > { %5329 = vmatmul.mubr.msk.f32.gmra.mrb[26].mxu1 %vm449_vm1, %v6620_v48  ;;  %v3500_v48 = vsel %vm3468_vm5, 1.0, %v6897_v47  ;;  %v6931_v41 = vadd.f32 %v3139_v63, %v2449_v58  ;;  %v1316_v40 = vadd.f32 %v1016_v59, %v389_v5  ;;  %v2379_v9 = vadd.f32 %v2079_v56, %v6906_v13 }
  0x96   : > { %5555 = vmatmul.mubr.msk.f32.gmra.mrb[10].mxu0 %vm449_vm1, %v6884_v46  ;;  %5331 = vmatprep.mubr.msk.f32.mxu1 %vm449_vm1, %v6623_v49  ;;  %v6295_v49 = vmov 0   ;;  %6054 = vrcp.f32 %v3500_v48  ;;  %v3138_v39 = vadd.f32 %v2838_v19, %v6875_v29  ;;  %v1018_v63 = vadd.f32 %v389_v5, %v6823_v6 }
  0x97   : > { %5557 = vmatprep.mubr.msk.f32.mxu0 %vm449_vm1, %v6894_v25  ;;  %6009 = vset.pattern.permute.xlu0 %v6295_v49  ;;  %6056 = vrcp.f32 %v3501_v35  ;;  %vm3471_vm7 = vcmp.eq.f32.partialorder %v6931_v41, 0.0  ;;  %v2841_v56 = vadd.f32 %v2447_v7, %v2379_v9  ;;  %v1021_v7 = vadd.f32 %v6870_v31, %v6837_v27 }
  0x98   : > { %6010 = vset.pattern.permute.xlu1 %v6295_v49  ;;  %v6049_v25 = vpop.eup %6048  ;;  %v2081_v49 = vadd.f32 %v1781_v33, %v6906_v13  ;;  %v6952_v19 = vadd.f32 %v3138_v39, %v6929_v10  ;;  %v3503_v6 = vsel %vm3471_vm7, 1.0, %v6931_v41  ;;  %v1778_v33 = vadd.f32 %v6828_v11, %v1316_v40  ;;  %v6968_v39 = vld [vmem:[%s6725_s28 + $0xb0] sm:$0xff] }
  0x99   : > { %5332 = vmatmul.mubr.msk.f32.gmra.mrb[28].mxu1 %vm449_vm1, %v6632_v50  ;;  %v3593_v59 = vsel %vm3465_vm2, 0.0, %v6049_v25  ;;  %v6963_v50 = vld [vmem:[%s6422_s30 + $0xb2] sm:$0xff]  ;;  %6058 = vrcp.f32 %v3503_v6  ;;  %v1388_v25 = vld [vmem:[%s6725_s28 + $0x81] sm:$0xff]  ;;  %v1318_v48 = vadd.f32 %v1018_v63, %v391_v54  ;;  %v1020_v40 = vadd.f32 %v391_v54, %v389_v5 }
  0x9a   : > { %5558 = vmatmul.mubr.msk.f32.gmra.mrb[12].mxu0 %vm449_vm1, %v6920_v23  ;;  %5334 = vmatprep.mubr.msk.f32.mxu1 %vm449_vm1, %v6635_v51  ;;  %v2381_v35 = vadd.f32 %v2081_v49, %v6940_v61  ;;  %vm3470_vm8 = vcmp.eq.f32.partialorder %v6952_v19, 0.0  ;;  %v2078_v51 = vadd.f32 %v1778_v33, %v6863_v21  ;;  %v6976_v11 = vld [vmem:[%s6725_s28 + $0x92] sm:$0xff]  ;;  %v3141_v63 = vadd.f32 %v2841_v56, %v2449_v58  ;;  %v6990_v33 = vld [vmem:[%s6725_s28 + $0xc0] sm:$0xff] }
  0x9b   : > { %5560 = vmatprep.mubr.msk.f32.mxu0 %vm449_vm1, %v6934_v43  ;;  %3627 = vperm.xlu0 %6009, %v3593_v59   ;;  %v3502_v9 = vsel %vm3470_vm8, 1.0, %v6952_v19  ;;  %v1780_v49 = vadd.f32 %v6863_v21, %v1318_v48  ;;  %v6051_v6 = vpop.eup %6050  ;;  %v1320_v27 = vadd.f32 %v1020_v40, %v6968_v39  ;;  %v7009_v40 = vld [vmem:[%s6725_s28 + $0xaa] sm:$0xff]  ;;  %v7277_v19 = vld [vmem:[%s6422_s30 + $0x15a] sm:$0xff] }
  0x9c   : > { %v2843_v59 = vadd.f32 %v2449_v58, %v2381_v35  ;;  %6060 = vrcp.f32 %v3502_v9  ;;  %v2378_v5 = vadd.f32 %v2078_v51, %v1388_v25  ;;  %v6053_v56 = vpop.eup %6052  ;;  %v3595_v21 = vsel %vm3467_vm3, 0.0, %v6051_v6  ;;  %v1390_v51 = vld [vmem:[%s6725_s28 + $0x99] sm:$0xff]  ;;  %v2450_v6 = vld [vmem:[%s6725_s28 + $0x82] sm:$0xff] }
  0x9d   : > { %5335 = vmatmul.mubr.msk.f32.gmra.mrb[30].mxu1 %vm449_vm1, %v6644_v52  ;;  %v6997_v52 = vld [vmem:[%s6422_s30 + $0xca] sm:$0xff]  ;;  %v7002_v58 = vadd.f32 %v3141_v63, %v6976_v11  ;;  %3637 = vperm.xlu1 %6010, %v3595_v21   ;;  %v3594_v48 = vsel %vm3466_vm4, 0.0, %v6053_v56  ;;  %v1782_v63 = vadd.f32 %v1388_v25, %v1320_v27  ;;  %v1321_v21 = vadd.f32 %v1021_v7, %v6990_v33 }
  0x9e   : > { %5561 = vmatmul.mubr.msk.f32.gmra.mrb[14].mxu0 %vm449_vm1, %v6963_v50  ;;  %5339 = vmatprep.mubr.msk.f32.mxu1 %vm449_vm1, %v6436_v8  ;;  %v2840_v35 = vadd.f32 %v6875_v29, %v2378_v5  ;;  %v2080_v8 = vadd.f32 %v1780_v49, %v1388_v25  ;;  %v3143_v9 = vadd.f32 %v2843_v59, %v6976_v11  ;;  %v7028_v25 = vld [vmem:[%s6725_s28 + $0xc8] sm:$0xff] }
  0x9f   : > { %5563 = vmatprep.mubr.msk.f32.mxu0 %vm449_vm1, %v6971_v4  ;;  %v7013_v4 = vld [vmem:[%s6422_s30 + $0xda] sm:$0xff]  ;;  %3632 = vperm.xlu0 %6009, %v3594_v48   ;;  %vm3473_vm9 = vcmp.eq.f32.partialorder %v7002_v58, 0.0  ;;  %v1022_v56 = vadd.f32 %v6968_v39, %v391_v54  ;;  %v7045_v48 = vld [vmem:[%s6422_s30 + $0xf2] sm:$0xff] }
  0xa0   : > { %8769 = vst [vmem:[#allocation11_spill] sm:$0xff] %v7013_v4  ;;  %v6055_v29 = vpop.eup %6054  ;;  %v3140_v49 = vadd.f32 %v2840_v35, %v6929_v10  ;;  %v3505_v59 = vsel %vm3473_vm9, 1.0, %v7002_v58  ;;  %v2380_v5 = vadd.f32 %v2080_v8, %v1390_v51  ;;  %v7040_v27 = vadd.f32 %v3143_v9, %v7009_v40  ;;  %8771 = vst [vmem:[#allocation13_spill] sm:$0xff] %v7045_v48  ;;  %v7054_v35 = vld [vmem:[%s6725_s28 + $0xb1] sm:$0xff] }
  0xa1   : > { %5340 = vmatmul.mubr.msk.f32.vlgmr.msra.gmra.mrb[0].mxu1 %vm449_vm1, %v6457_v12  ;;  %v6057_v7 = vpop.eup %6056  ;;  %v7035_v12 = vld [vmem:[%s6422_s30 + $0xe2] sm:$0xff]  ;;  %v3596_v54 = vsel %vm3468_vm5, 0.0, %v6055_v29  ;;  %6062 = vrcp.f32 %v3505_v59  ;;  %v2082_v8 = vadd.f32 %v1782_v63, %v1390_v51  ;;  %v1783_v9 = vadd.f32 %v6906_v13, %v1321_v21  ;;  %v7078_v63 = vld [vmem:[%s6422_s30 + $0xfa] sm:$0xff] }
  0xa2   : > { %5564 = vmatmul.mubr.msk.f32.gmra.mrb[16].mxu0 %vm449_vm1, %v6997_v52  ;;  %5388 = vmatpush3.msk.msra.mxu1 %vm546_vm0, %v6667_v62  ;;  %8770 = vst [vmem:[#allocation12_spill] sm:$0xff] %v7035_v12  ;;  %v7051_v62 = vadd.f32 %v3140_v49, %v2450_v6  ;;  %v2842_v59 = vadd.f32 %v6929_v10, %v2380_v5  ;;  %vm3475_vm10 = vcmp.eq.f32.partialorder %v7040_v27, 0.0  ;;  %v2452_v10 = vld [vmem:[%s6725_s28 + $0x9a] sm:$0xff]  ;;  %v7091_v5 = vld [vmem:[%s6422_s30 + $0x10a] sm:$0xff] }
  0xa3   : > { %5342 = vmatprep.mubr.msk.f32.mxu1 %vm449_vm1, %v6465_v14  ;;  %5566 = vmatprep.mubr.msk.f32.mxu0 %vm449_vm1, %v7013_v4  ;;  %v3597_v14 = vsel %vm3469_vm6, 0.0, %v6057_v7  ;;  %v6059_v29 = vpop.eup %6058  ;;  %v7061_v7 = vld [vmem:[%s6725_s28 + $0xd8] sm:$0xff]  ;;  %v1023_v49 = vadd.f32 %v6990_v33, %v6870_v31  ;;  %v3507_v21 = vsel %vm3475_vm10, 1.0, %v7040_v27  ;;  %v7100_v4 = vld [vmem:[%s6725_s28 + $0xc9] sm:$0xff] }
  0xa4   : > { %5687 = vmatprep.subr.msk.mxu1 %vm546_vm0, %v6396_v1  ;;  %3642 = vperm.xlu1 %6010, %v3596_v54   ;;  %v1322_v1 = vadd.f32 %v1022_v56, %v7028_v25  ;;  %v3599_v13 = vsel %vm3471_vm7, 0.0, %v6059_v29  ;;  %vm3472_vm11 = vcmp.eq.f32.partialorder %v7051_v62, 0.0  ;;  %v3142_v31 = vadd.f32 %v2842_v59, %v2450_v6  ;;  %v7088_v54 = vld [vmem:[%s6725_s28 + $0xc1] sm:$0xff] }
  0xa5   : > { %3647 = vperm.xlu0 %6009, %v3597_v14   ;;  %5343 = vmatmul.mubr.msk.f32.gmra.mrb[2].mxu1 %vm449_vm1, %v6479_v16  ;;  %v3504_v16 = vsel %vm3472_vm11, 1.0, %v7051_v62  ;;  %v2382_v56 = vadd.f32 %v2082_v8, %v7054_v35  ;;  %v2083_v14 = vadd.f32 %v1783_v9, %v6940_v61  ;;  %v1323_v59 = vadd.f32 %v1023_v49, %v7061_v7  ;;  %v7112_v49 = vld [vmem:[%s6725_s28 + $0xe0] sm:$0xff] }
  0xa6   : > { %5567 = vmatmul.mubr.msk.f32.gmra.mrb[18].mxu0 %vm449_vm1, %v7035_v12  ;;  %5345 = vmatprep.mubr.msk.f32.mxu1 %vm449_vm1, %v6483_v18  ;;  %v6061_v18 = vpop.eup %6060  ;;  %6064 = vrcp.f32 %v3504_v16  ;;  %v1784_v29 = vadd.f32 %v1390_v51, %v1322_v1  ;;  %v7097_v12 = vadd.f32 %v3142_v31, %v2452_v10  ;;  %v7107_v51 = vld [vmem:[%s6725_s28 + $0xb2] sm:$0xff]  ;;  %v1024_v16 = vadd.f32 %v7028_v25, %v6968_v39  ;;  %v7126_v31 = vld [vmem:[%s6422_s30 + $0x122] sm:$0xff]  ;;  %v7345_v62 = vld [vmem:[%s6725_s28 + $0xfa] sm:$0xff] }
  0xa7   : > { %5569 = vmatprep.mubr.msk.f32.mxu0 %vm449_vm1, %v7045_v48  ;;  %v3598_v48 = vsel %vm3470_vm8, 0.0, %v6061_v18  ;;  %6066 = vrcp.f32 %v3507_v21  ;;  %v2844_v8 = vadd.f32 %v2450_v6, %v2382_v56  ;;  %v2383_v9 = vadd.f32 %v2083_v14, %v7088_v54  ;;  %v7134_v18 = vld [vmem:[%s6725_s28 + $0xd9] sm:$0xff] }
  0xa8   : > { %v2084_v1 = vadd.f32 %v1784_v29, %v7054_v35  ;;  %vm3474_vm12 = vcmp.eq.f32.partialorder %v7097_v12, 0.0  ;;  %3652 = vperm.xlu1 %6010, %v3598_v48   ;;  %v1025_v14 = vadd.f32 %v7061_v7, %v6990_v33  ;;  %v7142_v48 = vld [vmem:[%s6725_s28 + $0xc2] sm:$0xff]  ;;  %v8731_v33 = vmov 1.0  }
  0xa9   : > { %3657 = vperm.xlu0 %6009, %v3599_v13   ;;  %5346 = vmatmul.mubr.msk.f32.gmra.mrb[4].mxu1 %vm449_vm1, %v6493_v20  ;;  %v7119_v20 = vld [vmem:[%s6422_s30 + $0x112] sm:$0xff]  ;;  %v3144_v6 = vadd.f32 %v2844_v8, %v2452_v10  ;;  %v1785_v13 = vadd.f32 %v6940_v61, %v1323_v59  ;;  %v2845_v21 = vadd.f32 %v6976_v11, %v2383_v9  ;;  %v7156_v8 = vsel %vm3467_vm3, 0.0, %v8731_v33 }
  0xaa   : > { %5570 = vmatmul.mubr.msk.f32.gmra.mrb[20].mxu0 %vm449_vm1, %v7078_v63  ;;  %5348 = vmatprep.mubr.msk.f32.mxu1 %vm449_vm1, %v6497_v22  ;;  %v3506_v22 = vsel %vm3474_vm12, 1.0, %v7097_v12  ;;  %v2384_v56 = vadd.f32 %v2084_v1, %v7100_v4  ;;  %v1324_v59 = vadd.f32 %v1024_v16, %v7112_v49  ;;  %v7147_v11 = vld [vmem:[%s6725_s28 + $0xf0] sm:$0xff]  ;;  %v7161_v9 = vsel %vm3466_vm4, 0.0, %v8731_v33  ;;  %v7177_v16 = vld [vmem:[%s6725_s28 + $0xf8] sm:$0xff] }
  0xab   : > { %5572 = vmatprep.mubr.msk.f32.mxu0 %vm449_vm1, %v7091_v5  ;;  %v6063_v61 = vpop.eup %6062  ;;  %6068 = vrcp.f32 %v3506_v22  ;;  %v7139_v39 = vadd.f32 %v3144_v6, %v7107_v51  ;;  %v2085_v29 = vadd.f32 %v1785_v13, %v7088_v54  ;;  %v7180_v22 = vld [vmem:[%s6422_s30 + $0x13a] sm:$0xff]  ;;  %v7222_v47 = vsel %vm3469_vm6, 0.0, %v8731_v33 }
  0xac   : > { %v3601_v1 = vsel %vm3473_vm9, 0.0, %v6063_v61  ;;  %v2846_v45 = vadd.f32 %v2452_v10, %v2384_v56  ;;  %v1786_v13 = vadd.f32 %v7054_v35, %v1324_v59  ;;  %v7189_v61 = vld [vmem:[%s6725_s28 + $0xca] sm:$0xff]  ;;  %v1325_v10 = vadd.f32 %v1025_v14, %v7147_v11  ;;  %v7197_v59 = vld [vmem:[%s6725_s28 + $0xe1] sm:$0xff]  ;;  %8773 = vst [vmem:[#allocation15_spill] sm:$0xff] %v7222_v47 }
  0xad   : > { %5349 = vmatmul.mubr.msk.f32.gmra.mrb[6].mxu1 %vm449_vm1, %v6507_v24  ;;  %v3145_v24 = vadd.f32 %v2845_v21, %v7009_v40  ;;  %vm3476_vm13 = vcmp.eq.f32.partialorder %v7139_v39, 0.0  ;;  %v2385_v6 = vadd.f32 %v2085_v29, %v7134_v18  ;;  %3667 = vperm.xlu0 %6009, %v3601_v1   ;;  %v1026_v56 = vadd.f32 %v7112_v49, %v7028_v25 }
  0xae   : > { %5573 = vmatmul.mubr.msk.f32.gmra.mrb[22].mxu0 %vm449_vm1, %v7119_v20  ;;  %5351 = vmatprep.mubr.msk.f32.mxu1 %vm449_vm1, %v6511_v26  ;;  %v3508_v26 = vsel %vm3476_vm13, 1.0, %v7139_v39  ;;  %v3146_v35 = vadd.f32 %v2846_v45, %v7107_v51  ;;  %v2086_v1 = vadd.f32 %v1786_v13, %v7100_v4  ;;  %v7207_v25 = vsel %vm3468_vm5, 0.0, %v8731_v33  ;;  %v7246_v33 = vld [vmem:[%s6725_s28 + $0x108] sm:$0xff] }
  0xaf   : > { %5575 = vmatprep.mubr.msk.f32.mxu0 %vm449_vm1, %v7126_v31  ;;  %v7186_v21 = vadd.f32 %v3145_v24, %v7142_v48  ;;  %6070 = vrcp.f32 %v3508_v26  ;;  %v2847_v29 = vadd.f32 %v7009_v40, %v2385_v6  ;;  %v1787_v40 = vadd.f32 %v7088_v54, %v1325_v10  ;;  %v7236_v26 = vld [vmem:[%s6422_s30 + $0x152] sm:$0xff] }
  0xb0   : > { %v6065_v24 = vpop.eup %6064  ;;  %v1326_v14 = vadd.f32 %v1026_v56, %v7177_v16  ;;  %v7230_v13 = vadd.f32 %v3146_v35, %v7189_v61  ;;  %8774 = vst [vmem:[#allocation16_spill] sm:$0xff] %v7236_v26  ;;  %v2386_v56 = vadd.f32 %v2086_v1, %v7197_v59 }
  0xb1   : > { %5352 = vmatmul.mubr.msk.f32.gmra.mrb[8].mxu1 %vm449_vm1, %v6521_v28  ;;  %vm3477_vm14 = vcmp.eq.f32.partialorder %v7186_v21, 0.0  ;;  %v6067_v45 = vpop.eup %6066  ;;  %v7217_v28 = vld [vmem:[%s6422_s30 + $0x142] sm:$0xff]  ;;  %v3600_v54 = vsel %vm3472_vm11, 0.0, %v6065_v24  ;;  %v3147_v10 = vadd.f32 %v2847_v29, %v7142_v48  ;;  %v7243_v24 = vld [vmem:[%s6725_s28 + $0xf1] sm:$0xff]  ;;  %v2087_v35 = vadd.f32 %v1787_v40, %v7134_v18 }
  0xb2   : > { %5576 = vmatmul.mubr.msk.f32.gmra.mrb[24].mxu0 %vm449_vm1, %v7171_v3  ;;  %5354 = vmatprep.mubr.msk.f32.mxu1 %vm449_vm1, %v6525_v30  ;;  %8772 = vst [vmem:[#allocation14_spill] sm:$0xff] %v7217_v28  ;;  %v3509_v6 = vsel %vm3477_vm14, 1.0, %v7186_v21  ;;  %v7233_v30 = vld [vmem:[%s6725_s28 + $0xda] sm:$0xff]  ;;  %v3603_v55 = vsel %vm3475_vm10, 0.0, %v6067_v45  ;;  %vm3478_vm15 = vcmp.eq.f32.partialorder %v7230_v13, 0.0  ;;  %v1027_v45 = vadd.f32 %v7147_v11, %v7061_v7 }
  0xb3   : > { %5578 = vmatprep.mubr.msk.f32.mxu0 %vm449_vm1, %v7180_v22  ;;  %3662 = vperm.xlu1 %6010, %v3600_v54   ;;  %6072 = vrcp.f32 %v3509_v6  ;;  %v1788_v54 = vadd.f32 %v7100_v4, %v1326_v14  ;;  %v8775_v29 = vmov 1.0   ;;  %v3510_v4 = vsel %vm3478_vm15, 1.0, %v7230_v13  ;;  %v7280_v6 = vld [vmem:[%s6725_s28 + $0xe2] sm:$0xff] }
  0xb4   : > { %3677 = vperm.xlu0 %6009, %v3603_v55   ;;  %v7260_v1 = vsel %vm3470_vm8, 0.0, %v8775_v29  ;;  %v7266_v40 = vadd.f32 %v3147_v10, %v7233_v30  ;;  %v2848_v7 = vadd.f32 %v7107_v51, %v2386_v56  ;;  %6074 = vrcp.f32 %v3510_v4  ;;  %v7286_v56 = vld [vmem:[%s6725_s28 + $0x110] sm:$0xff] }
  0xb5   : > { %5355 = vmatmul.mubr.msk.f32.gmra.mrb[10].mxu1 %vm449_vm1, %v6535_v32  ;;  %8776 = vst [vmem:[#allocation17_spill] sm:$0xff] %v7260_v1  ;;  %v7270_v32 = vld [vmem:[%s6725_s28 + $0xf9] sm:$0xff]  ;;  %v6069_v14 = vpop.eup %6068  ;;  %v2387_v55 = vadd.f32 %v2087_v35, %v7243_v24  ;;  %v2088_v10 = vadd.f32 %v1788_v54, %v7197_v59  ;;  %v1327_v51 = vadd.f32 %v1027_v45, %v7246_v33  ;;  %v7300_v35 = vsel %vm3471_vm7, 0.0, %v8775_v29 }
  0xb6   : > { %5579 = vmatmul.mubr.msk.f32.gmra.mrb[26].mxu0 %vm449_vm1, %v7217_v28  ;;  %5357 = vmatprep.mubr.msk.f32.mxu1 %vm449_vm1, %v6539_v34  ;;  %v7289_v28 = vld [vmem:[%s6422_s30 + $0x16a] sm:$0xff]  ;;  %v3602_v34 = vsel %vm3474_vm12, 0.0, %v6069_v14  ;;  %vm3479_vm3 = vcmp.eq.f32.partialorder %v7266_v40, 0.0  ;;  %v3148_v4 = vadd.f32 %v2848_v7, %v7189_v61  ;;  %8778 = vst [vmem:[#allocation19_spill] sm:$0xff] %v7300_v35 }
  0xb7   : > { %5581 = vmatprep.mubr.msk.f32.mxu0 %vm449_vm1, %v7236_v26  ;;  %8777 = vst [vmem:[#allocation18_spill] sm:$0xff] %v7289_v28  ;;  %v1028_v26 = vadd.f32 %v7177_v16, %v7112_v49  ;;  %3672 = vperm.xlu1 %6010, %v3602_v34   ;;  %v3511_v54 = vsel %vm3479_vm3, 1.0, %v7266_v40  ;;  %v2849_v45 = vadd.f32 %v7142_v48, %v2387_v55  ;;  %v7315_v49 = vld [vmem:[%s6725_s28 + $0xf2] sm:$0xff]  ;;  %v6128_v35 = vld [vmem:[%s6422_s30 + $0x188] sm:$0xff] }
  0xb8   : > { %v2388_v14 = vadd.f32 %v2088_v10, %v7270_v32  ;;  %6076 = vrcp.f32 %v3511_v54  ;;  %v7312_v41 = vadd.f32 %v3148_v4, %v7280_v6  ;;  %v1789_v7 = vadd.f32 %v7134_v18, %v1327_v51  ;;  %v7337_v51 = vld [vmem:[%s6725_s28 + $0x120] sm:$0xff] }
  0xb9   : > { %5358 = vmatmul.mubr.msk.f32.gmra.mrb[12].mxu1 %vm449_vm1, %v6549_v36  ;;  %v1328_v48 = vadd.f32 %v1028_v26, %v7286_v56  ;;  %v6071_v55 = vpop.eup %6070  ;;  %v7324_v36 = vld [vmem:[%s6422_s30 + $0x172] sm:$0xff]  ;;  %v7329_v10 = vsel %vm3472_vm11, 0.0, %v8775_v29  ;;  %v3149_v34 = vadd.f32 %v2849_v45, %v7233_v30  ;;  %v7334_v26 = vld [vmem:[%s6725_s28 + $0x109] sm:$0xff]  ;;  %v7352_v45 = vsel %vm3473_vm9, 0.0, %v8775_v29 }
  0xba   : > { %5582 = vmatmul.mubr.msk.f32.gmra.mrb[28].mxu0 %vm449_vm1, %v7277_v19  ;;  %5360 = vmatprep.mubr.msk.f32.mxu1 %vm449_vm1, %v6553_v38  ;;  %8779 = vst [vmem:[#allocation20_spill] sm:$0xff] %v7324_v36  ;;  %8780 = vst [vmem:[#allocation21_spill] sm:$0xff] %v7329_v10  ;;  %v2850_v18 = vadd.f32 %v7189_v61, %v2388_v14  ;;  %v1029_v38 = vadd.f32 %v7246_v33, %v7147_v11  ;;  %v3604_v4 = vsel %vm3476_vm13, 0.0, %v6071_v55 }
  0xbb   : > { %5584 = vmatprep.mubr.msk.f32.mxu0 %vm449_vm1, %v7289_v28  ;;  %vm3480_vm4 = vcmp.eq.f32.partialorder %v7312_v41, 0.0  ;;  %v2089_v54 = vadd.f32 %v1789_v7, %v7243_v24  ;;  %v1790_v61 = vadd.f32 %v7197_v59, %v1328_v48  ;;  %8781 = vst [vmem:[#allocation22_spill] sm:$0xff] %v7352_v45  ;;  %3682 = vperm.xlu1 %6010, %v3604_v4   ;;  %v7362_v7 = vld [vmem:[%s6725_s28 + $0x111] sm:$0xff]  ;;  %v6114_v59 = vld [vmem:[%s6422_s30 + $0xe0] sm:$0xff] }
  0xbc   : > { %v3512_v11 = vsel %vm3480_vm4, 1.0, %v7312_v41  ;;  %v7358_v14 = vadd.f32 %v3149_v34, %v7315_v49  ;;  %v3150_v55 = vadd.f32 %v2850_v18, %v7280_v6  ;;  %v1329_v4 = vadd.f32 %v1029_v38, %v7337_v51  ;;  %v7372_v34 = vld [vmem:[%s6725_s28 + $0x128] sm:$0xff]  ;;  %v6115_v18 = vld [vmem:[%s6422_s30 + $0xf0] sm:$0xff] }
  0xbd   : > { %v6073_v28 = vpop.eup %6072  ;;  %5361 = vmatmul.mubr.msk.f32.gmra.mrb[14].mxu1 %vm449_vm1, %v6114_v59  ;;  %6078 = vrcp.f32 %v3512_v11  ;;  %v2389_v58 = vadd.f32 %v2089_v54, %v7334_v26  ;;  %v2090_v48 = vadd.f32 %v1790_v61, %v7270_v32  ;;  %v1030_v38 = vadd.f32 %v7286_v56, %v7177_v16 }
  0xbe   : > { %5585 = vmatmul.mubr.msk.f32.gmra.mrb[30].mxu0 %vm449_vm1, %v7324_v36  ;;  %5363 = vmatprep.mubr.msk.f32.mxu1 %vm449_vm1, %v6115_v18  ;;  %v3605_v59 = vsel %vm3477_vm14, 0.0, %v6073_v28  ;;  %vm3481_vm5 = vcmp.eq.f32.partialorder %v7358_v14, 0.0  ;;  %v7382_v54 = vadd.f32 %v3150_v55, %v7345_v62  ;;  %v1791_v28 = vadd.f32 %v7243_v24, %v1329_v4  ;;  %v6075_v18 = vpop.eup %6074  ;;  %v7394_v55 = vld [vmem:[%s6725_s28 + $0x10a] sm:$0xff]  ;;  %v7418_v4 = vld [vmem:[%s6725_s28 + $0x121] sm:$0xff] }
  0xbf   : > { %5589 = vmatprep.mubr.msk.f32.mxu0 %vm449_vm1, %v6749_v37  ;;  %3687 = vperm.xlu0 %6009, %v3605_v59   ;;  %v3513_v61 = vsel %vm3481_vm5, 1.0, %v7358_v14  ;;  %v2851_v11 = vadd.f32 %v7233_v30, %v2389_v58  ;;  %v2390_v37 = vadd.f32 %v2090_v48, %v7362_v7  ;;  %v1330_v16 = vadd.f32 %v1030_v38, %v7372_v34  ;;  %v7398_v59 = vld [vmem:[%s6725_s28 + $0x138] sm:$0xff]  ;;  %v7522_v38 = vld [vmem:[%s6725_s28 + $0x12a] sm:$0xff] }
  0xc0   : > { %6080 = vrcp.f32 %v3513_v61  ;;  %vm3482_vm6 = vcmp.eq.f32.partialorder %v7382_v54, 0.0  ;;  %v1031_v36 = vadd.f32 %v7337_v51, %v7246_v33  ;;  %v6116_v30 = vld [vmem:[%s6422_s30 + $0xf8] sm:$0xff]  ;;  %v3606_v24 = vsel %vm3478_vm15, 0.0, %v6075_v18 }
  0xc1   : > { %5364 = vmatmul.mubr.msk.f32.gmra.mrb[16].mxu1 %vm449_vm1, %v6116_v30  ;;  %v3514_v58 = vsel %vm3482_vm6, 1.0, %v7382_v54  ;;  %v7414_v48 = vsel %vm3482_vm6, 0.0, %v8775_v29  ;;  %v3151_v33 = vadd.f32 %v2851_v11, %v7315_v49  ;;  %v2852_v61 = vadd.f32 %v7280_v6, %v2390_v37  ;;  %3692 = vperm.xlu1 %6010, %v3606_v24  }
  0xc2   : > { %5590 = vmatmul.mubr.msk.f32.vlgmr.msra.gmra.mrb[0].mxu0 %vm449_vm1, %v6767_v60  ;;  %v6117_v60 = vld [vmem:[%s6422_s30 + $0x108] sm:$0xff]  ;;  %6082 = vrcp.f32 %v3514_v58  ;;  %v2091_v18 = vadd.f32 %v1791_v28, %v7334_v26  ;;  %v6077_v30 = vpop.eup %6076  ;;  %v7439_v58 = vld [vmem:[%s6725_s28 + $0x112] sm:$0xff]  ;;  %v1792_v6 = vadd.f32 %v7270_v32, %v1330_v16  ;;  %v1331_v37 = vadd.f32 %v1031_v36, %v7398_v59  ;;  %v7460_v16 = vld [vmem:[%s6725_s28 + $0x140] sm:$0xff] }
  0xc3   : > { %5638 = vmatpush3.msk.msra.mxu0 %vm546_vm0, %v6754_v53  ;;  %5366 = vmatprep.mubr.msk.f32.mxu1 %vm449_vm1, %v6117_v60  ;;  %v7433_v53 = vsel %vm3474_vm12, 0.0, %v8775_v29  ;;  %v7436_v11 = vadd.f32 %v3151_v33, %v7394_v55  ;;  %v3152_v28 = vadd.f32 %v2852_v61, %v7345_v62  ;;  %v7448_v60 = vld [vmem:[%s6725_s28 + $0x129] sm:$0xff]  ;;  %v1032_v24 = vadd.f32 %v7372_v34, %v7286_v56  ;;  %v6119_v56 = vld [vmem:[%s6422_s30 + $0x120] sm:$0xff] }
  0xc4   : > { %5592 = vmatprep.mubr.msk.f32.mxu0 %vm449_vm1, %v6772_v2  ;;  %8782 = vst [vmem:[#allocation23_spill] sm:$0xff] %v7433_v53  ;;  %v3607_v2 = vsel %vm3479_vm3, 0.0, %v6077_v30  ;;  %v2391_v12 = vadd.f32 %v2091_v18, %v7418_v4  ;;  %v6118_v33 = vld [vmem:[%s6422_s30 + $0x110] sm:$0xff]  ;;  %v2092_v32 = vadd.f32 %v1792_v6, %v7362_v7  ;;  %v1793_v36 = vadd.f32 %v7334_v26, %v1331_v37  ;;  %v7481_v30 = vld [vmem:[%s6725_s28 + $0x139] sm:$0xff]  ;;  %v7486_v37 = vld [vmem:[%s6725_s28 + $0x122] sm:$0xff] }
  0xc5   : > { %5367 = vmatmul.mubr.msk.f32.gmra.mrb[18].mxu1 %vm449_vm1, %v6118_v33  ;;  %vm3483_vm7 = vcmp.eq.f32.partialorder %v7436_v11, 0.0  ;;  %v1033_v61 = vadd.f32 %v7398_v59, %v7337_v51  ;;  %v7477_v18 = vadd.f32 %v3152_v28, %v7439_v58  ;;  %3697 = vperm.xlu0 %6009, %v3607_v2   ;;  %v1332_v2 = vadd.f32 %v1032_v24, %v7460_v16 }
  0xc6   : > { %5593 = vmatmul.mubr.msk.f32.gmra.mrb[2].mxu0 %vm449_vm1, %v6790_v15  ;;  %5369 = vmatprep.mubr.msk.f32.mxu1 %vm449_vm1, %v6119_v56  ;;  %v3515_v15 = vsel %vm3483_vm7, 1.0, %v7436_v11  ;;  %v7474_v26 = vsel %vm3483_vm7, 0.0, %v8775_v29  ;;  %v2853_v51 = vadd.f32 %v7315_v49, %v2391_v12  ;;  %v2392_v33 = vadd.f32 %v2092_v32, %v7448_v60  ;;  %v7496_v12 = vld [vmem:[%s6725_s28 + $0x150] sm:$0xff] }
  0xc7   : > { %5595 = vmatprep.mubr.msk.f32.mxu0 %vm449_vm1, %v6793_v17  ;;  %v6079_v6 = vpop.eup %6078  ;;  %6084 = vrcp.f32 %v3515_v15  ;;  %v2093_v56 = vadd.f32 %v1793_v36, %v7418_v4  ;;  %vm3484_vm8 = vcmp.eq.f32.partialorder %v7477_v18, 0.0  ;;  %v6120_v15 = vld [vmem:[%s6422_s30 + $0x128] sm:$0xff]  ;;  %v6121_v17 = vld [vmem:[%s6422_s30 + $0x138] sm:$0xff] }
  0xc8   : > { %v3608_v28 = vsel %vm3480_vm4, 0.0, %v6079_v6  ;;  %v3153_v49 = vadd.f32 %v2853_v51, %v7394_v55  ;;  %v3516_v32 = vsel %vm3484_vm8, 1.0, %v7477_v18  ;;  %v7508_v36 = vsel %vm3484_vm8, 0.0, %v8775_v29 }
  0xc9   : > { %5370 = vmatmul.mubr.msk.f32.gmra.mrb[20].mxu1 %vm449_vm1, %v6120_v15  ;;  %v2854_v24 = vadd.f32 %v7345_v62, %v2392_v33  ;;  %v2393_v51 = vadd.f32 %v2093_v56, %v7481_v30  ;;  %6086 = vrcp.f32 %v3516_v32  ;;  %v1794_v62 = vadd.f32 %v7362_v7, %v1332_v2  ;;  %3702 = vperm.xlu1 %6010, %v3608_v28   ;;  %v7530_v56 = vld [vmem:[%s6725_s28 + $0x141] sm:$0xff]  ;;  %v7536_v28 = vld [vmem:[%s6725_s28 + $0x158] sm:$0xff] }
  0xca   : > { %5596 = vmatmul.mubr.msk.f32.gmra.mrb[4].mxu0 %vm449_vm1, %v6815_v42  ;;  %v6081_v6 = vpop.eup %6080  ;;  %5372 = vmatprep.mubr.msk.f32.mxu1 %vm449_vm1, %v6121_v17  ;;  %v7519_v15 = vadd.f32 %v3153_v49, %v7486_v37  ;;  %v1333_v32 = vadd.f32 %v1033_v61, %v7496_v12  ;;  %v1034_v2 = vadd.f32 %v7460_v16, %v7372_v34 }
  0xcb   : > { %5598 = vmatprep.mubr.msk.f32.mxu0 %vm449_vm1, %v6818_v57  ;;  %v3609_v17 = vsel %vm3481_vm5, 0.0, %v6081_v6  ;;  %v3154_v57 = vadd.f32 %v2854_v24, %v7439_v58  ;;  %v2855_v33 = vadd.f32 %v7394_v55, %v2393_v51  ;;  %v2094_v7 = vadd.f32 %v1794_v62, %v7448_v60  ;;  %v7541_v24 = vld [vmem:[%s6725_s28 + $0x168] sm:$0xff]  ;;  %v6122_v51 = vld [vmem:[%s6422_s30 + $0x140] sm:$0xff] }
  0xcc   : > { %v6083_v49 = vpop.eup %6082  ;;  %3707 = vperm.xlu0 %6009, %v3609_v17   ;;  %vm3485_vm9 = vcmp.eq.f32.partialorder %v7519_v15, 0.0  ;;  %v1035_v55 = vadd.f32 %v7496_v12, %v7398_v59  ;;  %v7563_v62 = vld [vmem:[%s6725_s28 + $0x13a] sm:$0xff]  ;;  %v6123_v17 = vld [vmem:[%s6422_s30 + $0x150] sm:$0xff] }
  0xcd   : > { %5373 = vmatmul.mubr.msk.f32.gmra.mrb[22].mxu1 %vm449_vm1, %v6122_v51  ;;  %v3610_v61 = vsel %vm3482_vm6, 0.0, %v6083_v49  ;;  %v3517_v6 = vsel %vm3485_vm9, 1.0, %v7519_v15  ;;  %v7557_v34 = vsel %vm3485_vm9, 0.0, %v8775_v29  ;;  %v7560_v59 = vadd.f32 %v3154_v57, %v7522_v38 }
  0xce   : > { %5599 = vmatmul.mubr.msk.f32.gmra.mrb[6].mxu0 %vm449_vm1, %v6850_v44  ;;  %5375 = vmatprep.mubr.msk.f32.mxu1 %vm449_vm1, %v6123_v17  ;;  %6088 = vrcp.f32 %v3517_v6  ;;  %v3155_v54 = vadd.f32 %v2855_v33, %v7486_v37  ;;  %v2394_v49 = vadd.f32 %v2094_v7, %v7530_v56  ;;  %v1795_v57 = vadd.f32 %v7418_v4, %v1333_v32  ;;  %v7590_v4 = vld [vmem:[%s6725_s28 + $0x151] sm:$0xff]  ;;  %v7599_v17 = vld [vmem:[%s6725_s28 + $0x142] sm:$0xff] }
  0xcf   : > { %5601 = vmatprep.mubr.msk.f32.mxu0 %vm449_vm1, %v6854_v0  ;;  %3712 = vperm.xlu1 %6010, %v3610_v61   ;;  %vm3486_vm11 = vcmp.eq.f32.partialorder %v7560_v59, 0.0  ;;  %v1334_v51 = vadd.f32 %v1034_v2, %v7536_v28  ;;  %v1335_v0 = vadd.f32 %v1035_v55, %v7541_v24  ;;  %v6124_v2 = vld [vmem:[%s6422_s30 + $0x158] sm:$0xff]  ;;  %v8784_v44 = vld [vmem:[#allocation9_spill] sm:$0xff] }
  0xd0   : > { %v3518_v6 = vsel %vm3486_vm11, 1.0, %v7560_v59  ;;  %v7583_v33 = vsel %vm3486_vm11, 0.0, %v8775_v29  ;;  %v7586_v7 = vadd.f32 %v3155_v54, %v7563_v62  ;;  %v2856_v61 = vadd.f32 %v7439_v58, %v2394_v49  ;;  %v6125_v49 = vld [vmem:[%s6422_s30 + $0x168] sm:$0xff]  ;;  %v1408_v59 = vld [vmem:[%s6725_s28 + $0x171] sm:$0xff] }
  0xd1   : > { %8783 = vst [vmem:[#allocation24_spill] sm:$0xff] %v7583_v33  ;;  %v6085_v32 = vpop.eup %6084  ;;  %5376 = vmatmul.mubr.msk.f32.gmra.mrb[24].mxu1 %vm449_vm1, %v6124_v2  ;;  %6090 = vrcp.f32 %v3518_v6  ;;  %v2095_v54 = vadd.f32 %v1795_v57, %v7481_v30  ;;  %v1796_v58 = vadd.f32 %v7448_v60, %v1334_v51  ;;  %v7612_v2 = vld [vmem:[%s6725_s28 + $0x159] sm:$0xff]  ;;  %v1797_v57 = vadd.f32 %v7481_v30, %v1335_v0  ;;  %v7643_v30 = vld [vmem:[%s6725_s28 + $0x170] sm:$0xff] }
  0xd2   : > { %5602 = vmatmul.mubr.msk.f32.gmra.mrb[8].mxu0 %vm449_vm1, %v6884_v46  ;;  %5378 = vmatprep.mubr.msk.f32.mxu1 %vm449_vm1, %v6125_v49  ;;  %v3611_v46 = vsel %vm3483_vm7, 0.0, %v6085_v32  ;;  %vm3487_vm12 = vcmp.eq.f32.partialorder %v7586_v7, 0.0  ;;  %v3156_v6 = vadd.f32 %v2856_v61, %v7522_v38  ;;  %v7626_v61 = vld [vmem:[%s6725_s28 + $0x169] sm:$0xff] }
  0xd3   : > { %5604 = vmatprep.mubr.msk.f32.mxu0 %vm449_vm1, %v8784_v44  ;;  %3717 = vperm.xlu0 %6009, %v3611_v46   ;;  %v3519_v60 = vsel %vm3487_vm12, 1.0, %v7586_v7  ;;  %v7621_v11 = vsel %vm3487_vm12, 0.0, %v8775_v29  ;;  %v2395_v44 = vadd.f32 %v2095_v54, %v7590_v4  ;;  %v2096_v51 = vadd.f32 %v1796_v58, %v7530_v56  ;;  %v6087_v32 = vpop.eup %6086  ;;  %v6126_v46 = vld [vmem:[%s6422_s30 + $0x170] sm:$0xff] }
  0xd4   : > { %8785 = vst [vmem:[#allocation9_spill] sm:$0xff] %v7621_v11  ;;  %6092 = vrcp.f32 %v3519_v60  ;;  %v7631_v0 = vadd.f32 %v3156_v6, %v7599_v17  ;;  %v2097_v49 = vadd.f32 %v1797_v57, %v7590_v4  ;;  %v3612_v54 = vsel %vm3484_vm8, 0.0, %v6087_v32  ;;  %v6127_v57 = vld [vmem:[%s6422_s30 + $0x180] sm:$0xff] }
  0xd5   : > { %5379 = vmatmul.mubr.msk.f32.gmra.mrb[26].mxu1 %vm449_vm1, %v6126_v46  ;;  %v2857_v58 = vadd.f32 %v7486_v37, %v2395_v44  ;;  %v2396_v60 = vadd.f32 %v2096_v51, %v7612_v2  ;;  %v1036_v6 = vadd.f32 %v7536_v28, %v7460_v16  ;;  %v410_v37 = vld [vmem:[%s6725_s28 + $0x180] sm:$0xff]  ;;  %v1037_v44 = vadd.f32 %v7541_v24, %v7496_v12  ;;  %v376_v51 = vld [vmem:[%s6422_s30 + $0x198] sm:$0xff]  ;;  %v7673_v12 = vld [vmem:[%s6725_s28 + $0x188] sm:$0xff] }
  0xd6   : > { %5605 = vmatmul.mubr.msk.f32.gmra.mrb[10].mxu0 %vm449_vm1, %v6920_v23  ;;  %5381 = vmatprep.mubr.msk.f32.mxu1 %vm449_vm1, %v6127_v57  ;;  %vm3488_vm6 = vcmp.eq.f32.partialorder %v7631_v0, 0.0  ;;  %v7653_v23 = vld [vmem:[%s6725_s28 + $0x152] sm:$0xff]  ;;  %v2397_v18 = vadd.f32 %v2097_v49, %v7626_v61  ;;  %v1038_v16 = vadd.f32 %v7643_v30, %v7536_v28 }
  0xd7   : > { %5607 = vmatprep.mubr.msk.f32.mxu0 %vm449_vm1, %v6934_v43  ;;  %3722 = vperm.xlu1 %6010, %v3612_v54   ;;  %v3520_v43 = vsel %vm3488_vm6, 1.0, %v7631_v0  ;;  %v7668_v32 = vsel %vm3488_vm6, 0.0, %v8775_v29  ;;  %v3157_v49 = vadd.f32 %v2857_v58, %v7563_v62  ;;  %v2858_v46 = vadd.f32 %v7522_v38, %v2396_v60  ;;  %v7678_v54 = vld [vmem:[%s6725_s28 + $0x15a] sm:$0xff] }
  0xd8   : > { %8786 = vst [vmem:[#allocation25_spill] sm:$0xff] %v7668_v32  ;;  %v6089_v57 = vpop.eup %6088  ;;  %6094 = vrcp.f32 %v3520_v43  ;;  %v2859_v55 = vadd.f32 %v7563_v62, %v2397_v18  ;;  %v1336_v42 = vadd.f32 %v1036_v6, %v7643_v30  ;;  %v7693_v43 = vld [vmem:[%s6725_s28 + $0x16a] sm:$0xff]  ;;  %v1337_v62 = vadd.f32 %v1037_v44, %v410_v37  ;;  %v8787_v6 = vld [vmem:[#allocation10_spill] sm:$0xff]  ;;  %v1341_v44 = vld [vmem:[%s6422_s30 + $0x1] sm:$0xff] }
  0xd9   : > { %5382 = vmatmul.mubr.msk.f32.gmra.mrb[28].mxu1 %vm449_vm1, %v6128_v35  ;;  %v3613_v38 = vsel %vm3485_vm9, 0.0, %v6089_v57  ;;  %v7689_v58 = vadd.f32 %v3157_v49, %v7653_v23  ;;  %v3158_v60 = vadd.f32 %v2858_v46, %v7599_v17  ;;  %v377_v35 = vld [vmem:[%s6422_s30 + $0x1a0] sm:$0xff]  ;;  %v1338_v49 = vadd.f32 %v1038_v16, %v7673_v12 }
  0xda   : > { %5608 = vmatmul.mubr.msk.f32.gmra.mrb[12].mxu0 %vm449_vm1, %v6963_v50  ;;  %5384 = vmatprep.mubr.msk.f32.mxu1 %vm449_vm1, %v376_v51  ;;  %v7702_v50 = vsel %vm3475_vm10, 0.0, %v8775_v29  ;;  %v3159_v15 = vadd.f32 %v2859_v55, %v7653_v23  ;;  %v1798_v18 = vadd.f32 %v7530_v56, %v1336_v42  ;;  %v1799_v27 = vadd.f32 %v7590_v4, %v1337_v62  ;;  %v1342_v62 = vld [vmem:[%s6422_s30 + $0x9] sm:$0xff] }
  0xdb   : > { %5610 = vmatprep.mubr.msk.f32.mxu0 %vm449_vm1, %v8787_v6  ;;  %8788 = vst [vmem:[#allocation10_spill] sm:$0xff] %v7702_v50  ;;  %v6091_v46 = vpop.eup %6090  ;;  %3727 = vperm.xlu0 %6009, %v3613_v38   ;;  %vm3489_vm7 = vcmp.eq.f32.partialorder %v7689_v58, 0.0  ;;  %v7710_v51 = vadd.f32 %v3158_v60, %v7678_v54  ;;  %v1039_v57 = vadd.f32 %v410_v37, %v7541_v24  ;;  %v1409_v37 = vld [vmem:[%s6725_s28 + $0x181] sm:$0xff] }
  0xdc   : > { %v3614_v42 = vsel %vm3486_vm11, 0.0, %v6091_v46  ;;  %v3521_v56 = vsel %vm3489_vm7, 1.0, %v7689_v58  ;;  %v7722_v55 = vsel %vm3489_vm7, 0.0, %v8775_v29  ;;  %v7725_v16 = vadd.f32 %v3159_v15, %v7693_v43  ;;  %v8790_v60 = vld [vmem:[#allocation11_spill] sm:$0xff] }
  0xdd   : > { %8789 = vst [vmem:[#allocation26_spill] sm:$0xff] %v7722_v55  ;;  %5385 = vmatmul.mubr.msk.f32.gmra.mrb[30].mxu1 %vm449_vm1, %v377_v35  ;;  %6096 = vrcp.f32 %v3521_v56  ;;  %vm3490_vm10 = vcmp.eq.f32.partialorder %v7710_v51, 0.0  ;;  %v2098_v4 = vadd.f32 %v1798_v18, %v7612_v2  ;;  %v2099_v35 = vadd.f32 %v1799_v27, %v7626_v61  ;;  %v412_v15 = vld [vmem:[%s6725_s28 + $0x198] sm:$0xff]  ;;  %3732 = vperm.xlu1 %6010, %v3614_v42   ;;  %v8793_v56 = vld [vmem:[#allocation12_spill] sm:$0xff] }
  0xde   : > { %5611 = vmatmul.mubr.msk.f32.gmra.mrb[14].mxu0 %vm449_vm1, %v6997_v52  ;;  %v6093_v38 = vpop.eup %6092  ;;  %5389 = vmatprep.mubr.msk.f32.mxu1 %vm449_vm1, %v1341_v44  ;;  %v3522_v52 = vsel %vm3490_vm10, 1.0, %v7710_v51  ;;  %v7746_v6 = vsel %vm3490_vm10, 0.0, %v8775_v29  ;;  %vm3491_vm8 = vcmp.eq.f32.partialorder %v7725_v16, 0.0  ;;  %v2473_v51 = vld [vmem:[%s6725_s28 + $0x19a] sm:$0xff] }
  0xdf   : > { %5613 = vmatprep.mubr.msk.f32.mxu0 %vm449_vm1, %v8790_v60  ;;  %8791 = vst [vmem:[#allocation11_spill] sm:$0xff] %v7746_v6  ;;  %v3615_v18 = vsel %vm3487_vm12, 0.0, %v6093_v38  ;;  %6098 = vrcp.f32 %v3522_v52  ;;  %v3523_v44 = vsel %vm3491_vm8, 1.0, %v7725_v16  ;;  %v7761_v27 = vsel %vm3491_vm8, 0.0, %v8775_v29  ;;  %v1410_v38 = vld [vmem:[%s6725_s28 + $0x189] sm:$0xff] }
  0xe0   : > { %3737 = vperm.xlu0 %6009, %v3615_v18   ;;  %6100 = vrcp.f32 %v3523_v44  ;;  %8792 = vst [vmem:[#allocation27_spill] sm:$0xff] %v7761_v27  ;;  %v2398_v42 = vadd.f32 %v2098_v4, %v1408_v59  ;;  %v2399_v7 = vadd.f32 %v2099_v35, %v1409_v37  ;;  %v1800_v60 = vadd.f32 %v7612_v2, %v1338_v49  ;;  %v413_v18 = vld [vmem:[%s6725_s28 + $0x1a0] sm:$0xff]  ;;  %v6129_v4 = vld [vmem:[%s8720_s2 + $0x10] sm:$0xf] }
  0xe1   : > { %5390 = vmatmul.mubr.msk.f32.vlgmr.msra.gmra.mrb[0].mxu1 %vm449_vm1, %v1342_v62  ;;  %v1339_v52 = vadd.f32 %v1039_v57, %v412_v15  ;;  %v6130_v62 = vld [vmem:[%s6422_s30 + $0x19] sm:$0xff]  ;;  %v1040_v2 = vadd.f32 %v7673_v12, %v7643_v30  ;;  %v8794_v49 = vld [vmem:[#allocation13_spill] sm:$0xff]  ;;  %v6131_v12 = vld [vmem:[%s6422_s30 + $0x21] sm:$0xff] }
  0xe2   : > { %5614 = vmatmul.mubr.msk.f32.gmra.mrb[16].mxu0 %vm449_vm1, %v8793_v56  ;;  %v6095_v44 = vpop.eup %6094  ;;  %5688 = vmatpush3.msk.msra.mxu1 %vm546_vm0, %v6129_v4  ;;  %v2860_v35 = vadd.f32 %v7599_v17, %v2398_v42  ;;  %v2861_v56 = vadd.f32 %v7653_v23, %v2399_v7  ;;  %v7786_v15 = vld [vmem:[%s6725_s28 + $0x172] sm:$0xff]  ;;  %v2471_v4 = vld [vmem:[%s6725_s28 + $0x182] sm:$0xff] }
  0xe3   : > { %5392 = vmatprep.mubr.msk.f32.mxu1 %vm449_vm1, %v6130_v62  ;;  %5616 = vmatprep.mubr.msk.f32.mxu0 %vm449_vm1, %v8794_v49  ;;  %v3616_v57 = vsel %vm3488_vm6, 0.0, %v6095_v44  ;;  %v2100_v62 = vadd.f32 %v1800_v60, %v1408_v59  ;;  %v1801_v46 = vadd.f32 %v7626_v61, %v1339_v52  ;;  %v1411_v42 = vld [vmem:[%s6725_s28 + $0x199] sm:$0xff]  ;;  %v1340_v30 = vadd.f32 %v1040_v2, %v413_v18  ;;  %v6132_v44 = vld [vmem:[%s6422_s30 + $0x31] sm:$0xff]  ;;  %v1412_v2 = vld [vmem:[%s6725_s28 + $0x1a1] sm:$0xff] }
  0xe4   : > { %3742 = vperm.xlu1 %6010, %v3616_v57   ;;  %v3160_v17 = vadd.f32 %v2860_v35, %v7678_v54  ;;  %v3161_v23 = vadd.f32 %v2861_v56, %v7693_v43  ;;  %v6133_v56 = vld [vmem:[%s6422_s30 + $0x39] sm:$0xff]  ;;  %v6134_v49 = vld [vmem:[%s6422_s30 + $0x49] sm:$0xff] }
  0xe5   : > { %5393 = vmatmul.mubr.msk.f32.gmra.mrb[2].mxu1 %vm449_vm1, %v6131_v12  ;;  %v2400_v0 = vadd.f32 %v2100_v62, %v1410_v38  ;;  %v2101_v7 = vadd.f32 %v1801_v46, %v1409_v37  ;;  %v1802_v52 = vadd.f32 %v1408_v59, %v1340_v30  ;;  %v7814_v37 = vsel %vm3477_vm14, 0.0, %v8775_v29 }
  0xe6   : > { %5617 = vmatmul.mubr.msk.f32.gmra.mrb[18].mxu0 %vm449_vm1, %v7078_v63  ;;  %5395 = vmatprep.mubr.msk.f32.mxu1 %vm449_vm1, %v6132_v44  ;;  %v7802_v61 = vadd.f32 %v3160_v17, %v7786_v15  ;;  %v7804_v60 = vadd.f32 %v3161_v23, %v2471_v4  ;;  %v7809_v63 = vsel %vm3476_vm13, 0.0, %v8775_v29  ;;  %8796 = vst [vmem:[#allocation13_spill] sm:$0xff] %v7814_v37  ;;  %v2472_v23 = vld [vmem:[%s6725_s28 + $0x18a] sm:$0xff] }
  0xe7   : > { %5619 = vmatprep.mubr.msk.f32.mxu0 %vm449_vm1, %v7091_v5  ;;  %v6097_v18 = vpop.eup %6096  ;;  %8795 = vst [vmem:[#allocation12_spill] sm:$0xff] %v7809_v63  ;;  %v2862_v5 = vadd.f32 %v7678_v54, %v2400_v0  ;;  %v2401_v46 = vadd.f32 %v2101_v7, %v1411_v42  ;;  %v2102_v39 = vadd.f32 %v1802_v52, %v1410_v38  ;;  %v6135_v0 = vld [vmem:[%s6422_s30 + $0x51] sm:$0xff]  ;;  %v6136_v52 = vld [vmem:[%s6422_s30 + $0x61] sm:$0xff] }
  0xe8   : > { %v3617_v35 = vsel %vm3489_vm7, 0.0, %v6097_v18  ;;  %vm3492_vm0 = vcmp.eq.f32.partialorder %v7802_v61, 0.0  ;;  %vm3493_vm9 = vcmp.eq.f32.partialorder %v7804_v60, 0.0 }
  0xe9   : > { %v6099_v59 = vpop.eup %6098  ;;  %5396 = vmatmul.mubr.msk.f32.gmra.mrb[4].mxu1 %vm449_vm1, %v6133_v56  ;;  %v3524_v21 = vsel %vm3492_vm0, 1.0, %v7802_v61  ;;  %v7831_v54 = vsel %vm3492_vm0, 0.0, %v8775_v29  ;;  %v3525_v58 = vsel %vm3493_vm9, 1.0, %v7804_v60  ;;  %v7839_v38 = vsel %vm3493_vm9, 0.0, %v8775_v29  ;;  %3747 = vperm.xlu0 %6009, %v3617_v35   ;;  %v8803_v56 = vld [vmem:[#allocation16_spill] sm:$0xff]  ;;  %v6176_v61 = vld [vmem:[%s6422_s30 + $0xf2] sm:$0xff] }
  0xea   : > { %5620 = vmatmul.mubr.msk.f32.gmra.mrb[20].mxu0 %vm449_vm1, %v7119_v20  ;;  %8797 = vst [vmem:[#allocation28_spill] sm:$0xff] %v7831_v54  ;;  %8798 = vst [vmem:[#allocation29_spill] sm:$0xff] %v7839_v38  ;;  %v6101_v20 = vpop.eup %6100  ;;  %5398 = vmatprep.mubr.msk.f32.mxu1 %vm449_vm1, %v6134_v49  ;;  %v3618_v57 = vsel %vm3490_vm10, 0.0, %v6099_v59  ;;  %6102 = vrcp.f32 %v3524_v21  ;;  %v3162_v42 = vadd.f32 %v2862_v5, %v7786_v15  ;;  %v2474_v5 = vld [vmem:[%s6725_s28 + $0x1a2] sm:$0xff]  ;;  %v6138_v59 = vld [vmem:[%s6422_s30 + $0x79] sm:$0xff] }
  0xeb   : > { %5622 = vmatprep.mubr.msk.f32.mxu0 %vm449_vm1, %v7126_v31  ;;  %3752 = vperm.xlu1 %6010, %v3618_v57   ;;  %6104 = vrcp.f32 %v3525_v58  ;;  %v2863_v30 = vadd.f32 %v7693_v43, %v2401_v46  ;;  %v3619_v31 = vsel %vm3491_vm8, 0.0, %v6101_v20  ;;  %v2402_v12 = vadd.f32 %v2102_v39, %v1412_v2  ;;  %v6137_v39 = vld [vmem:[%s6422_s30 + $0x69] sm:$0xff]  ;;  %v6179_v49 = vld [vmem:[%s6422_s30 + $0x112] sm:$0xff] }
  0xec   : > { %v3462_v7 = vadd.f32 %v3162_v42, %v2472_v23  ;;  %v7869_v43 = vsel %vm3478_vm15, 0.0, %v8775_v29  ;;  %v7901_v20 = vsel %vm3480_vm4, 0.0, %v8775_v29  ;;  %v6139_v42 = vld [vmem:[%s6422_s30 + $0x81] sm:$0xff]  ;;  %v7936_v60 = vld [vmem:[%s6422_s30 + $0x18a] sm:$0xff] }
  0xed   : > { %5399 = vmatmul.mubr.msk.f32.gmra.mrb[6].mxu1 %vm449_vm1, %v6135_v0  ;;  %v3163_v44 = vadd.f32 %v2863_v30, %v2471_v4  ;;  %8799 = vst [vmem:[#allocation30_spill] sm:$0xff] %v7869_v43  ;;  %v2864_v16 = vadd.f32 %v7786_v15, %v2402_v12  ;;  %3757 = vperm.xlu0 %6009, %v3619_v31   ;;  %v7876_v4 = vsel %vm3479_vm3, 0.0, %v8775_v29  ;;  %v8802_v15 = vld [vmem:[#allocation14_spill] sm:$0xff]  ;;  %8805 = vst [vmem:[#allocation16_spill] sm:$0xff] %v7901_v20 }
  0xee   : > { %5623 = vmatmul.mubr.msk.f32.gmra.mrb[22].mxu0 %vm449_vm1, %v7171_v3  ;;  %5401 = vmatprep.mubr.msk.f32.mxu1 %vm449_vm1, %v6136_v52  ;;  %vm3494_vm13 = vcmp.eq.f32.partialorder %v3462_v7, 0.0  ;;  %8800 = vst [vmem:[#allocation31_spill] sm:$0xff] %v7876_v4  ;;  %v8807_v12 = vld [vmem:[#allocation18_spill] sm:$0xff] }
  0xef   : > { %5625 = vmatprep.mubr.msk.f32.mxu0 %vm449_vm1, %v7180_v22  ;;  %v3463_v18 = vadd.f32 %v3163_v44, %v2473_v51  ;;  %v3526_v46 = vsel %vm3494_vm13, 1.0, %v3462_v7  ;;  %v7881_v35 = vsel %vm3494_vm13, 0.0, %v8775_v29  ;;  %v3164_v13 = vadd.f32 %v2864_v16, %v2472_v23  ;;  %v6140_v51 = vld [vmem:[%s6422_s30 + $0x91] sm:$0xff]  ;;  %v7925_v44 = vld [vmem:[%s6422_s30 + $0x182] sm:$0xff]  ;;  %v6141_v52 = vld [vmem:[%s6422_s30 + $0x99] sm:$0xff] }
  0xf0   : > { %8801 = vst [vmem:[#allocation32_spill] sm:$0xff] %v7881_v35  ;;  %6106 = vrcp.f32 %v3526_v46  ;;  %v8808_v16 = vld [vmem:[#allocation20_spill] sm:$0xff] }
  0xf1   : > { %5402 = vmatmul.mubr.msk.f32.gmra.mrb[8].mxu1 %vm449_vm1, %v6137_v39  ;;  %vm3495_vm14 = vcmp.eq.f32.partialorder %v3463_v18, 0.0  ;;  %v3464_v2 = vadd.f32 %v3164_v13, %v2474_v5  ;;  %v6142_v5 = vld [vmem:[%s6422_s30 + $0xa9] sm:$0xff] }
  0xf2   : > { %5626 = vmatmul.mubr.msk.f32.gmra.mrb[24].mxu0 %vm449_vm1, %v8802_v15  ;;  %5404 = vmatprep.mubr.msk.f32.mxu1 %vm449_vm1, %v6138_v59  ;;  %v3527_v21 = vsel %vm3495_vm14, 1.0, %v3463_v18  ;;  %v7896_v58 = vsel %vm3495_vm14, 0.0, %v8775_v29  ;;  %v6143_v59 = vld [vmem:[%s6422_s30 + $0xb1] sm:$0xff] }
  0xf3   : > { %5628 = vmatprep.mubr.msk.f32.mxu0 %vm449_vm1, %v8803_v56  ;;  %8804 = vst [vmem:[#allocation14_spill] sm:$0xff] %v7896_v58  ;;  %6108 = vrcp.f32 %v3527_v21  ;;  %vm3496_vm15 = vcmp.eq.f32.partialorder %v3464_v2, 0.0  ;;  %v6144_v21 = vld [vmem:[%s6422_s30 + $0xc1] sm:$0xff]  ;;  %v6149_v18 = vld [vmem:[%s6422_s30 + $0x4a] sm:$0xff] }
  0xf4   : > { %v6103_v57 = vpop.eup %6102  ;;  %v3528_v30 = vsel %vm3496_vm15, 1.0, %v3464_v2  ;;  %v7914_v31 = vsel %vm3496_vm15, 0.0, %v8775_v29  ;;  %v6152_v2 = vld [vmem:[%s6422_s30 + $0xf1] sm:$0xff] }
  0xf5   : > { %v6105_v23 = vpop.eup %6104  ;;  %5405 = vmatmul.mubr.msk.f32.gmra.mrb[10].mxu1 %vm449_vm1, %v6139_v42  ;;  %v3620_v41 = vsel %vm3492_vm0, 0.0, %v6103_v57  ;;  %8806 = vst [vmem:[#allocation33_spill] sm:$0xff] %v7914_v31  ;;  %6110 = vrcp.f32 %v3528_v30  ;;  %v6145_v57 = vld [vmem:[%s6422_s30 + $0x32] sm:$0xff]  ;;  %v6146_v42 = vld [vmem:[%s6422_s30 + $0xc9] sm:$0xff] }
  0xf6   : > { %5629 = vmatmul.mubr.msk.f32.gmra.mrb[26].mxu0 %vm449_vm1, %v7277_v19  ;;  %5407 = vmatprep.mubr.msk.f32.mxu1 %vm449_vm1, %v6140_v51  ;;  %v3621_v0 = vsel %vm3493_vm9, 0.0, %v6105_v23  ;;  %v6148_v51 = vld [vmem:[%s6422_s30 + $0xd9] sm:$0xff] }
  0xf7   : > { %5631 = vmatprep.mubr.msk.f32.mxu0 %vm449_vm1, %v8807_v12  ;;  %3762 = vperm.xlu1 %6010, %v3620_v41   ;;  %v6147_v41 = vld [vmem:[%s6422_s30 + $0x3a] sm:$0xff] }
  0xf8   : > { %3767 = vperm.xlu0 %6009, %v3621_v0   ;;  %v6150_v0 = vld [vmem:[%s6422_s30 + $0xe1] sm:$0xff] }
  0xf9   : > { %5408 = vmatmul.mubr.msk.f32.gmra.mrb[12].mxu1 %vm449_vm1, %v6141_v52  ;;  %v6151_v52 = vld [vmem:[%s6422_s30 + $0x52] sm:$0xff] }
  0xfa   : > { %5632 = vmatmul.mubr.msk.f32.gmra.mrb[28].mxu0 %vm449_vm1, %v8808_v16  ;;  %5410 = vmatprep.mubr.msk.f32.mxu1 %vm449_vm1, %v6142_v5  ;;  %v6107_v46 = vpop.eup %6106  ;;  %v6153_v5 = vld [vmem:[%s6422_s30 + $0x62] sm:$0xff] }
  0xfb   : > { %5634 = vmatprep.mubr.msk.f32.mxu0 %vm449_vm1, %v7925_v44  ;;  %v3622_v13 = vsel %vm3494_vm13, 0.0, %v6107_v46  ;;  %v6154_v46 = vld [vmem:[%s6422_s30 + $0xf9] sm:$0xff] }
  0xfc   : > { %3772 = vperm.xlu1 %6010, %v3622_v13   ;;  %v6155_v13 = vld [vmem:[%s6422_s30 + $0x6a] sm:$0xff] }
  0xfd   : > { %v6109_v39 = vpop.eup %6108  ;;  %5411 = vmatmul.mubr.msk.f32.gmra.mrb[14].mxu1 %vm449_vm1, %v6143_v59  ;;  %v6157_v59 = vld [vmem:[%s6422_s30 + $0x7a] sm:$0xff] }
  0xfe   : > { %5635 = vmatmul.mubr.msk.f32.gmra.mrb[30].mxu0 %vm449_vm1, %v7936_v60  ;;  %5413 = vmatprep.mubr.msk.f32.mxu1 %vm449_vm1, %v6144_v21  ;;  %v3623_v7 = vsel %vm3495_vm14, 0.0, %v6109_v39  ;;  %v6156_v39 = vld [vmem:[%s6422_s30 + $0x109] sm:$0xff]  ;;  %v6158_v21 = vld [vmem:[%s6422_s30 + $0x111] sm:$0xff] }
  0xff   : > { %5639 = vmatprep.mubr.msk.f32.mxu0 %vm449_vm1, %v6145_v57  ;;  %3777 = vperm.xlu0 %6009, %v3623_v7   ;;  %v6111_v23 = vpop.eup %6110  ;;  %v6159_v57 = vld [vmem:[%s6422_s30 + $0x82] sm:$0xff] }
 0x100   : > { %v3624_v30 = vsel %vm3496_vm15, 0.0, %v6111_v23  ;;  %v6160_v7 = vld [vmem:[%s6422_s30 + $0x121] sm:$0xff]  ;;  %v6161_v23 = vld [vmem:[%s6422_s30 + $0x92] sm:$0xff] }
 0x101   : > { %5414 = vmatmul.mubr.msk.f32.gmra.mrb[16].mxu1 %vm449_vm1, %v6146_v42  ;;  %3782 = vperm.xlu1 %6010, %v3624_v30   ;;  %v6162_v42 = vld [vmem:[%s6422_s30 + $0x129] sm:$0xff]  ;;  %v6164_v30 = vld [vmem:[%s6422_s30 + $0x139] sm:$0xff] }
 0x102   : > { %5640 = vmatmul.mubr.msk.f32.vlgmr.msra.gmra.mrb[0].mxu0 %vm449_vm1, %v6147_v41  ;;  %5416 = vmatprep.mubr.msk.f32.mxu1 %vm449_vm1, %v6148_v51  ;;  %v6163_v41 = vld [vmem:[%s6422_s30 + $0x9a] sm:$0xff] }
 0x103   : > { %5642 = vmatprep.mubr.msk.f32.mxu0 %vm449_vm1, %v6149_v18  ;;  %v6165_v18 = vld [vmem:[%s6422_s30 + $0xaa] sm:$0xff] }
 0x105   : > { %5417 = vmatmul.mubr.msk.f32.gmra.mrb[18].mxu1 %vm449_vm1, %v6150_v0 }
 0x106   : > { %5643 = vmatmul.mubr.msk.f32.gmra.mrb[2].mxu0 %vm449_vm1, %v6151_v52  ;;  %5419 = vmatprep.mubr.msk.f32.mxu1 %vm449_vm1, %v6152_v2  ;;  %v6166_v52 = vld [vmem:[%s6422_s30 + $0x141] sm:$0xff] }
 0x107   : > { %5645 = vmatprep.mubr.msk.f32.mxu0 %vm449_vm1, %v6153_v5  ;;  %v6167_v5 = vld [vmem:[%s6422_s30 + $0xb2] sm:$0xff] }
 0x109   : > { %5420 = vmatmul.mubr.msk.f32.gmra.mrb[20].mxu1 %vm449_vm1, %v6154_v46 }
 0x10a   : > { %5646 = vmatmul.mubr.msk.f32.gmra.mrb[4].mxu0 %vm449_vm1, %v6155_v13  ;;  %5422 = vmatprep.mubr.msk.f32.mxu1 %vm449_vm1, %v6156_v39  ;;  %v6168_v13 = vld [vmem:[%s6422_s30 + $0x151] sm:$0xff] }
 0x10b   : > { %5648 = vmatprep.mubr.msk.f32.mxu0 %vm449_vm1, %v6157_v59  ;;  %v6169_v59 = vld [vmem:[%s6422_s30 + $0xc2] sm:$0xff] }
 0x10d   : > { %5423 = vmatmul.mubr.msk.f32.gmra.mrb[22].mxu1 %vm449_vm1, %v6158_v21 }
 0x10e   : > { %5649 = vmatmul.mubr.msk.f32.gmra.mrb[6].mxu0 %vm449_vm1, %v6159_v57  ;;  %5425 = vmatprep.mubr.msk.f32.mxu1 %vm449_vm1, %v6160_v7  ;;  %v6170_v57 = vld [vmem:[%s6422_s30 + $0x159] sm:$0xff] }
 0x10f   : > { %5651 = vmatprep.mubr.msk.f32.mxu0 %vm449_vm1, %v6161_v23  ;;  %v6171_v23 = vld [vmem:[%s6422_s30 + $0xca] sm:$0xff] }
 0x111   : > { %5426 = vmatmul.mubr.msk.f32.gmra.mrb[24].mxu1 %vm449_vm1, %v6162_v42 }
 0x112   : > { %5652 = vmatmul.mubr.msk.f32.gmra.mrb[8].mxu0 %vm449_vm1, %v6163_v41  ;;  %5428 = vmatprep.mubr.msk.f32.mxu1 %vm449_vm1, %v6164_v30  ;;  %v6172_v41 = vld [vmem:[%s6422_s30 + $0x169] sm:$0xff] }
 0x113   : > { %5654 = vmatprep.mubr.msk.f32.mxu0 %vm449_vm1, %v6165_v18  ;;  %v6173_v18 = vld [vmem:[%s6422_s30 + $0xda] sm:$0xff] }
 0x115   : > { %5429 = vmatmul.mubr.msk.f32.gmra.mrb[26].mxu1 %vm449_vm1, %v6166_v52 }
 0x116   : > { %5655 = vmatmul.mubr.msk.f32.gmra.mrb[10].mxu0 %vm449_vm1, %v6167_v5  ;;  %5431 = vmatprep.mubr.msk.f32.mxu1 %vm449_vm1, %v6168_v13  ;;  %v6174_v5 = vld [vmem:[%s6422_s30 + $0x171] sm:$0xff] }
 0x117   : > { %5657 = vmatprep.mubr.msk.f32.mxu0 %vm449_vm1, %v6169_v59  ;;  %v6175_v59 = vld [vmem:[%s6422_s30 + $0xe2] sm:$0xff] }
 0x119   : > { %5432 = vmatmul.mubr.msk.f32.gmra.mrb[28].mxu1 %vm449_vm1, %v6170_v57 }
 0x11a   : > { %5658 = vmatmul.mubr.msk.f32.gmra.mrb[12].mxu0 %vm449_vm1, %v6171_v23  ;;  %5434 = vmatprep.mubr.msk.f32.mxu1 %vm449_vm1, %v6172_v41  ;;  %v6177_v23 = vld [vmem:[%s6422_s30 + $0xfa] sm:$0xff] }
 0x11b   : > { %5660 = vmatprep.mubr.msk.f32.mxu0 %vm449_vm1, %v6173_v18  ;;  %v6178_v18 = vld [vmem:[%s6422_s30 + $0x10a] sm:$0xff] }
 0x11d   : > { %5435 = vmatmul.mubr.msk.f32.gmra.mrb[30].mxu1 %vm449_vm1, %v6174_v5 }
 0x11e   : > { %5661 = vmatmul.mubr.msk.f32.gmra.mrb[14].mxu0 %vm449_vm1, %v6175_v59  ;;  %5463 = vmatprep.mubr.msk.f32.mxu1 %vm449_vm1, %v6148_v51  ;;  %v6180_v51 = vld [vmem:[%s6422_s30 + $0x122] sm:$0xff] }
 0x11f   : > { %5663 = vmatprep.mubr.msk.f32.mxu0 %vm449_vm1, %v6176_v61 }
 0x121   : > { %5464 = vmatmul.mubr.msk.f32.vlgmr.msra.gmra.mrb[16].mxu1 %vm449_vm1, %v6150_v0 }
 0x122   : > { %5664 = vmatmul.mubr.msk.f32.gmra.mrb[16].mxu0 %vm449_vm1, %v6177_v23  ;;  %5466 = vmatprep.mubr.msk.f32.mxu1 %vm449_vm1, %v6152_v2 }
 0x123   : > { %5666 = vmatprep.mubr.msk.f32.mxu0 %vm449_vm1, %v6178_v18 }
 0x125   : > { %5467 = vmatmul.mubr.msk.f32.gmra.mrb[18].mxu1 %vm449_vm1, %v6154_v46 }
 0x126   : > { %5667 = vmatmul.mubr.msk.f32.gmra.mrb[18].mxu0 %vm449_vm1, %v6179_v49  ;;  %5469 = vmatprep.mubr.msk.f32.mxu1 %vm449_vm1, %v6156_v39  ;;  %v3638_v49 = vpop.permute.xlu1 %3637 }
 0x127   : > { %5669 = vmatprep.mubr.msk.f32.mxu0 %vm449_vm1, %v6180_v51 }
 0x129   : > { %5470 = vmatmul.mubr.msk.f32.gmra.mrb[20].mxu1 %vm449_vm1, %v6158_v21 }
 0x12a   : > { %5670 = vmatmul.mubr.msk.f32.gmra.mrb[20].mxu0 %vm449_vm1, %v7171_v3  ;;  %5472 = vmatprep.mubr.msk.f32.mxu1 %vm449_vm1, %v6160_v7  ;;  %v2437_v3 = vld [vmem:[%s6422_s30 + $0x19a] sm:$0xff] }
 0x12b   : > { %5672 = vmatprep.mubr.msk.f32.mxu0 %vm449_vm1, %v7180_v22  ;;  %v6181_v22 = vld [vmem:[%s6422_s30 + $0x181] sm:$0xff] }
 0x12d   : > { %5473 = vmatmul.mubr.msk.f32.gmra.mrb[22].mxu1 %vm449_vm1, %v6162_v42 }
 0x12e   : > { %5673 = vmatmul.mubr.msk.f32.gmra.mrb[22].mxu0 %vm449_vm1, %v8802_v15  ;;  %5475 = vmatprep.mubr.msk.f32.mxu1 %vm449_vm1, %v6164_v30  ;;  %v6182_v15 = vld [vmem:[%s6422_s30 + $0x189] sm:$0xff] }
 0x12f   : > { %5675 = vmatprep.mubr.msk.f32.mxu0 %vm449_vm1, %v8803_v56  ;;  %v3628_v56 = vpop.permute.xlu0 %3627 }
 0x131   : > { %5476 = vmatmul.mubr.msk.f32.gmra.mrb[24].mxu1 %vm449_vm1, %v6166_v52 }
 0x132   : > { %5676 = vmatmul.mubr.msk.f32.gmra.mrb[24].mxu0 %vm449_vm1, %v7277_v19  ;;  %5478 = vmatprep.mubr.msk.f32.mxu1 %vm449_vm1, %v6168_v13  ;;  %v2438_v19 = vld [vmem:[%s6422_s30 + $0x1a2] sm:$0xff]  ;;  %s6297_s30 = smov [#allocation2]  }
 0x133   : > { %5678 = vmatprep.mubr.msk.f32.mxu0 %vm449_vm1, %v8807_v12  ;;  %s6187_s12 = sshll.u32 %s6297_s30, 4  ;;  %s6188_s12 = int_to_ptr.vmem [resolvable:$false] %s6187_s12 }
 0x134   : > { %s6189_s13 = scalar_lea.vmem %s6188_s12, 512  ;;  %p6190_p1 = scmp.lt.s32.totalorder %s8636_s18, %s6188_s12 }
 0x135   : > { %5479 = vmatmul.mubr.msk.f32.gmra.mrb[26].mxu1 %vm449_vm1, %v6170_v57  ;;  %p6191_p2 = scmp.lt.s32.totalorder %s6189_s13, %s6183_s11 }
 0x136   : > { %5679 = vmatmul.mubr.msk.f32.gmra.mrb[26].mxu0 %vm449_vm1, %v8808_v16  ;;  %5481 = vmatprep.mubr.msk.f32.mxu1 %vm449_vm1, %v6172_v41  ;;  %v3643_v16 = vpop.permute.xlu1 %3642 }
 0x137   : > { %5681 = vmatprep.mubr.msk.f32.mxu0 %vm449_vm1, %v7925_v44  ;;  %v3633_v44 = vpop.permute.xlu0 %3632  ;;  %p6192_p3 = por %p6191_p2, %p6190_p1 }
 0x139   : > { %5482 = vmatmul.mubr.msk.f32.gmra.mrb[28].mxu1 %vm449_vm1, %v6174_v5  ;;  %p6193_p5 = pnand %p6192_p3, %p6186_p0 }
 0x13a   : > { %5682 = vmatmul.mubr.msk.f32.gmra.mrb[28].mxu0 %vm449_vm1, %v7936_v60  ;;  %5484 = vmatprep.mubr.msk.f32.mxu1 %vm449_vm1, %v6181_v22  ;;  %v3653_v39 = vpop.permute.xlu1 %3652 }
 0x13b   : > { %5684 = vmatprep.mubr.msk.f32.mxu0 %vm449_vm1, %v2437_v3  ;;  %v3648_v60 = vpop.permute.xlu0 %3647 }
 0x13d   : > { %5485 = vmatmul.mubr.msk.f32.gmra.mrb[30].mxu1 %vm449_vm1, %v6182_v15 }
 0x13e   : > { %5685 = vmatmul.mubr.msk.f32.gmra.mrb[30].mxu0 %vm449_vm1, %v2438_v19  ;;  %v8065_v52 = vpop.permute.xlu1 %3662  ;;  %vm3817_vm1 = vcmask 64512  }
 0x13f   : > { %v8063_v30 = vpop.permute.xlu0 %3657 }
 0x142   : > { %v8075_v59 = vpop.permute.xlu1 %3672 }
 0x143   : > { %v8071_v41 = vpop.permute.xlu0 %3667 }
 0x146   : > { %v8085_v22 = vpop.permute.xlu1 %3682 }
 0x147   : > { %v8083_v3 = vpop.permute.xlu0 %3677 }
 0x14a   : > { %v8093_v62 = vpop.permute.xlu1 %3692 }
 0x14b   : > { %v8091_v40 = vpop.permute.xlu0 %3687 }
 0x14f   : > { %v8101_v38 = vpop.permute.xlu0 %3697 }
 0x1b4   : > { %v5391_v12 = vpop.f32.mrb[0].mxu1 }
 0x1b5   : > { %v1580_v61 = vpop.f32.mrb[1].mxu1 }
 0x1b8   : > { %v5394_v0 = vpop.f32.mrb[2].mxu1 }
 0x1b9   : > { %v1590_v2 = vpop.f32.mrb[3].mxu1 }
 0x1bc   : > { %v5397_v46 = vpop.f32.mrb[4].mxu1 }
 0x1bd   : > { %v1600_v21 = vpop.f32.mrb[5].mxu1 }
 0x1c0   : > { %v8059_v7 = vpop.f32.mrb[6].mxu1 }
 0x1c1   : > { %v8061_v42 = vpop.f32.mrb[7].mxu1 }
 0x1c4   : > { %v8067_v13 = vpop.f32.mrb[8].mxu1 }
 0x1c5   : > { %v8069_v57 = vpop.f32.mrb[9].mxu1 }
 0x1c8   : > { %v8073_v5 = vpop.f32.mrb[10].mxu1 }
 0x1c9   : > { %v8077_v23 = vpop.f32.mrb[11].mxu1 }
 0x1cc   : > { %v8079_v18 = vpop.f32.mrb[12].mxu1 }
 0x1cd   : > { %v8081_v51 = vpop.f32.mrb[13].mxu1 }
 0x1d0   : > { %v8087_v19 = vpop.f32.mrb[14].mxu1 }
 0x1d1   : > { %v8089_v15 = vpop.f32.mrb[15].mxu1 }
 0x1d5   : > { %v5641_v17 = vpop.f32.mrb[0].mxu0 }
 0x1d6   : > { %v5689_v24 = vadd.f32 %v5641_v17, %v5391_v12  ;;  %v3242_v28 = vpop.f32.mrb[1].mxu0 }
 0x1d7   : > { %v5690_v20 = vadd.f32 %v3242_v28, %v1580_v61 }
 0x1d8   : > { %v8095_v31 = vmul.f32 %v5689_v24, %v3633_v44 }
 0x1d9   : > { %v8097_v4 = vmul.f32 %v5690_v20, %v3628_v56  ;;  %v5644_v58 = vpop.f32.mrb[2].mxu0  ;;  %v8109_v20 = vpop.permute.xlu1 %3702 }
 0x1da   : > { %v3889_v43 = vmul.f32 %v8095_v31, %v8095_v31  ;;  %v5691_v35 = vadd.f32 %v5644_v58, %v5394_v0  ;;  %v3252_v37 = vpop.f32.mrb[3].mxu0  ;;  %v3819_v63 = vsel %vm3817_vm1, %v8095_v31, 0.0 }
 0x1db   : > { %v3818_v17 = vsel %vm3817_vm1, %v8097_v4, 0.0  ;;  %v3888_v28 = vmul.f32 %v8097_v4, %v8097_v4  ;;  %v5692_v24 = vadd.f32 %v3252_v37, %v1590_v2 }
 0x1dc   : > { %v8111_v56 = vmul.f32 %v5691_v35, %v3643_v16  ;;  %v3921_v12 = vsel %vm3817_vm1, %v3889_v43, 0.0  ;;  %v3820_v0 = vadd.f32 %v3819_v63, %v3818_v17 }
 0x1dd   : > { %v3920_v58 = vsel %vm3817_vm1, %v3888_v28, 0.0  ;;  %v8115_v61 = vmul.f32 %v5692_v24, %v3638_v49  ;;  %v5647_v44 = vpop.f32.mrb[4].mxu0  ;;  %v8125_v49 = vpop.permute.xlu0 %3707 }
 0x1de   : > { %v3891_v54 = vmul.f32 %v8111_v56, %v8111_v56  ;;  %v5693_v50 = vadd.f32 %v5647_v44, %v5397_v46  ;;  %v3262_v27 = vpop.f32.mrb[5].mxu0  ;;  %v3922_v2 = vadd.f32 %v3921_v12, %v3920_v58  ;;  %v3823_v63 = vsel %vm3817_vm1, %v8111_v56, 0.0  ;;  %v8132_v24 = vpop.permute.xlu1 %3712 }
 0x1df   : > { %v3821_v37 = vsel %vm3817_vm1, %v8115_v61, 0.0  ;;  %v3890_v35 = vmul.f32 %v8115_v61, %v8115_v61  ;;  %v5694_v16 = vadd.f32 %v3262_v27, %v1600_v21 }
 0x1e0   : > { %v3822_v43 = vadd.f32 %v3821_v37, %v3820_v0  ;;  %v8123_v53 = vmul.f32 %v5693_v50, %v3653_v39  ;;  %v3925_v44 = vsel %vm3817_vm1, %v3891_v54, 0.0 }
 0x1e1   : > { %v3923_v17 = vsel %vm3817_vm1, %v3890_v35, 0.0  ;;  %v8130_v46 = vmul.f32 %v5694_v16, %v3648_v60  ;;  %v5650_v28 = vpop.f32.mrb[6].mxu0 }
 0x1e2   : > { %v3924_v6 = vadd.f32 %v3923_v17, %v3922_v2  ;;  %v3893_v27 = vmul.f32 %v8123_v53, %v8123_v53  ;;  %v3824_v50 = vadd.f32 %v3823_v63, %v3822_v43  ;;  %v3272_v39 = vpop.f32.mrb[7].mxu0  ;;  %v5695_v60 = vadd.f32 %v5650_v28, %v8059_v7 }
 0x1e3   : > { %v3825_v21 = vsel %vm3817_vm1, %v8130_v46, 0.0  ;;  %v3892_v12 = vmul.f32 %v8130_v46, %v8130_v46  ;;  %v5696_v58 = vadd.f32 %v3272_v39, %v8061_v42  ;;  %v3827_v54 = vsel %vm3817_vm1, %v8123_v53, 0.0  ;;  %v8153_v42 = vpop.permute.xlu0 %3717 }
 0x1e4   : > { %v3826_v0 = vadd.f32 %v3825_v21, %v3824_v50  ;;  %v3926_v37 = vadd.f32 %v3925_v44, %v3924_v6  ;;  %v8147_v16 = vmul.f32 %v5695_v60, %v8065_v52  ;;  %v3929_v6 = vsel %vm3817_vm1, %v3893_v27, 0.0  ;;  %v8162_v50 = vpop.permute.xlu1 %3722 }
 0x1e5   : > { %v3927_v35 = vsel %vm3817_vm1, %v3892_v12, 0.0  ;;  %v8150_v2 = vmul.f32 %v5696_v58, %v8063_v30  ;;  %v5653_v43 = vpop.f32.mrb[8].mxu0 }
 0x1e6   : > { %v3928_v63 = vadd.f32 %v3927_v35, %v3926_v37  ;;  %v3828_v17 = vadd.f32 %v3827_v54, %v3826_v0  ;;  %v5697_v7 = vadd.f32 %v5653_v43, %v8067_v13  ;;  %v3282_v28 = vpop.f32.mrb[9].mxu0  ;;  %v3895_v44 = vmul.f32 %v8147_v16, %v8147_v16 }
 0x1e7   : > { %v3829_v52 = vsel %vm3817_vm1, %v8150_v2, 0.0  ;;  %v3894_v30 = vmul.f32 %v8150_v2, %v8150_v2  ;;  %v5698_v12 = vadd.f32 %v3282_v28, %v8069_v57  ;;  %v3831_v58 = vsel %vm3817_vm1, %v8147_v16, 0.0 }
 0x1e8   : > { %v3830_v39 = vadd.f32 %v3829_v52, %v3828_v17  ;;  %v3930_v21 = vadd.f32 %v3929_v6, %v3928_v63  ;;  %v8165_v13 = vmul.f32 %v5697_v7, %v8075_v59  ;;  %v3933_v0 = vsel %vm3817_vm1, %v3895_v44, 0.0  ;;  %v8183_v6 = vpop.permute.xlu0 %3727 }
 0x1e9   : > { %v3931_v27 = vsel %vm3817_vm1, %v3894_v30, 0.0  ;;  %v5656_v60 = vpop.f32.mrb[10].mxu0  ;;  %v8173_v54 = vmul.f32 %v5698_v12, %v8071_v41 }
 0x1ea   : > { %v3932_v37 = vadd.f32 %v3931_v27, %v3930_v21  ;;  %v3292_v35 = vpop.f32.mrb[11].mxu0  ;;  %v3897_v43 = vmul.f32 %v8165_v13, %v8165_v13  ;;  %v3832_v59 = vadd.f32 %v3831_v58, %v3830_v39  ;;  %v5699_v63 = vadd.f32 %v5656_v60, %v8073_v5  ;;  %v8191_v5 = vpop.permute.xlu1 %3732 }
 0x1eb   : > { %v5700_v57 = vadd.f32 %v3292_v35, %v8077_v23  ;;  %v3833_v17 = vsel %vm3817_vm1, %v8173_v54, 0.0  ;;  %v3896_v7 = vmul.f32 %v8173_v54, %v8173_v54  ;;  %v3835_v23 = vsel %vm3817_vm1, %v8165_v13, 0.0 }
 0x1ec   : > { %v3934_v28 = vadd.f32 %v3933_v0, %v3932_v37  ;;  %v3834_v41 = vadd.f32 %v3833_v17, %v3832_v59  ;;  %v8186_v44 = vmul.f32 %v5699_v63, %v8085_v22  ;;  %v3937_v27 = vsel %vm3817_vm1, %v3897_v43, 0.0 }
 0x1ed   : > { %v8189_v52 = vmul.f32 %v5700_v57, %v8083_v3  ;;  %v5659_v30 = vpop.f32.mrb[12].mxu0  ;;  %v3935_v39 = vsel %vm3817_vm1, %v3896_v7, 0.0 }
 0x1ee   : > { %v5701_v21 = vadd.f32 %v5659_v30, %v8079_v18  ;;  %v3302_v12 = vpop.f32.mrb[13].mxu0  ;;  %v3936_v60 = vadd.f32 %v3935_v39, %v3934_v28  ;;  %v3899_v22 = vmul.f32 %v8186_v44, %v8186_v44  ;;  %v3836_v58 = vadd.f32 %v3835_v23, %v3834_v41  ;;  %v8218_v23 = vpop.permute.xlu0 %3737 }
 0x1ef   : > { %v3837_v3 = vsel %vm3817_vm1, %v8189_v52, 0.0  ;;  %v3898_v0 = vmul.f32 %v8189_v52, %v8189_v52  ;;  %v5702_v35 = vadd.f32 %v3302_v12, %v8081_v51  ;;  %v3839_v43 = vsel %vm3817_vm1, %v8186_v44, 0.0  ;;  %v8220_v39 = vpop.permute.xlu1 %3742 }
 0x1f0   : > { %v8205_v37 = vmul.f32 %v5701_v21, %v8093_v62  ;;  %v3838_v18 = vadd.f32 %v3837_v3, %v3836_v58  ;;  %v3938_v59 = vadd.f32 %v3937_v27, %v3936_v60  ;;  %v3941_v21 = vsel %vm3817_vm1, %v3899_v22, 0.0 }
 0x1f1   : > { %v5662_v63 = vpop.f32.mrb[14].mxu0  ;;  %v3939_v57 = vsel %vm3817_vm1, %v3898_v0, 0.0  ;;  %v8214_v7 = vmul.f32 %v5702_v35, %v8091_v40 }
 0x1f2   : > { %v3901_v17 = vmul.f32 %v8205_v37, %v8205_v37  ;;  %v3312_v28 = vpop.f32.mrb[15].mxu0  ;;  %v3940_v41 = vadd.f32 %v3939_v57, %v3938_v59  ;;  %v3840_v62 = vadd.f32 %v3839_v43, %v3838_v18  ;;  %v5703_v30 = vadd.f32 %v5662_v63, %v8087_v19 }
 0x1f3   : > { %v5704_v51 = vadd.f32 %v3312_v28, %v8089_v15  ;;  %v3841_v12 = vsel %vm3817_vm1, %v8214_v7, 0.0  ;;  %v3900_v40 = vmul.f32 %v8214_v7, %v8214_v7  ;;  %v3843_v0 = vsel %vm3817_vm1, %v8205_v37, 0.0 }
 0x1f4   : > { %v3842_v27 = vadd.f32 %v3841_v12, %v3840_v62  ;;  %v3942_v60 = vadd.f32 %v3941_v21, %v3940_v41  ;;  %v8228_v58 = vmul.f32 %v5703_v30, %v8109_v20  ;;  %v5465_v15 = vpop.f32.mrb[16].mxu1  ;;  %v3945_v63 = vsel %vm3817_vm1, %v3901_v17, 0.0 }
 0x1f5   : > { %v8231_v19 = vmul.f32 %v5704_v51, %v8101_v38  ;;  %v5665_v3 = vpop.f32.mrb[16].mxu0  ;;  %v3943_v22 = vsel %vm3817_vm1, %v3900_v40, 0.0  ;;  %v1960_v18 = vpop.f32.mrb[17].mxu1 }
 0x1f6   : > { %v5705_v35 = vadd.f32 %v5665_v3, %v5465_v15  ;;  %v3322_v59 = vpop.f32.mrb[17].mxu0  ;;  %v3944_v43 = vadd.f32 %v3943_v22, %v3942_v60  ;;  %v3903_v20 = vmul.f32 %v8228_v58, %v8228_v58  ;;  %v3844_v57 = vadd.f32 %v3843_v0, %v3842_v27 }
 0x1f7   : > { %v3845_v38 = vsel %vm3817_vm1, %v8231_v19, 0.0  ;;  %v3902_v28 = vmul.f32 %v8231_v19, %v8231_v19  ;;  %v5706_v62 = vadd.f32 %v3322_v59, %v1960_v18  ;;  %v3847_v17 = vsel %vm3817_vm1, %v8228_v58, 0.0  ;;  %v8254_v18 = vpop.permute.xlu0 %3747  ;;  %v3753_v59 = vpop.permute.xlu1 %3752 }
 0x1f8   : > { %v8244_v41 = vmul.f32 %v5705_v35, %v8132_v24  ;;  %v3846_v30 = vadd.f32 %v3845_v38, %v3844_v57  ;;  %v3946_v51 = vadd.f32 %v3945_v63, %v3944_v43  ;;  %v5468_v21 = vpop.f32.mrb[18].mxu1  ;;  %v3949_v63 = vsel %vm3817_vm1, %v3903_v20, 0.0 }
 0x1f9   : > { %v5668_v12 = vpop.f32.mrb[18].mxu0  ;;  %v3947_v40 = vsel %vm3817_vm1, %v3902_v28, 0.0  ;;  %v8252_v60 = vmul.f32 %v5706_v62, %v8125_v49  ;;  %v1970_v15 = vpop.f32.mrb[19].mxu1 }
 0x1fa   : > { %v3905_v27 = vmul.f32 %v8244_v41, %v8244_v41  ;;  %v3332_v3 = vpop.f32.mrb[19].mxu0  ;;  %v3948_v24 = vadd.f32 %v3947_v40, %v3946_v51  ;;  %v3848_v0 = vadd.f32 %v3847_v17, %v3846_v30  ;;  %v5707_v22 = vadd.f32 %v5668_v12, %v5468_v21 }
 0x1fb   : > { %v5708_v35 = vadd.f32 %v3332_v3, %v1970_v15  ;;  %v3849_v43 = vsel %vm3817_vm1, %v8252_v60, 0.0  ;;  %v3904_v57 = vmul.f32 %v8252_v60, %v8252_v60  ;;  %v3851_v21 = vsel %vm3817_vm1, %v8244_v41, 0.0 }
 0x1fc   : > { %v3850_v38 = vadd.f32 %v3849_v43, %v3848_v0  ;;  %v3950_v49 = vadd.f32 %v3949_v63, %v3948_v24  ;;  %v8262_v28 = vmul.f32 %v5707_v22, %v8162_v50  ;;  %v5471_v30 = vpop.f32.mrb[20].mxu1  ;;  %v3953_v15 = vsel %vm3817_vm1, %v3905_v27, 0.0 }
 0x1fd   : > { %v8265_v62 = vmul.f32 %v5708_v35, %v8153_v42  ;;  %v5671_v51 = vpop.f32.mrb[20].mxu0  ;;  %v3951_v20 = vsel %vm3817_vm1, %v3904_v57, 0.0  ;;  %v1980_v17 = vpop.f32.mrb[21].mxu1 }
 0x1fe   : > { %v5709_v12 = vadd.f32 %v5671_v51, %v5471_v30  ;;  %v3342_v40 = vpop.f32.mrb[21].mxu0  ;;  %v3952_v3 = vadd.f32 %v3951_v20, %v3950_v49  ;;  %v3907_v50 = vmul.f32 %v8262_v28, %v8262_v28  ;;  %v3852_v24 = vadd.f32 %v3851_v21, %v3850_v38 }
 0x1ff   : > { %v3853_v42 = vsel %vm3817_vm1, %v8265_v62, 0.0  ;;  %v3906_v0 = vmul.f32 %v8265_v62, %v8265_v62  ;;  %v5710_v35 = vadd.f32 %v3342_v40, %v1980_v17  ;;  %v3855_v27 = vsel %vm3817_vm1, %v8262_v28, 0.0 }
 0x200   : > { %v8278_v22 = vmul.f32 %v5709_v12, %v8191_v5  ;;  %v3854_v63 = vadd.f32 %v3853_v42, %v3852_v24  ;;  %v3954_v43 = vadd.f32 %v3953_v15, %v3952_v3  ;;  %v5474_v57 = vpop.f32.mrb[22].mxu1  ;;  %v3758_v15 = vpop.permute.xlu0 %3757  ;;  %v3957_v24 = vsel %vm3817_vm1, %v3907_v50, 0.0 }
 0x201   : > { %v5674_v30 = vpop.f32.mrb[22].mxu0  ;;  %v3955_v49 = vsel %vm3817_vm1, %v3906_v0, 0.0  ;;  %v8286_v51 = vmul.f32 %v5710_v35, %v8183_v6  ;;  %v1990_v21 = vpop.f32.mrb[23].mxu1 }
 0x202   : > { %v3909_v38 = vmul.f32 %v8278_v22, %v8278_v22  ;;  %v3352_v20 = vpop.f32.mrb[23].mxu0  ;;  %v3956_v5 = vadd.f32 %v3955_v49, %v3954_v43  ;;  %v3856_v12 = vadd.f32 %v3855_v27, %v3854_v63  ;;  %v5711_v17 = vadd.f32 %v5674_v30, %v5474_v57  ;;  %v3763_v3 = vpop.permute.xlu1 %3762 }
 0x203   : > { %v5712_v40 = vadd.f32 %v3352_v20, %v1990_v21  ;;  %v3857_v42 = vsel %vm3817_vm1, %v8286_v51, 0.0  ;;  %v3908_v0 = vmul.f32 %v8286_v51, %v8286_v51  ;;  %v3859_v57 = vsel %vm3817_vm1, %v8278_v22, 0.0 }
 0x204   : > { %v3858_v45 = vadd.f32 %v3857_v42, %v3856_v12  ;;  %v3958_v55 = vadd.f32 %v3957_v24, %v3956_v5  ;;  %v8294_v6 = vmul.f32 %v5711_v17, %v8220_v39  ;;  %v5477_v63 = vpop.f32.mrb[24].mxu1  ;;  %v3961_v21 = vsel %vm3817_vm1, %v3909_v38, 0.0 }
 0x205   : > { %v8297_v35 = vmul.f32 %v5712_v40, %v8218_v23  ;;  %v5677_v43 = vpop.f32.mrb[24].mxu0  ;;  %v3959_v50 = vsel %vm3817_vm1, %v3908_v0, 0.0  ;;  %v2000_v27 = vpop.f32.mrb[25].mxu1 }
 0x206   : > { %v5713_v30 = vadd.f32 %v5677_v43, %v5477_v63  ;;  %v3362_v49 = vpop.f32.mrb[25].mxu0  ;;  %v3960_v20 = vadd.f32 %v3959_v50, %v3958_v55  ;;  %v3911_v39 = vmul.f32 %v8294_v6, %v8294_v6  ;;  %v3860_v5 = vadd.f32 %v3859_v57, %v3858_v45 }
 0x207   : > { %v3861_v23 = vsel %vm3817_vm1, %v8297_v35, 0.0  ;;  %v3910_v12 = vmul.f32 %v8297_v35, %v8297_v35  ;;  %v5714_v40 = vadd.f32 %v3362_v49, %v2000_v27  ;;  %v3863_v55 = vsel %vm3817_vm1, %v8294_v6, 0.0 }
 0x208   : > { %v8309_v17 = vmul.f32 %v5713_v30, %v3753_v59  ;;  %v3862_v24 = vadd.f32 %v3861_v23, %v3860_v5  ;;  %v3962_v42 = vadd.f32 %v3961_v21, %v3960_v20  ;;  %v5480_v0 = vpop.f32.mrb[26].mxu1  ;;  %v3768_v21 = vpop.permute.xlu0 %3767  ;;  %v3965_v5 = vsel %vm3817_vm1, %v3911_v39, 0.0 }
 0x209   : > { %v5680_v63 = vpop.f32.mrb[26].mxu0  ;;  %v3963_v38 = vsel %vm3817_vm1, %v3910_v12, 0.0  ;;  %v8317_v43 = vmul.f32 %v5714_v40, %v8254_v18  ;;  %v2010_v57 = vpop.f32.mrb[27].mxu1 }
 0x20a   : > { %v3913_v45 = vmul.f32 %v8309_v17, %v8309_v17  ;;  %v3372_v50 = vpop.f32.mrb[27].mxu0  ;;  %v3964_v59 = vadd.f32 %v3963_v38, %v3962_v42  ;;  %v3864_v30 = vadd.f32 %v3863_v55, %v3862_v24  ;;  %v5715_v27 = vadd.f32 %v5680_v63, %v5480_v0  ;;  %v3773_v20 = vpop.permute.xlu1 %3772 }
 0x20b   : > { %v5716_v49 = vadd.f32 %v3372_v50, %v2010_v57  ;;  %v3865_v23 = vsel %vm3817_vm1, %v8317_v43, 0.0  ;;  %v3912_v12 = vmul.f32 %v8317_v43, %v8317_v43  ;;  %v3867_v0 = vsel %vm3817_vm1, %v8309_v17, 0.0 }
 0x20c   : > { %v3866_v10 = vadd.f32 %v3865_v23, %v3864_v30  ;;  %v3966_v32 = vadd.f32 %v3965_v5, %v3964_v59  ;;  %v8324_v18 = vmul.f32 %v5715_v27, %v3763_v3  ;;  %v5483_v42 = vpop.f32.mrb[28].mxu1  ;;  %v3969_v57 = vsel %vm3817_vm1, %v3913_v45, 0.0 }
 0x20d   : > { %v8326_v40 = vmul.f32 %v5716_v49, %v3758_v15  ;;  %v5683_v24 = vpop.f32.mrb[28].mxu0  ;;  %v3967_v63 = vsel %vm3817_vm1, %v3912_v12, 0.0  ;;  %v2020_v55 = vpop.f32.mrb[29].mxu1 }
 0x20e   : > { %v5717_v39 = vadd.f32 %v5683_v24, %v5483_v42  ;;  %v3382_v38 = vpop.f32.mrb[29].mxu0  ;;  %v3968_v50 = vadd.f32 %v3967_v63, %v3966_v32  ;;  %v3915_v59 = vmul.f32 %v8324_v18, %v8324_v18  ;;  %v3868_v3 = vadd.f32 %v3867_v0, %v3866_v10 }
 0x20f   : > { %v3869_v15 = vsel %vm3817_vm1, %v8326_v40, 0.0  ;;  %v3914_v30 = vmul.f32 %v8326_v40, %v8326_v40  ;;  %v5718_v49 = vadd.f32 %v3382_v38, %v2020_v55  ;;  %v3871_v32 = vsel %vm3817_vm1, %v8324_v18, 0.0 }
 0x210   : > { %v8338_v27 = vmul.f32 %v5717_v39, %v3773_v20  ;;  %v3870_v5 = vadd.f32 %v3869_v15, %v3868_v3  ;;  %v3970_v23 = vadd.f32 %v3969_v57, %v3968_v50  ;;  %v5486_v12 = vpop.f32.mrb[30].mxu1  ;;  %v3778_v20 = vpop.permute.xlu0 %3777  ;;  %v3973_v55 = vsel %vm3817_vm1, %v3915_v59, 0.0 }
 0x211   : > { %v5686_v42 = vpop.f32.mrb[30].mxu0  ;;  %v3971_v45 = vsel %vm3817_vm1, %v3914_v30, 0.0  ;;  %v8343_v24 = vmul.f32 %v5718_v49, %v3768_v21  ;;  %v2030_v10 = vpop.f32.mrb[31].mxu1 }
 0x212   : > { %v3392_v0 = vpop.f32.mrb[31].mxu0  ;;  %v3972_v63 = vadd.f32 %v3971_v45, %v3970_v23  ;;  %v3872_v11 = vadd.f32 %v3871_v32, %v3870_v5  ;;  %v5719_v1 = vadd.f32 %v5686_v42, %v5486_v12  ;;  %v3783_v39 = vpop.permute.xlu1 %3782  ;;  %v3917_v38 = vmul.f32 %v8338_v27, %v8338_v27 }
 0x213   : > { %v5720_v33 = vadd.f32 %v3392_v0, %v2030_v10  ;;  %v3873_v57 = vsel %vm3817_vm1, %v8343_v24, 0.0  ;;  %v3916_v21 = vmul.f32 %v8343_v24, %v8343_v24  ;;  %v3875_v49 = vsel %vm3817_vm1, %v8338_v27, 0.0 }
 0x214   : > { %v3874_v50 = vadd.f32 %v3873_v57, %v3872_v11  ;;  %v3974_v3 = vadd.f32 %v3973_v55, %v3972_v63  ;;  %v8352_v15 = vmul.f32 %v5719_v1, %v3783_v39  ;;  %v3977_v12 = vsel %vm3817_vm1, %v3917_v38, 0.0 }
 0x215   : > { %v8354_v30 = vmul.f32 %v5720_v33, %v3778_v20  ;;  %v3975_v59 = vsel %vm3817_vm1, %v3916_v21, 0.0 }
 0x216   : > { %v3976_v5 = vadd.f32 %v3975_v59, %v3974_v3  ;;  %v3876_v23 = vadd.f32 %v3875_v49, %v3874_v50  ;;  %v3919_v42 = vmul.f32 %v8352_v15, %v8352_v15  ;;  %v3879_v45 = vsel %vm3817_vm1, %v8352_v15, 0.0 }
 0x217   : > { %v3877_v11 = vsel %vm3817_vm1, %v8354_v30, 0.0  ;;  %v3918_v1 = vmul.f32 %v8354_v30, %v8354_v30 }
 0x218   : > { %v3878_v33 = vadd.f32 %v3877_v11, %v3876_v23  ;;  %v3978_v32 = vadd.f32 %v3977_v12, %v3976_v5  ;;  %v3981_v20 = vsel %vm3817_vm1, %v3919_v42, 0.0 }
 0x219   : > { %v3979_v10 = vsel %vm3817_vm1, %v3918_v1, 0.0 }
 0x21a   : > { %v3880_v0 = vadd.f32 %v3879_v45, %v3878_v33  ;;  %v3980_v63 = vadd.f32 %v3979_v10, %v3978_v32 }
 0x21c   : > { %v3881_v39 = vrot.slane %v3880_v0, 4  ;;  %v3982_v55 = vadd.f32 %v3981_v20, %v3980_v63 }
 0x21e   : > { %v3882_v38 = vadd.f32 %v3881_v39, %v3880_v0  ;;  %v3983_v57 = vrot.slane %v3982_v55, 4 }
 0x220   : > { %v3883_v21 = vrot.slane %v3882_v38, 2  ;;  %v3984_v50 = vadd.f32 %v3983_v57, %v3982_v55 }
 0x222   : > { %v3884_v3 = vadd.f32 %v3883_v21, %v3882_v38  ;;  %v3985_v49 = vrot.slane %v3984_v50, 2 }
 0x224   : > { %v3885_v59 = vrot.slane %v3884_v3, 1  ;;  %v3986_v23 = vadd.f32 %v3985_v49, %v3984_v50 }
 0x226   : > { %v3886_v5 = vadd.f32 %v3885_v59, %v3884_v3  ;;  %v3987_v12 = vrot.slane %v3986_v23, 1 }
 0x228   : > { %v8370_v11 = vmul.f32 0.00390625, %v3886_v5  ;;  %v3988_v47 = vadd.f32 %v3987_v12, %v3986_v23 }
 0x22a   : > { %v3989_v1 = vmul.f32 0.00390625, %v3988_v47  ;;  %v3990_v33 = vmul.f32 %v8370_v11, %v8370_v11  ;;  %v4022_v42 = vsub.f32 %v8354_v30, %v8370_v11  ;;  %v4002_v45 = vsub.f32 %v8189_v52, %v8370_v11 }
 0x22b   : > { %v4003_v10 = vsub.f32 %v8186_v44, %v8370_v11  ;;  %v4004_v63 = vsub.f32 %v8214_v7, %v8370_v11  ;;  %v4005_v47 = vsub.f32 %v8205_v37, %v8370_v11  ;;  %v4006_v20 = vsub.f32 %v8231_v19, %v8370_v11 }
 0x22c   : > { %v3991_v32 = vsub.f32 %v3989_v1, %v3990_v33  ;;  %v4007_v30 = vsub.f32 %v8228_v58, %v8370_v11  ;;  %v4008_v39 = vsub.f32 %v8252_v60, %v8370_v11  ;;  %v4009_v52 = vsub.f32 %v8244_v41, %v8370_v11 }
 0x22d   : > { %v4010_v44 = vsub.f32 %v8265_v62, %v8370_v11  ;;  %v4011_v7 = vsub.f32 %v8262_v28, %v8370_v11  ;;  %v4012_v37 = vsub.f32 %v8286_v51, %v8370_v11  ;;  %v4013_v19 = vsub.f32 %v8278_v22, %v8370_v11 }
 0x22e   : > { %v4024_v0 = vadd.f32 1e-05, %v3991_v32  ;;  %v4014_v58 = vsub.f32 %v8297_v35, %v8370_v11  ;;  %v4015_v60 = vsub.f32 %v8294_v6, %v8370_v11  ;;  %v4016_v41 = vsub.f32 %v8317_v43, %v8370_v11 }
 0x22f   : > { %v4017_v62 = vsub.f32 %v8309_v17, %v8370_v11  ;;  %v4018_v28 = vsub.f32 %v8326_v40, %v8370_v11  ;;  %v4019_v51 = vsub.f32 %v8324_v18, %v8370_v11  ;;  %v4020_v22 = vsub.f32 %v8343_v24, %v8370_v11 }
 0x230   : > { %6112 = vrsqrt.f32 %v4024_v0  ;;  %v4021_v35 = vsub.f32 %v8338_v27, %v8370_v11  ;;  %v4023_v6 = vsub.f32 %v8352_v15, %v8370_v11  ;;  %v3992_v43 = vsub.f32 %v8097_v4, %v8370_v11 }
 0x231   : > { %v3993_v17 = vsub.f32 %v8095_v31, %v8370_v11  ;;  %v3994_v40 = vsub.f32 %v8115_v61, %v8370_v11  ;;  %v3995_v18 = vsub.f32 %v8111_v56, %v8370_v11  ;;  %v3996_v24 = vsub.f32 %v8130_v46, %v8370_v11  ;;  %v8441_v56 = vld [vmem:[%s8721_s3] ss:$0 sm:$0xff] }
 0x232   : > { %v3997_v27 = vsub.f32 %v8123_v53, %v8370_v11  ;;  %v3998_v15 = vsub.f32 %v8150_v2, %v8370_v11  ;;  %v3999_v4 = vsub.f32 %v8147_v16, %v8370_v11  ;;  %v4000_v31 = vsub.f32 %v8173_v54, %v8370_v11  ;;  %v8448_v16 = vld [vmem:[%s8722_s4] ss:$0 sm:$0xff] }
 0x233   : > { %v4001_v61 = vsub.f32 %v8165_v13, %v8370_v11 }
 0x23a   : > { %v6113_v55 = vpop.eup %6112 }
 0x23b   : > { %v8443_v46 = vmul.f32 %v6113_v55, %v4022_v42  ;;  %v4042_v53 = vmul.f32 %v6113_v55, %v4008_v39  ;;  %v4026_v38 = vmul.f32 %v6113_v55, %v3992_v43  ;;  %v4027_v57 = vmul.f32 %v6113_v55, %v3993_v17 }
 0x23c   : > { %v4028_v2 = vmul.f32 %v6113_v55, %v3994_v40  ;;  %v4029_v54 = vmul.f32 %v6113_v55, %v3995_v18  ;;  %v8450_v21 = vmul.f32 %v6113_v55, %v3996_v24  ;;  %v8452_v13 = vmul.f32 %v6113_v55, %v3997_v27 }
 0x23d   : > { %v4081_v50 = vmul.f32 %v8441_v56, %v4042_v53  ;;  %v8455_v3 = vmul.f32 %v6113_v55, %v3998_v15  ;;  %v8457_v49 = vmul.f32 %v6113_v55, %v3999_v4  ;;  %v8459_v59 = vmul.f32 %v6113_v55, %v4000_v31 }
 0x23e   : > { %v8461_v23 = vmul.f32 %v6113_v55, %v4001_v61  ;;  %v8463_v5 = vmul.f32 %v6113_v55, %v4002_v45  ;;  %v8465_v12 = vmul.f32 %v6113_v55, %v4003_v10  ;;  %v8467_v11 = vmul.f32 %v6113_v55, %v4004_v63 }
 0x23f   : > { %v4120_v1 = vadd.f32 %v8448_v16, %v4081_v50  ;;  %v8470_v33 = vmul.f32 %v6113_v55, %v4005_v47  ;;  %v8472_v42 = vmul.f32 %v6113_v55, %v4006_v20  ;;  %v8474_v32 = vmul.f32 %v6113_v55, %v4007_v30 }
 0x240   : > { %v4043_v0 = vmul.f32 %v6113_v55, %v4009_v52  ;;  %v4044_v39 = vmul.f32 %v6113_v55, %v4010_v44  ;;  %v4045_v43 = vmul.f32 %v6113_v55, %v4011_v7  ;;  %v4046_v17 = vmul.f32 %v6113_v55, %v4012_v37 }
 0x241   : > { %vm4152_vm3 = vcmp.ge.f32.partialorder %v4120_v1, 0.0  ;;  %v4184_v40 = vmul.f32 0.2, %v4120_v1  ;;  %v4047_v45 = vmul.f32 %v6113_v55, %v4013_v19  ;;  %v4048_v18 = vmul.f32 %v6113_v55, %v4014_v58 }
 0x242   : > { %v8476_v10 = vmul.f32 %v6113_v55, %v4015_v60  ;;  %v8478_v63 = vmul.f32 %v6113_v55, %v4016_v41  ;;  %v8480_v24 = vmul.f32 %v6113_v55, %v4017_v62  ;;  %v8482_v47 = vmul.f32 %v6113_v55, %v4018_v28 }
 0x243   : > { %v4216_v20 = vsel %vm4152_vm3, %v4120_v1, %v4184_v40  ;;  %v8484_v27 = vmul.f32 %v6113_v55, %v4019_v51  ;;  %v8486_v30 = vmul.f32 %v6113_v55, %v4020_v22  ;;  %v8488_v52 = vmul.f32 %v6113_v55, %v4021_v35 }
 0x244   : > { %4264 = vxpose.xlu1.b32.start [1/16] (narrow) %v4216_v20, 8  ;;  %v8490_v44 = vmul.f32 %v6113_v55, %v4023_v6  ;;  %v4065_v7 = vmul.f32 %v8441_v56, %v4026_v38  ;;  %v4082_v37 = vmul.f32 %v8441_v56, %v4043_v0  ;;  %v4066_v19 = vmul.f32 %v8441_v56, %v4027_v57 }
 0x245   : > { %v4083_v58 = vmul.f32 %v8441_v56, %v4044_v39  ;;  %v4067_v60 = vmul.f32 %v8441_v56, %v4028_v2  ;;  %v4084_v41 = vmul.f32 %v8441_v56, %v4045_v43  ;;  %v4068_v35 = vmul.f32 %v8441_v56, %v4029_v54 }
 0x246   : > { %v4104_v62 = vadd.f32 %v8448_v16, %v4065_v7  ;;  %v4121_v28 = vadd.f32 %v8448_v16, %v4082_v37  ;;  %v4105_v51 = vadd.f32 %v8448_v16, %v4066_v19  ;;  %v4085_v6 = vmul.f32 %v8441_v56, %v4046_v17 }
 0x247   : > { %v4122_v22 = vadd.f32 %v8448_v16, %v4083_v58  ;;  %v4106_v61 = vadd.f32 %v8448_v16, %v4067_v60  ;;  %v4123_v53 = vadd.f32 %v8448_v16, %v4084_v41  ;;  %v4107_v2 = vadd.f32 %v8448_v16, %v4068_v35 }
 0x248   : > { %vm4136_vm4 = vcmp.ge.f32.partialorder %v4104_v62, 0.0  ;;  %v4168_v55 = vmul.f32 0.2, %v4104_v62  ;;  %vm4153_vm11 = vcmp.ge.f32.partialorder %v4121_v28, 0.0  ;;  %v4185_v15 = vmul.f32 0.2, %v4121_v28 }
 0x249   : > { %v4169_v4 = vmul.f32 0.2, %v4105_v51  ;;  %v4186_v31 = vmul.f32 0.2, %v4122_v22  ;;  %vm4137_vm12 = vcmp.ge.f32.partialorder %v4105_v51, 0.0  ;;  %vm4154_vm6 = vcmp.ge.f32.partialorder %v4122_v22, 0.0 }
 0x24a   : > { %v4200_v38 = vsel %vm4136_vm4, %v4104_v62, %v4168_v55  ;;  %v4217_v57 = vsel %vm4153_vm11, %v4121_v28, %v4185_v15  ;;  %vm4138_vm7 = vcmp.ge.f32.partialorder %v4106_v61, 0.0  ;;  %v4170_v1 = vmul.f32 0.2, %v4106_v61 }
 0x24b   : > { %4232 = vxpose.xlu0.b32.start [1/16] (narrow) %v4200_v38, 8  ;;  %4265 = vxpose.xlu1.b32.cont [2/16] (narrow) %v4217_v57, 8  ;;  %v4201_v54 = vsel %vm4137_vm12, %v4105_v51, %v4169_v4  ;;  %v4218_v50 = vsel %vm4154_vm6, %v4122_v22, %v4186_v31  ;;  %v4187_v0 = vmul.f32 0.2, %v4123_v53  ;;  %v4124_v39 = vadd.f32 %v8448_v16, %v4085_v6 }
 0x24c   : > { %v4069_v43 = vmul.f32 %v8441_v56, %v8450_v21  ;;  %v4086_v17 = vmul.f32 %v8441_v56, %v4047_v45  ;;  %vm4155_vm10 = vcmp.ge.f32.partialorder %v4123_v53, 0.0  ;;  %v4070_v40 = vmul.f32 %v8441_v56, %v8452_v13 }
 0x24d   : > { %v4202_v20 = vsel %vm4138_vm7, %v4106_v61, %v4170_v1  ;;  %vm4139_vm8 = vcmp.ge.f32.partialorder %v4107_v2, 0.0  ;;  %v4171_v7 = vmul.f32 0.2, %v4107_v2  ;;  %v4087_v37 = vmul.f32 %v8441_v56, %v4048_v18 }
 0x24e   : > { %v4219_v19 = vsel %vm4155_vm10, %v4123_v53, %v4187_v0  ;;  %v4188_v58 = vmul.f32 0.2, %v4124_v39  ;;  %v4108_v60 = vadd.f32 %v8448_v16, %v4069_v43  ;;  %v4125_v41 = vadd.f32 %v8448_v16, %v4086_v17 }
 0x24f   : > { %4233 = vxpose.xlu0.b32.cont [2/16] (narrow) %v4201_v54, 8  ;;  %4266 = vxpose.xlu1.b32.cont [3/16] (narrow) %v4218_v50, 8  ;;  %vm4156_vm0 = vcmp.ge.f32.partialorder %v4124_v39, 0.0  ;;  %v4109_v21 = vadd.f32 %v8448_v16, %v4070_v40  ;;  %v4203_v45 = vsel %vm4139_vm8, %v4107_v2, %v4171_v7  ;;  %v4126_v62 = vadd.f32 %v8448_v16, %v4087_v37 }
 0x250   : > { %v4071_v13 = vmul.f32 %v8441_v56, %v8455_v3  ;;  %v4220_v28 = vsel %vm4156_vm0, %v4124_v39, %v4188_v58  ;;  %v4172_v51 = vmul.f32 0.2, %v4108_v60  ;;  %v4189_v18 = vmul.f32 0.2, %v4125_v41 }
 0x251   : > { %v4088_v22 = vmul.f32 %v8441_v56, %v8476_v10  ;;  %vm4140_vm9 = vcmp.ge.f32.partialorder %v4108_v60, 0.0  ;;  %vm4157_vm13 = vcmp.ge.f32.partialorder %v4125_v41, 0.0  ;;  %vm4141_vm14 = vcmp.ge.f32.partialorder %v4109_v21, 0.0 }
 0x252   : > { %v4173_v35 = vmul.f32 0.2, %v4109_v21  ;;  %v4190_v6 = vmul.f32 0.2, %v4126_v62  ;;  %v4110_v55 = vadd.f32 %v8448_v16, %v4071_v13  ;;  %v4072_v15 = vmul.f32 %v8441_v56, %v8457_v49 }
 0x253   : > { %4234 = vxpose.xlu0.b32.cont [3/16] (narrow) %v4202_v20, 8  ;;  %4267 = vxpose.xlu1.b32.cont [4/16] (narrow) %v4219_v19, 8  ;;  %v4204_v4 = vsel %vm4140_vm9, %v4108_v60, %v4172_v51  ;;  %v4221_v3 = vsel %vm4157_vm13, %v4125_v41, %v4189_v18  ;;  %v4127_v31 = vadd.f32 %v8448_v16, %v4088_v22  ;;  %vm4158_vm15 = vcmp.ge.f32.partialorder %v4126_v62, 0.0 }
 0x254   : > { %v4089_v61 = vmul.f32 %v8441_v56, %v8478_v63  ;;  %v4073_v10 = vmul.f32 %v8441_v56, %v8459_v59  ;;  %v4205_v53 = vsel %vm4141_vm14, %v4109_v21, %v4173_v35  ;;  %v4174_v38 = vmul.f32 0.2, %v4110_v55 }
 0x255   : > { %v4111_v57 = vadd.f32 %v8448_v16, %v4072_v15  ;;  %v4090_v49 = vmul.f32 %v8441_v56, %v8480_v24  ;;  %v4222_v2 = vsel %vm4158_vm15, %v4126_v62, %v4190_v6  ;;  %vm4142_vm1 = vcmp.ge.f32.partialorder %v4110_v55, 0.0 }
 0x256   : > { %v4191_v54 = vmul.f32 0.2, %v4127_v31  ;;  %v4128_v50 = vadd.f32 %v8448_v16, %v4089_v61  ;;  %vm4159_vm3 = vcmp.ge.f32.partialorder %v4127_v31, 0.0  ;;  %v4112_v63 = vadd.f32 %v8448_v16, %v4073_v10 }
 0x257   : > { %4235 = vxpose.xlu0.b32.cont [4/16] (narrow) %v4203_v45, 8  ;;  %4268 = vxpose.xlu1.b32.cont [5/16] (narrow) %v4220_v28, 8  ;;  %v4206_v1 = vsel %vm4142_vm1, %v4110_v55, %v4174_v38  ;;  %v4175_v0 = vmul.f32 0.2, %v4111_v57  ;;  %v4129_v59 = vadd.f32 %v8448_v16, %v4090_v49  ;;  %v4074_v39 = vmul.f32 %v8441_v56, %v8461_v23 }
 0x258   : > { %v4223_v43 = vsel %vm4159_vm3, %v4127_v31, %v4191_v54  ;;  %vm4143_vm4 = vcmp.ge.f32.partialorder %v4111_v57, 0.0  ;;  %v4192_v24 = vmul.f32 0.2, %v4128_v50  ;;  %v4091_v17 = vmul.f32 %v8441_v56, %v8482_v47 }
 0x259   : > { %vm4160_vm11 = vcmp.ge.f32.partialorder %v4128_v50, 0.0  ;;  %vm4144_vm12 = vcmp.ge.f32.partialorder %v4112_v63, 0.0  ;;  %v4176_v40 = vmul.f32 0.2, %v4112_v63  ;;  %v4207_v20 = vsel %vm4143_vm4, %v4111_v57, %v4175_v0 }
 0x25a   : > { %v4193_v7 = vmul.f32 0.2, %v4129_v59  ;;  %v4113_v37 = vadd.f32 %v8448_v16, %v4074_v39  ;;  %v4075_v19 = vmul.f32 %v8441_v56, %v8463_v5  ;;  %v4224_v58 = vsel %vm4160_vm11, %v4128_v50, %v4192_v24 }
 0x25b   : > { %4236 = vxpose.xlu0.b32.cont [5/16] (narrow) %v4204_v4, 8  ;;  %4269 = vxpose.xlu1.b32.cont [6/16] (narrow) %v4221_v3, 8  ;;  %v4130_v23 = vadd.f32 %v8448_v16, %v4091_v17  ;;  %v4092_v60 = vmul.f32 %v8441_v56, %v8484_v27  ;;  %v4080_v47 = vmul.f32 %v8441_v56, %v8474_v32  ;;  %vm4161_vm6 = vcmp.ge.f32.partialorder %v4129_v59, 0.0 }
 0x25c   : > { %v4076_v41 = vmul.f32 %v8441_v56, %v8465_v12  ;;  %v4208_v45 = vsel %vm4144_vm12, %v4112_v63, %v4176_v40  ;;  %v4177_v5 = vmul.f32 0.2, %v4113_v37  ;;  %v4114_v62 = vadd.f32 %v8448_v16, %v4075_v19 }
 0x25d   : > { %v8551_v21 = vadd.f32 %v8448_v16, %v4080_v47  ;;  %v4093_v13 = vmul.f32 %v8441_v56, %v8486_v30  ;;  %v4225_v27 = vsel %vm4161_vm6, %v4129_v59, %v4193_v7  ;;  %vm4145_vm7 = vcmp.ge.f32.partialorder %v4113_v37, 0.0  ;;  %v8815_v47 = vld [vmem:[#allocation24_spill] sm:$0xff] }
 0x25e   : > { %v4194_v28 = vmul.f32 0.2, %v4130_v23  ;;  %v4131_v32 = vadd.f32 %v8448_v16, %v4092_v60  ;;  %vm4162_vm10 = vcmp.ge.f32.partialorder %v4130_v23, 0.0  ;;  %v4115_v12 = vadd.f32 %v8448_v16, %v4076_v41  ;;  %v8816_v41 = vld [vmem:[#allocation17_spill] sm:$0xff] }
 0x25f   : > { %4237 = vxpose.xlu0.b32.cont [6/16] (narrow) %v4205_v53, 8  ;;  %4270 = vxpose.xlu1.b32.cont [7/16] (narrow) %v4222_v2, 8  ;;  %v4209_v51 = vsel %vm4145_vm7, %v4113_v37, %v4177_v5  ;;  %v4178_v18 = vmul.f32 0.2, %v4114_v62  ;;  %v4132_v22 = vadd.f32 %v8448_v16, %v4093_v13  ;;  %v4077_v35 = vmul.f32 %v8441_v56, %v8467_v11  ;;  %v8819_v5 = vld [vmem:[#allocation19_spill] sm:$0xff] }
 0x260   : > { %v4226_v6 = vsel %vm4162_vm10, %v4130_v23, %v4194_v28  ;;  %vm4146_vm8 = vcmp.ge.f32.partialorder %v4114_v62, 0.0  ;;  %v4195_v30 = vmul.f32 0.2, %v4131_v32  ;;  %v4094_v55 = vmul.f32 %v8441_v56, %v8488_v52  ;;  %v8827_v13 = vld [vmem:[#allocation11_spill] sm:$0xff] }
 0x261   : > { %vm4163_vm0 = vcmp.ge.f32.partialorder %v4131_v32, 0.0  ;;  %vm4147_vm9 = vcmp.ge.f32.partialorder %v4115_v12, 0.0  ;;  %v4179_v15 = vmul.f32 0.2, %v4115_v12  ;;  %v4210_v4 = vsel %vm4146_vm8, %v4114_v62, %v4178_v18  ;;  %v8824_v62 = vld [vmem:[#allocation26_spill] sm:$0xff]  ;;  %v8830_v28 = vld [vmem:[#allocation27_spill] sm:$0xff] }
 0x262   : > { %vm4164_vm13 = vcmp.ge.f32.partialorder %v4132_v22, 0.0  ;;  %v4196_v3 = vmul.f32 0.2, %v4132_v22  ;;  %v4116_v31 = vadd.f32 %v8448_v16, %v4077_v35  ;;  %v4227_v61 = vsel %vm4163_vm0, %v4131_v32, %v4195_v30  ;;  %v8831_v32 = vld [vmem:[#allocation10_spill] sm:$0xff]  ;;  %v8834_v18 = vld [vmem:[#allocation12_spill] sm:$0xff]  ;;  %v8836_v35 = vld [vmem:[#allocation29_spill] sm:$0xff] }
 0x263   : > { %4238 = vxpose.xlu0.b32.cont [7/16] (narrow) %v4206_v1, 8  ;;  %4271 = vxpose.xlu1.b32.cont [8/16] (narrow) %v4223_v43, 8  ;;  %v4133_v10 = vadd.f32 %v8448_v16, %v4094_v55  ;;  %v4078_v11 = vmul.f32 %v8441_v56, %v8470_v33  ;;  %v4095_v53 = vmul.f32 %v8441_v56, %v8443_v46  ;;  %v4183_v40 = vmul.f32 0.2, %v8551_v21  ;;  %v8839_v55 = vld [vmem:[#allocation32_spill] sm:$0xff] }
 0x264   : > { %v4211_v52 = vsel %vm4147_vm9, %v4115_v12, %v4179_v15  ;;  %v4228_v38 = vsel %vm4164_vm13, %v4132_v22, %v4196_v3  ;;  %vm4148_vm14 = vcmp.ge.f32.partialorder %v4116_v31, 0.0  ;;  %v4180_v57 = vmul.f32 0.2, %v4116_v31  ;;  %v8840_v15 = vld [vmem:[#allocation30_spill] sm:$0xff] }
 0x265   : > { %v4079_v49 = vmul.f32 %v8441_v56, %v8472_v42  ;;  %v4197_v2 = vmul.f32 0.2, %v4133_v10  ;;  %v4117_v54 = vadd.f32 %v8448_v16, %v4078_v11  ;;  %v4134_v50 = vadd.f32 %v8448_v16, %v4095_v53  ;;  %v8842_v3 = vld [vmem:[#allocation14_spill] sm:$0xff]  ;;  %v8846_v11 = vld [vmem:[#allocation16_spill] sm:$0xff] }
 0x266   : > { %v4096_v33 = vmul.f32 %v8441_v56, %v8490_v44  ;;  %vm4165_vm15 = vcmp.ge.f32.partialorder %v4133_v10, 0.0  ;;  %v4212_v46 = vsel %vm4148_vm14, %v4116_v31, %v4180_v57  ;;  %vm4151_vm12 = vcmp.ge.f32.partialorder %v8551_v21, 0.0  ;;  %v8843_v31 = vld [vmem:[#allocation31_spill] sm:$0xff] }
 0x267   : > { %4239 = vxpose.xlu0.b32.cont [8/16] (narrow) %v4207_v20, 8  ;;  %4272 = vxpose.xlu1.b32.cont [9/16] (narrow) %v4224_v58, 8  ;;  %v4118_v63 = vadd.f32 %v8448_v16, %v4079_v49  ;;  %v4229_v1 = vsel %vm4165_vm15, %v4133_v10, %v4197_v2  ;;  %v4181_v0 = vmul.f32 0.2, %v4117_v54  ;;  %v4198_v59 = vmul.f32 0.2, %v4134_v50 }
 0x268   : > { %v4135_v39 = vadd.f32 %v8448_v16, %v4096_v33  ;;  %vm4149_vm1 = vcmp.ge.f32.partialorder %v4117_v54, 0.0  ;;  %vm4166_vm3 = vcmp.ge.f32.partialorder %v4134_v50, 0.0  ;;  %v4298_v20 = vsel %vm3465_vm2, 0.0, %v8775_v29  ;;  %v8845_v10 = vld [vmem:[#allocation33_spill] sm:$0xff] }
 0x269   : > { %v4213_v42 = vsel %vm4149_vm1, %v4117_v54, %v4181_v0  ;;  %v4230_v43 = vsel %vm4166_vm3, %v4134_v50, %v4198_v59  ;;  %v4182_v24 = vmul.f32 0.2, %v4118_v63  ;;  %vm4150_vm4 = vcmp.ge.f32.partialorder %v4118_v63, 0.0 }
 0x26a   : > { %v4199_v17 = vmul.f32 0.2, %v4135_v39  ;;  %vm4167_vm11 = vcmp.ge.f32.partialorder %v4135_v39, 0.0  ;;  %v4314_v7 = vsel %vm3481_vm5, 0.0, %v8775_v29  ;;  %v4215_v37 = vsel %vm4151_vm12, %v8551_v21, %v4183_v40  ;;  %v8813_v29 = vld [vmem:[#allocation15_spill] sm:$0xff] }
 0x26b   : > { %4240 = vxpose.xlu0.b32.cont [9/16] (narrow) %v4208_v45, 8  ;;  %4273 = vxpose.xlu1.b32.cont [10/16] (narrow) %v4225_v27, 8  ;;  %v4214_v56 = vsel %vm4150_vm4, %v4118_v63, %v4182_v24  ;;  %v6011_v19 = vpack.i.bf16 %v4314_v7, %v4298_v20  ;;  %v8810_v58 = vpack.i.bf16 %v7414_v48, %v7161_v9  ;;  %v8818_v45 = vld [vmem:[#allocation9_spill] sm:$0xff] }
 0x26c   : > { %v4231_v44 = vsel %vm4167_vm11, %v4135_v39, %v4199_v17  ;;  %v8811_v23 = vpack.i.bf16 %v7474_v26, %v7156_v8  ;;  %v8812_v60 = vpack.i.bf16 %v7508_v36, %v7207_v25  ;;  %v8814_v14 = vpack.i.bf16 %v7557_v34, %v8813_v29  ;;  %v8821_v48 = vld [vmem:[#allocation25_spill] sm:$0xff]  ;;  %v8825_v25 = vld [vmem:[#allocation22_spill] sm:$0xff]  ;;  %v8828_v34 = vld [vmem:[#allocation23_spill] sm:$0xff] }
 0x26d   : > { %v8817_v21 = vpack.i.bf16 %v8815_v47, %v8816_v41  ;;  %v8820_v9 = vpack.i.bf16 %v8818_v45, %v8819_v5  ;;  %v8822_v8 = vld [vmem:[#allocation21_spill] sm:$0xff]  ;;  %v8826_v36 = vpack.i.bf16 %v8824_v62, %v8825_v25  ;;  %v8829_v27 = vpack.i.bf16 %v8827_v13, %v8828_v34 }
 0x26e   : > { %v8823_v26 = vpack.i.bf16 %v8821_v48, %v8822_v8  ;;  %v8832_v12 = vpack.i.bf16 %v8830_v28, %v8831_v32  ;;  %v8847_v53 = vpack.i.bf16 %v8845_v10, %v8846_v11 }
 0x26f   : > { %4241 = vxpose.xlu0.b32.cont [10/16] (narrow) %v4209_v51, 8  ;;  %4274 = vxpose.xlu1.b32.cont [11/16] (narrow) %v4226_v6, 8  ;;  %v8833_v51 = vld [vmem:[#allocation28_spill] sm:$0xff]  ;;  %v8837_v6 = vld [vmem:[#allocation13_spill] sm:$0xff] }
 0x270   : > { %v8835_v22 = vpack.i.bf16 %v8833_v51, %v8834_v18  ;;  %v8838_v30 = vpack.i.bf16 %v8836_v35, %v8837_v6 }
 0x273   : > { %4242 = vxpose.xlu0.b32.cont [11/16] (narrow) %v4210_v4, 8  ;;  %4275 = vxpose.xlu1.b32.cont [12/16] (narrow) %v4227_v61, 8  ;;  %v8841_v4 = vpack.i.bf16 %v8839_v55, %v8840_v15  ;;  %v8844_v61 = vpack.i.bf16 %v8842_v3, %v8843_v31 }
 0x277   : > { %4243 = vxpose.xlu0.b32.cont [12/16] (narrow) %v4211_v52, 8  ;;  %4276 = vxpose.xlu1.b32.cont [13/16] (narrow) %v4228_v38, 8 }
 0x27b   : > { %4244 = vxpose.xlu0.b32.cont [13/16] (narrow) %v4212_v46, 8  ;;  %4277 = vxpose.xlu1.b32.cont [14/16] (narrow) %v4229_v1, 8 }
 0x27f   : > { %4245 = vxpose.xlu0.b32.cont [14/16] (narrow) %v4213_v42, 8  ;;  %4278 = vxpose.xlu1.b32.cont [15/16] (narrow) %v4230_v43, 8 }
 0x283   : > { %4246 = vxpose.xlu0.b32.cont [15/16] (narrow) %v4214_v56, 8  ;;  %4279 = vxpose.xlu1.b32.end [16/16] (narrow) %v4231_v44, 8 }
 0x287   : > { %4247 = vxpose.xlu0.b32.end [16/16] (narrow) %v4215_v37, 8 }
 0x28b   : > { %6012 = vxpose.xlu0.b32.start [1/16] (narrow) %v6011_v19, 8 }
 0x28f   : > { %6014 = vxpose.xlu0.b32.cont [2/16] (narrow) %v8810_v58, 8 }
 0x293   : > { %6016 = vxpose.xlu0.b32.cont [3/16] (narrow) %v8811_v23, 8 }
 0x297   : > { %6018 = vxpose.xlu0.b32.cont [4/16] (narrow) %v8812_v60, 8 }
 0x29b   : > { %6020 = vxpose.xlu0.b32.cont [5/16] (narrow) %v8814_v14, 8 }
 0x29f   : > { %6022 = vxpose.xlu0.b32.cont [6/16] (narrow) %v8817_v21, 8 }
 0x2a3   : > { %6024 = vxpose.xlu0.b32.cont [7/16] (narrow) %v8820_v9, 8 }
 0x2a7   : > { %6026 = vxpose.xlu0.b32.cont [8/16] (narrow) %v8823_v26, 8 }
 0x2ab   : > { %6028 = vxpose.xlu0.b32.cont [9/16] (narrow) %v8826_v36, 8 }
 0x2af   : > { %6030 = vxpose.xlu0.b32.cont [10/16] (narrow) %v8829_v27, 8 }
 0x2b3   : > { %6032 = vxpose.xlu0.b32.cont [11/16] (narrow) %v8832_v12, 8 }
 0x2b7   : > { %6034 = vxpose.xlu0.b32.cont [12/16] (narrow) %v8835_v22, 8 }
 0x2bb   : > { %6036 = vxpose.xlu0.b32.cont [13/16] (narrow) %v8838_v30, 8 }
 0x2bf   : > { %6038 = vxpose.xlu0.b32.cont [14/16] (narrow) %v8841_v4, 8 }
 0x2c3   : > { %6040 = vxpose.xlu0.b32.cont [15/16] (narrow) %v8844_v61, 8 }
 0x2c7   : > { %6042 = vxpose.xlu0.b32.end [16/16] (narrow) %v8847_v53, 8  ;;  %v4280_v52 = vpop.trf.xlu1 }
 0x2c8   : > { %4297 = vst [vmem:[%s314_s17 + $0x8] sm:$0xff] %v4280_v52 }
 0x2cb   : > { %v4248_v38 = vpop.trf.xlu0 }
 0x2cc   : > { %4296 = vst [vmem:[%s314_s17] sm:$0xff] %v4248_v38 }
 0x2cd   : > { %6196 = shalt.err (!%p6193_p5)
}
 0x2ce   : > { %s6197_s14 = scalar_lea.hbm %s8641_s20, 256  ;;  %s6201_s27 = scalar_lea.hbm %s8723_s5, 512 }
 0x2cf   : > { %p6198_p6 = scmp.ne.s32.totalorder %s8641_s20, %s6197_s14  ;;  %p6202_p10 = scmp.lt.u32.totalorder %s8641_s20, %s8723_s5 }
 0x2d0   : > { %p6203_p11 = scmp.lt.u32.totalorder %s6201_s27, %s6197_s14  ;;  %p6205_p13 = scmp.lt.u32.totalorder %s6197_s14, %s8641_s20 }
 0x2d1   : > { %p6199_p7 = pnand %p6198_p6, %p6375_p4 }
 0x2d2   : > { %p6204_p12 = por %p6203_p11, %p6202_p10 }
 0x2d3   : > { %p6200_p9 = pneg %p6199_p7 }
 0x2d4   : > { %p6206_p0 = por %p6205_p13, %p6204_p12 }
 0x2d6   : > { %p6207_p1 = pnand %p6206_p0, %p6200_p9 }
 0x2d8   : > { %6210 = shalt.err (!%p6207_p1)
}
 0x2d9   : > { %5946 = dma.vmem_to_hbm [thread:$0]  (%p6375_p4), %s8636_s18, 256, %s8641_s20, %s4418_s8   ;;  %v6298_v57 = vmov 1966171168   ;;  %v4400_v2 = vlaneseq }
 0x2da   : > { %v4398_v49 = vunpack.c.l.s4 %v6298_v57  ;;  %s4620_s11 = sshll.u32 %s8626_s15, 1  ;;  %s4939_s30 = sshll.u32 %s6285_s24, 5 }
 0x2db   : > { %v4401_v50 = vshrl.u32 %v4400_v2, 7  ;;  %s321_s12 = scalar_lea.vmem [#allocation4], %s4620_s11  ;;  %vm4414_vm2 = vcmp.lt.s32.totalorder %v4400_v2, 256  ;;  %s8670_s8 = scalar_lea.hbm %s8724_s6, %s4939_s30 }
 0x2dc   : > { %v4399_v54 = vunpack.c.0.s8 %v4398_v49  ;;  %s4455_s13 = sshll.u32 %s321_s12, 4  ;;  %s4423_s14 = scalar_lea.sflag [#allocation5], %s8626_s15  ;;  %s8672_s13 = int_to_ptr.vmem [resolvable:$true] %s4455_s13 }
 0x2dd   : > { %s6211_s16 = scalar_lea.vmem %s8672_s13, 32  ;;  %s6299_s24 = smov [#allocation4]  }
 0x2de   : > { %v4402_v33 = vsub.s32 %v4399_v54, %v4401_v50  ;;  %p6212_p2 = scmp.ne.s32.totalorder %s8672_s13, %s6211_s16  ;;  %s6215_s17 = sshll.u32 %s6299_s24, 4  ;;  %s6216_s17 = int_to_ptr.vmem [resolvable:$false] %s6215_s17 }
 0x2df   : > { %s6217_s27 = scalar_lea.vmem %s6216_s17, 64  ;;  %p6218_p6 = scmp.lt.s32.totalorder %s8672_s13, %s6216_s17 }
 0x2e0   : > { %p6213_p3 = pnand %p6212_p2, %p6375_p4  ;;  %p6219_p7 = scmp.lt.s32.totalorder %s6217_s27, %s6211_s16 }
 0x2e2   : > { %p6214_p5 = pneg %p6213_p3  ;;  %p6220_p9 = por %p6219_p7, %p6218_p6 }
 0x2e4   : > { %p6221_p10 = pnand %p6220_p9, %p6214_p5 }
 0x30b   : > { %v6043_v46 = vpop.trf.xlu0 }
 0x30c   : > { %v6047_v63 = vunpack.i.h.bf16 %v6043_v46  ;;  %v6044_v1 = vunpack.i.l.bf16 %v6043_v46 }
 0x30e   : > { %v4396_v0 = vcombine.low %v6044_v1, %v6047_v63 }
 0x310   : > { %v4403_v59 = vrot.slane %v4396_v0, %v4402_v33 }
 0x312   : > { %v4410_v39 = vrot.slane %v4403_v59, %v4402_v33 }
 0x314   : > { %4416 = vst.msk [vmem:[%s321_s12] sm:$0x3] %vm4414_vm2, %v4410_v39 }
 0x315   : > { %6224 = shalt.err (!%p6221_p10)
}
 0x316   : > { %s6225_s15 = scalar_lea.hbm %s8670_s8, 32  ;;  %s6229_s11 = scalar_lea.hbm %s8724_s6, 64 }
 0x317   : > { %p6226_p11 = scmp.ne.s32.totalorder %s8670_s8, %s6225_s15  ;;  %p6230_p0 = scmp.lt.u32.totalorder %s8670_s8, %s8724_s6 }
 0x318   : > { %p6231_p1 = scmp.lt.u32.totalorder %s6229_s11, %s6225_s15  ;;  %p6233_p3 = scmp.lt.u32.totalorder %s6225_s15, %s8670_s8 }
 0x319   : > { %p6227_p12 = pnand %p6226_p11, %p6375_p4 }
 0x31a   : > { %p6232_p2 = por %p6231_p1, %p6230_p0 }
 0x31b   : > { %p6228_p13 = pneg %p6227_p12 }
 0x31c   : > { %p6234_p5 = por %p6233_p3, %p6232_p2 }
 0x31e   : > { %p6235_p6 = pnand %p6234_p5, %p6228_p13 }
 0x320   : > { %6238 = shalt.err (!%p6235_p6)
}
 0x321   : > { %5947 = dma.vmem_to_hbm [thread:$0]  (%p6375_p4), %s8672_s13, 32, %s8670_s8, %s4423_s14  }
 0x322 PF: > { %p5957_p7 = scmp.ge.s32.totalorder %s6293_s26, 2  ;;  %s4467_s18 = sand.u32 1, %s6273_s21  }
 0x323   : > { %s4468_s20 = scalar_lea.sflag [#allocation3], %s4467_s18 }
 0x324   : > { %p5951_p9 = pnand %p5957_p7, %p6382_p8 }
 0x326   : > { %6264 = dma.done.wait (!%p5951_p9), %s4468_s20, 256  }
 0x327   : > { %6266 = vsyncadd (!%p5951_p9), %s4468_s20, 4294967040  ;;  %s4477_s16 = scalar_lea.sflag [#allocation5], %s4467_s18 }
 0x328   : > { %6268 = dma.done.wait (!%p5951_p9), %s4477_s16, 32  }
 0x329   : > { %6270 = vsyncadd (!%p5951_p9), %s4477_s16, 4294967264  ;;  %s23_s26 = sadd.s32 1, %s6293_s26   ;;  %s8848_s21 = smov %s6277_s22 }
 0x32a   : > { %p20_p10 = scmp.ge.s32.totalorder %s23_s26, 4   ;;  %s8849_s22 = smov %s6281_s23 }
 0x32b   : > { %s8850_s23 = smov %s6388_s10  ;;  %s8851_s24 = smov %s6289_s25 }
 0x32c   : > { %s8852_s25 = smov %s8854_s29  ;;  %22 = sbr.rel (!%p20_p10) target bundleno = 6 (0x6), region = 112 }
 0x333   :  { %4482 = vsyncpa [#allocation3], 1 }
 0x334   :  { %4484 = vsyncpa [#allocation3 + $0x1], 1 }
 0x335   :  { %4485 = vsyncpa [#allocation5], 1 }
 0x336   :  { %4487 = vsyncpa [#allocation5 + $0x1], 1 }

</bundles_post_ra>
